<compile_context>
chip_gen: v7x
topology: tpu7x:2x2x1
jax: 0.10.0
libtpu: 0.0.40
codegen_flags: <defaults>
</compile_context>

<pallas_src>
import numpy as np
import jax
import jax.numpy as jnp
from jax.experimental import pallas as pl
from jax.experimental.pallas import tpu as pltpu


# ----------------------------- model configuration -----------------------------
NUM_INPUTS = 2                      # stereo input mix
NUM_CHANNELS = [4, 8, 16]           # feature channels per level
NUM_LEVELS = len(NUM_CHANNELS)
NUM_OUTPUTS = 2                     # stereo per instrument
INSTRUMENTS = ["vocals", "accompaniment"]
KERNEL_SIZE = 5
STRIDES = 2
DEPTH = 1
TARGET_OUTPUT_SIZE = 437
STYLE_LEN = 256
LEAKY_SLOPE = 0.01


# --------------------- static conv layout (consumption order) ---------------------
def _conv_defs():
    """(kind, cout, cin, K) for every conv, in kernel consumption order."""
    defs = []
    for i in range(NUM_LEVELS - 1):                                  # down blocks
        in_ch = NUM_INPUTS if i == 0 else NUM_CHANNELS[i]
        ns, no = NUM_CHANNELS[i], NUM_CHANNELS[i + 1]
        defs.append(("conv", ns, in_ch, KERNEL_SIZE))                # pre_shortcut[0]
        defs += [("conv", ns, ns, KERNEL_SIZE)] * (DEPTH - 1)
        defs.append(("conv", no, ns, KERNEL_SIZE))                   # post_shortcut[0]
        defs += [("conv", no, no, KERNEL_SIZE)] * (DEPTH - 1)
        defs.append(("conv", no, no, KERNEL_SIZE))                   # downconv (strided)
    defs += [("conv", NUM_CHANNELS[-1], NUM_CHANNELS[-1], KERNEL_SIZE)] * DEPTH
    for i in range(NUM_LEVELS - 1):                                  # up blocks
        n_in = NUM_CHANNELS[-1 - i]
        n_out = n_short = NUM_CHANNELS[-2 - i]
        defs.append(("convT", n_in, n_in, KERNEL_SIZE))              # upconv (transposed)
        defs.append(("conv", n_out, n_in, KERNEL_SIZE))              # pre_shortcut[0]
        defs += [("conv", n_out, n_out, KERNEL_SIZE)] * (DEPTH - 1)
        defs.append(("conv", n_out, n_out + n_short, KERNEL_SIZE))   # post_shortcut[0]
        defs += [("conv", n_out, n_out, KERNEL_SIZE)] * (DEPTH - 1)
    defs.append(("conv", NUM_OUTPUTS * len(INSTRUMENTS), NUM_CHANNELS[0], 1))  # out conv
    return defs


def _weight_layout():
    """Row offset / rows / width of each conv inside the packed weight buffer."""
    layout, off = [], 0
    for _, cout, cin, k in _conv_defs():
        layout.append((off, cout, k * cin + 1))          # +1 = folded bias column
        off += ((cout + 15) // 16) * 16                  # 16-sublane (bf16 tile) bands
    return tuple(layout), off


_W_LAYOUT, _W_ROWS = _weight_layout()
_W_COLS = 128                                            # all widths are <= 81


# ------------------------------ fused Pallas kernel ------------------------------
def _waveunet_kernel(x_ref, style_ref, thro_ref, w_ref, *rest):
    """Entire Wave-U-Net forward for one batch shard, fully in VMEM.

    rest = (sel_0..sel_{L-2}, spread_0..spread_{L-2}, out_ref).
    Every conv over the shard's samples is ONE MXU matmul (per-sample im2col
    columns concatenated along N, bias folded in as a ones-row).
    """
    n_lv = NUM_LEVELS - 1
    sel_refs = rest[:n_lv]
    spr_refs = rest[n_lv:2 * n_lv]
    o_ref = rest[2 * n_lv]

    bs = x_ref.shape[0]                                  # samples in this shard
    cursor = [0]

    def next_w():
        r0, cout, width = _W_LAYOUT[cursor[0]]
        cursor[0] += 1
        return w_ref[r0:r0 + cout, 0:width]              # (cout, K*cin+1) bf16

    def leaky(v):
        return jnp.where(v >= 0, v, LEAKY_SLOPE * v)

    def conv(vs, K, act=True):
        # valid stride-1 conv over all shard samples: ONE bf16 matmul on an
        # im2col built from K shifted slices + a ones-row (folded bias),
        # f32 accumulation on the MXU.
        w = next_w()
        cout = w.shape[0]
        cin, tin = vs[0].shape
        tout = tin - K + 1
        assert w.shape[1] == K * cin + 1
        taps = [jnp.concatenate([v[:, k:k + tout] for v in vs], axis=1)
                for k in range(K)]                       # each (cin, bs*tout)
        ones = jnp.ones((1, bs * tout), jnp.float32)
        im2col = jnp.concatenate(taps + [ones], axis=0).astype(jnp.bfloat16)
        out = jnp.dot(w, im2col, preferred_element_type=jnp.float32)
        if act:
            out = leaky(out)
        return [out[:, b * tout:(b + 1) * tout] for b in range(bs)]

    def decimate(vs, sel):
        # strided down-conv: keep cols 0, s, 2s, ... of every sample via one
        # 0/1 selection matmul over the row-stacked shard (matrix precomputed
        # on the host, VMEM-resident across the whole grid).
        c = vs[0].shape[0]
        joint = jnp.concatenate(vs, axis=0).astype(jnp.bfloat16)
        dec = jnp.dot(joint, sel[...], preferred_element_type=jnp.float32)
        return [dec[b * c:(b + 1) * c, :] for b in range(bs)]

    def spread(vs, spr):
        # transposed up-conv, dilation step: zero-dilate every sample via one
        # 0/1 spread matmul over the row-stacked shard (precomputed matrix).
        c = vs[0].shape[0]
        joint = jnp.concatenate(vs, axis=0).astype(jnp.bfloat16)
        dil = jnp.dot(joint, spr[...], preferred_element_type=jnp.float32)
        return [dil[b * c:(b + 1) * c, :] for b in range(bs)]

    def crop(v, t_target):
        diff = v.shape[1] - t_target
        assert diff >= 0 and diff % 2 == 0
        if diff == 0:
            return v
        lo = diff // 2
        return v[:, lo:lo + t_target]

    def add_style(v, style):
        # torch.tile(style, (C, T//256)) right-padded with zeros to T, then add.
        c, t = v.shape
        reps = t // STYLE_LEN
        if reps == 0:
            return v
        sb = jnp.broadcast_to(style, (c, STYLE_LEN))
        parts = [sb] * reps
        if t > reps * STYLE_LEN:
            parts.append(jnp.zeros((c, t - reps * STYLE_LEN), jnp.float32))
        return v + jnp.concatenate(parts, axis=1)

    x_all = x_ref[...].astype(jnp.float32)               # (bs, Cin, Tin)
    style_all = style_ref[...].astype(jnp.float32)       # (bs, 1, STYLE_LEN)
    thro_all = thro_ref[...]                             # (bs, L-1, 1) f32

    outs = [x_all[b] for b in range(bs)]

    # ---- downsampling path ----
    shortcuts = []
    for lvl in range(n_lv):
        for _ in range(DEPTH):                           # pre_shortcut_convs
            outs = conv(outs, KERNEL_SIZE)
        shortcuts.append(outs)
        for _ in range(DEPTH):                           # post_shortcut_convs
            outs = conv(outs, KERNEL_SIZE)
        outs = conv(outs, KERNEL_SIZE, act=False)        # downconv, stride-1 part (bias incl.)
        outs = decimate(outs, sel_refs[lvl])             # apply stride
        outs = [add_style(leaky(v), style_all[b]) for b, v in enumerate(outs)]
        # TODO(synk): DownsamplingBlock.fc (nn.Linear(256,1)) is unused in the reference forward; omitted.

    # ---- bottlenecks ----
    for _ in range(DEPTH):
        outs = conv(outs, KERNEL_SIZE)

    # ---- upsampling path ----
    for idx in range(n_lv):
        lvl = n_lv - 1 - idx
        ups = spread(outs, spr_refs[idx])                # zero-dilate
        ups = conv(ups, KERNEL_SIZE)                     # upconv (flipped weights pre-folded)
        for _ in range(DEPTH):                           # pre_shortcut_convs
            ups = conv(ups, KERNEL_SIZE)
        t_comb = ups[0].shape[1]
        combined = [crop(shortcuts[lvl][b], t_comb) * thro_all[b, lvl:lvl + 1, :]
                    for b in range(bs)]                  # throttle-scaled, centre-cropped shortcut
        for _ in range(DEPTH):                           # post_shortcut_convs
            cats = [jnp.concatenate(
                        [combined[b], crop(ups[b], combined[b].shape[1])], axis=0)
                    for b in range(bs)]
            combined = conv(cats, KERNEL_SIZE)
        outs = combined

    # ---- 1x1 output conv + eval-mode clamp, lane/sublane-padded dense store ----
    outs = conv(outs, 1, act=False)
    assert cursor[0] == len(_W_LAYOUT)
    c_pad, t_pad = o_ref.shape[1], o_ref.shape[2]
    for b in range(bs):
        v = jnp.clip(outs[b], -1.0, 1.0)
        c, t = v.shape
        assert c <= c_pad and t <= t_pad
        if t_pad > t:
            v = jnp.concatenate([v, jnp.zeros((c, t_pad - t), jnp.float32)], axis=1)
        if c_pad > c:
            v = jnp.concatenate([v, jnp.zeros((c_pad - c, t_pad), jnp.float32)], axis=0)
        o_ref[b] = v


# --------------------------- size schedule (valid convs) -------------------------
def _size_schedule(input_size):
    t = input_size
    down_full, up_in = [], []
    for _ in range(NUM_LEVELS - 1):
        for _ in range(2 * DEPTH):
            t -= KERNEL_SIZE - 1
        t_full = t - (KERNEL_SIZE - 1)                   # stride-1 downconv output length
        assert t_full > 0 and (t_full - 1) % STRIDES == 0
        down_full.append(t_full)
        t = (t_full - 1) // STRIDES + 1
    for _ in range(DEPTH):
        t -= KERNEL_SIZE - 1
    for _ in range(NUM_LEVELS - 1):
        up_in.append(t)                                  # length fed to the upconv
        t = (t - 1) * STRIDES + 1 - (KERNEL_SIZE - 1)
        for _ in range(2 * DEPTH):
            t -= KERNEL_SIZE - 1
    return {"down_full": down_full, "up_in": up_in, "out": t}


def _sel_matrix(t_full, stride):
    # (t_full, t_dec) 0/1 matrix:  decimated = full @ sel  keeps cols 0, s, 2s, ...
    t_dec = (t_full - 1) // stride + 1
    m = np.zeros((t_full, t_dec), np.float32)
    m[np.arange(t_dec) * stride, np.arange(t_dec)] = 1.0
    return jnp.asarray(m, dtype=jnp.bfloat16)


def _spread_matrix(t, stride):
    # (t, t_dil) 0/1 matrix:  dilated = v @ spread  (zeros between samples).
    t_dil = (t - 1) * stride + 1
    m = np.zeros((t, t_dil), np.float32)
    m[np.arange(t), np.arange(t) * stride] = 1.0
    return jnp.asarray(m, dtype=jnp.bfloat16)


# ------------------------------ param preparation --------------------------------
def _iter_convs(params):
    """Yield (kind, raw conv params) in the exact kernel consumption order."""
    for bp in params["down"]:
        for p in bp["pre"]:
            yield ("conv", p)
        for p in bp["post"]:
            yield ("conv", p)
        yield ("conv", bp["down"])
    for p in params["bottlenecks"]:
        yield ("conv", p)
    for bp in params["up"]:
        yield ("convT", bp["up"])
        for p in bp["pre"]:
            yield ("conv", p)
        for p in bp["post"]:
            yield ("conv", p)
    yield ("conv", params["out_conv"])


def prepare_params(params, input_size):
    """Pre-fold transposes/flips, bias columns and weight packing (done ONCE)."""
    wbuf = np.zeros((_W_ROWS, _W_COLS), np.float32)
    for (r0, cout, width), (kind, p) in zip(_W_LAYOUT, _iter_convs(params)):
        w = np.asarray(p["w"], np.float32)
        if kind == "convT":
            # torch ConvTranspose1d weight (Cin, Cout, K) -> equivalent valid-conv
            # weight (Cout, Cin, K) = transpose + flip along K.
            w = np.flip(np.transpose(w, (1, 0, 2)), axis=2)
        co, ci, k = w.shape
        assert co == cout and k * ci + 1 == width
        # column index == k*Cin + c (matches in-kernel im2col order); last col = bias
        wbuf[r0:r0 + co, :k * ci] = np.transpose(w, (0, 2, 1)).reshape(co, k * ci)
        wbuf[r0:r0 + co, k * ci] = np.asarray(p["b"], np.float32).reshape(co)
    sched = _size_schedule(input_size)
    return {
        "wbuf": jnp.asarray(wbuf, dtype=jnp.bfloat16),
        "sels": tuple(_sel_matrix(t, STRIDES) for t in sched["down_full"]),
        "spreads": tuple(_spread_matrix(t, STRIDES) for t in sched["up_in"]),
        "throttle_w": jnp.asarray(params["throttle"]["w"], dtype=jnp.float32),
        "throttle_b": jnp.asarray(params["throttle"]["b"], dtype=jnp.float32),
    }


# --------------------------------- forward ---------------------------------------
def make_forward(input_size, output_size):
    c_out = NUM_OUTPUTS * len(INSTRUMENTS)
    c_pad = 8 * ((c_out + 7) // 8)
    t_pad = 128 * ((output_size + 127) // 128)
    n_lv = NUM_LEVELS - 1

    @jax.jit
    def forward(prepped, x, eps, style_emb):
        assert x.shape[-1] == input_size
        B = x.shape[0]
        # 2 shards when possible (both TensorCores on v7x); within a shard the
        # whole sub-batch shares every matmul (batch folded into the N dim).
        n_shards = 2 if (B % 2 == 0 and B >= 2) else 1
        bs = B // n_shards

        # throttle: Linear(1, num_levels-1); tiny, computed once in XLA.
        thro = eps @ prepped["throttle_w"].T + prepped["throttle_b"]
        thro = thro.reshape(B, n_lv, 1).astype(jnp.float32)

        wbuf, sels, spreads = prepped["wbuf"], prepped["sels"], prepped["spreads"]

        in_specs = [
            pl.BlockSpec((bs,) + x.shape[1:], lambda s: (s, 0, 0)),
            pl.BlockSpec((bs, 1, STYLE_LEN), lambda s: (s, 0, 0)),
            pl.BlockSpec((bs, n_lv, 1), lambda s: (s, 0, 0)),
            pl.BlockSpec(wbuf.shape, lambda s: (0, 0)),
        ]
        in_specs += [pl.BlockSpec(m.shape, lambda s: (0, 0)) for m in sels]
        in_specs += [pl.BlockSpec(m.shape, lambda s: (0, 0)) for m in spreads]

        out_padded = pl.pallas_call(
            _waveunet_kernel,
            out_shape=jax.ShapeDtypeStruct((B, c_pad, t_pad), jnp.float32),
            grid_spec=pltpu.PrefetchScalarGridSpec(
                num_scalar_prefetch=0,
                grid=(n_shards,),
                in_specs=in_specs,
                out_specs=pl.BlockSpec((bs, c_pad, t_pad), lambda s: (s, 0, 0)),
            ),
            compiler_params=pltpu.CompilerParams(
                dimension_semantics=("parallel",),       # shard -> both TCs on v7x
                # real footprint is ~2 MiB at bs=1; keep headroom on v7x (64 MiB VMEM)
                vmem_limit_bytes=min(48, 6 + 2 * bs) * 1024 * 1024,
            ),
        )(x.astype(jnp.float32), style_emb.astype(jnp.float32), thro,
          wbuf, *sels, *spreads)

        # lazy per-instrument views straight off the padded buffer
        return {inst: out_padded[:, i * NUM_OUTPUTS:(i + 1) * NUM_OUTPUTS, :output_size]
                for i, inst in enumerate(INSTRUMENTS)}

    return forward


# --------------------------- size bookkeeping (valid convs) ----------------------
def _conv_out(n, k, s, transpose):
    if transpose:
        assert n > 1
        c = (n - 1) * s + 1
    else:
        c = n
    c = c - k + 1
    assert c > 0
    if not transpose:
        assert (c - 1) % s == 0
        c = (c - 1) // s + 1
    return c


def _conv_in(n, k, s, transpose):
    if not transpose:
        c = (n - 1) * s + 1
    else:
        c = n
    c = c + k - 1
    if transpose:
        assert (c - 1) % s == 0
        c = (c - 1) // s + 1
    assert c > 0
    return c


def check_padding(target):
    b = 1
    while True:
        try:
            cur = b
            for _ in range(NUM_LEVELS - 1):                 # upsampling blocks
                cur = _conv_out(cur, KERNEL_SIZE, STRIDES, True)
                for _ in range(2 * DEPTH):
                    cur = _conv_out(cur, KERNEL_SIZE, 1, False)
            out_size = cur
            cur = b
            for _ in range(DEPTH):                          # bottlenecks (reversed)
                cur = _conv_in(cur, KERNEL_SIZE, 1, False)
            for _ in range(NUM_LEVELS - 1):                 # downsampling (reversed)
                cur = _conv_in(cur, KERNEL_SIZE, STRIDES, False)
                for _ in range(2 * DEPTH):
                    cur = _conv_in(cur, KERNEL_SIZE, 1, False)
            assert out_size >= target
            return cur, out_size
        except AssertionError:
            b += 1


# ------------------------------- parameter init ----------------------------------
def _init_conv(key, cout, cin, k):
    kw, kb = jax.random.split(key)
    bound = 1.0 / np.sqrt(cin * k)
    return {"w": jax.random.uniform(kw, (cout, cin, k), jnp.float32, -bound, bound),
            "b": jax.random.uniform(kb, (cout,), jnp.float32, -bound, bound)}


def _init_convT(key, cin, cout, k):
    kw, kb = jax.random.split(key)
    bound = 1.0 / np.sqrt(cin * k)
    # torch ConvTranspose1d weight layout: (Cin, Cout, K)
    return {"w": jax.random.uniform(kw, (cin, cout, k), jnp.float32, -bound, bound),
            "b": jax.random.uniform(kb, (cout,), jnp.float32, -bound, bound)}


def build_params(key):
    keys = iter(jax.random.split(key, 64))
    K = KERNEL_SIZE
    down = []
    for i in range(NUM_LEVELS - 1):
        in_ch = NUM_INPUTS if i == 0 else NUM_CHANNELS[i]
        n_short, n_out = NUM_CHANNELS[i], NUM_CHANNELS[i + 1]
        pre = [_init_conv(next(keys), n_short, in_ch, K)] + \
              [_init_conv(next(keys), n_short, n_short, K) for _ in range(DEPTH - 1)]
        post = [_init_conv(next(keys), n_out, n_short, K)] + \
               [_init_conv(next(keys), n_out, n_out, K) for _ in range(DEPTH - 1)]
        downc = _init_conv(next(keys), n_out, n_out, K)
        down.append({"pre": pre, "post": post, "down": downc})
    up = []
    for i in range(NUM_LEVELS - 1):
        n_in = NUM_CHANNELS[-1 - i]
        n_short = NUM_CHANNELS[-2 - i]
        n_out = NUM_CHANNELS[-2 - i]
        upc = _init_convT(next(keys), n_in, n_in, K)
        pre = [_init_conv(next(keys), n_out, n_in, K)] + \
              [_init_conv(next(keys), n_out, n_out, K) for _ in range(DEPTH - 1)]
        post = [_init_conv(next(keys), n_out, n_out + n_short, K)] + \
               [_init_conv(next(keys), n_out, n_out, K) for _ in range(DEPTH - 1)]
        up.append({"up": upc, "pre": pre, "post": post})
    bottlenecks = [_init_conv(next(keys), NUM_CHANNELS[-1], NUM_CHANNELS[-1], K)
                   for _ in range(DEPTH)]
    out_conv = _init_conv(next(keys), NUM_OUTPUTS * len(INSTRUMENTS), NUM_CHANNELS[0], 1)
    kt = next(keys)
    ktw, ktb = jax.random.split(kt)
    throttle = {"w": jax.random.uniform(ktw, (NUM_LEVELS - 1, 1), jnp.float32, -1.0, 1.0),
                "b": jax.random.uniform(ktb, (NUM_LEVELS - 1,), jnp.float32, -1.0, 1.0)}
    return {"down": down, "up": up, "bottlenecks": bottlenecks,
            "out_conv": out_conv, "throttle": throttle}


# ------------------------------------ main ----------------------------------------
if __name__ == "__main__":
    input_size, output_size = check_padding(TARGET_OUTPUT_SIZE)
    assert (input_size - output_size) % 2 == 0
    assert _size_schedule(input_size)["out"] == output_size

    key = jax.random.PRNGKey(0)
    kp, kx, ke, ks = jax.random.split(key, 4)
    params = build_params(kp)
    prepped = prepare_params(params, input_size)          # weight folding done once
    forward = make_forward(input_size, output_size)

    B = 2
    x = jax.random.normal(kx, (B, NUM_INPUTS, input_size), jnp.float32)
    eps = jax.random.normal(ke, (B, 1), jnp.float32)
    style_emb = jax.random.normal(ks, (B, 1, STYLE_LEN), jnp.float32)

    out_dict = forward(prepped, x, eps, style_emb)

    for inst in INSTRUMENTS:
        o = jax.block_until_ready(out_dict[inst])
        assert o.shape == (B, NUM_OUTPUTS, output_size)
        assert bool(jnp.all(jnp.isfinite(o)))

    print("KERNEL_OK")
</pallas_src>

<mosaic_0001>
module attributes {stable_mosaic.version = 11 : i64} {
  func.func @_waveunet_kernel(%arg0: i32, %arg1: memref<1x2x525xf32, #tpu.memory_space<vmem>>, %arg2: memref<1x1x256xf32, #tpu.memory_space<vmem>>, %arg3: memref<1x2x1xf32, #tpu.memory_space<vmem>>, %arg4: memref<224x128xbf16, #tpu.memory_space<vmem>>, %arg5: memref<513x257xbf16, #tpu.memory_space<vmem>>, %arg6: memref<245x123xbf16, #tpu.memory_space<vmem>>, %arg7: memref<119x237xbf16, #tpu.memory_space<vmem>>, %arg8: memref<225x449xbf16, #tpu.memory_space<vmem>>, %arg9: memref<1x8x512xf32, #tpu.memory_space<vmem>>) attributes {dimension_semantics = [#tpu.dimension_semantics<parallel>], iteration_bounds = array<i64: 2>, scalar_prefetch = 0 : i64, scratch_operands = 0 : i64, tpu.core_type = #tpu.core_type<tc>, window_params = [{transform_indices = @transform_0, window_bounds = array<i64: 1, 2, 525>}, {transform_indices = @transform_1, window_bounds = array<i64: 1, 1, 256>}, {transform_indices = @transform_2, window_bounds = array<i64: 1, 2, 1>}, {pipeline_mode = #tpu.pipeline_mode<synchronous>, transform_indices = @transform_3, window_bounds = array<i64: 224, 128>}, {pipeline_mode = #tpu.pipeline_mode<synchronous>, transform_indices = @transform_4, window_bounds = array<i64: 513, 257>}, {pipeline_mode = #tpu.pipeline_mode<synchronous>, transform_indices = @transform_5, window_bounds = array<i64: 245, 123>}, {pipeline_mode = #tpu.pipeline_mode<synchronous>, transform_indices = @transform_6, window_bounds = array<i64: 119, 237>}, {pipeline_mode = #tpu.pipeline_mode<synchronous>, transform_indices = @transform_7, window_bounds = array<i64: 225, 449>}, {transform_indices = @transform_8, window_bounds = array<i64: 1, 8, 512>}]} {
    %c0 = arith.constant 0 : index
    %c0_0 = arith.constant 0 : index
    %c0_1 = arith.constant 0 : index
    %0 = vector.load %arg1[%c0, %c0_0, %c0_1] : memref<1x2x525xf32, #tpu.memory_space<vmem>>, vector<1x2x525xf32>
    %c0_2 = arith.constant 0 : index
    %c0_3 = arith.constant 0 : index
    %c0_4 = arith.constant 0 : index
    %1 = vector.load %arg2[%c0_2, %c0_3, %c0_4] : memref<1x1x256xf32, #tpu.memory_space<vmem>>, vector<1x1x256xf32>
    %c0_5 = arith.constant 0 : index
    %c0_6 = arith.constant 0 : index
    %c0_7 = arith.constant 0 : index
    %2 = vector.load %arg3[%c0_5, %c0_6, %c0_7] : memref<1x2x1xf32, #tpu.memory_space<vmem>>, vector<1x2x1xf32>
    %3 = vector.shape_cast %0 : vector<1x2x525xf32> to vector<2x525xf32>
    %c0_8 = arith.constant 0 : index
    %c0_9 = arith.constant 0 : index
    %4 = vector.load %arg4[%c0_8, %c0_9] : memref<224x128xbf16, #tpu.memory_space<vmem>>, vector<4x11xbf16>
    %5 = vector.extract_strided_slice %3 {offsets = [0, 0], sizes = [2, 521], strides = [1, 1]} : vector<2x525xf32> to vector<2x521xf32>
    %6 = vector.extract_strided_slice %3 {offsets = [0, 1], sizes = [2, 521], strides = [1, 1]} : vector<2x525xf32> to vector<2x521xf32>
    %7 = vector.extract_strided_slice %3 {offsets = [0, 2], sizes = [2, 521], strides = [1, 1]} : vector<2x525xf32> to vector<2x521xf32>
    %8 = vector.extract_strided_slice %3 {offsets = [0, 3], sizes = [2, 521], strides = [1, 1]} : vector<2x525xf32> to vector<2x521xf32>
    %9 = vector.extract_strided_slice %3 {offsets = [0, 4], sizes = [2, 521], strides = [1, 1]} : vector<2x525xf32> to vector<2x521xf32>
    %cst = arith.constant 1.000000e+00 : f32
    %10 = vector.broadcast %cst : f32 to vector<1x521xf32>
    %11 = tpu.concatenate %5, %6, %7, %8, %9, %10 in 0 : vector<2x521xf32>, vector<2x521xf32>, vector<2x521xf32>, vector<2x521xf32>, vector<2x521xf32>, vector<1x521xf32> -> vector<11x521xf32>
    %12 = arith.truncf %11 : vector<11x521xf32> to vector<11x521xbf16>
    %cst_10 = arith.constant dense<0.000000e+00> : vector<4x521xf32>
    %13 = tpu.matmul %4, %12, %cst_10 {dimension_numbers = #tpu.dot_dimension_numbers<[1], [0], [0], [1], [0, 0, 1, 1], [], []>} : vector<4x11xbf16>, vector<11x521xbf16>, vector<4x521xf32> -> vector<4x521xf32>
    %cst_11 = arith.constant 0.000000e+00 : f32
    %14 = vector.broadcast %cst_11 : f32 to vector<4x521xf32>
    %15 = arith.cmpf oge, %13, %14 : vector<4x521xf32>
    %cst_12 = arith.constant 0.00999999977 : f32
    %16 = vector.broadcast %cst_12 : f32 to vector<4x521xf32>
    %17 = arith.mulf %16, %13 : vector<4x521xf32>
    %18 = arith.select %15, %13, %17 : vector<4x521xi1>, vector<4x521xf32>
    %c16 = arith.constant 16 : index
    %c0_13 = arith.constant 0 : index
    %19 = vector.load %arg4[%c16, %c0_13] : memref<224x128xbf16, #tpu.memory_space<vmem>>, vector<8x21xbf16>
    %20 = vector.extract_strided_slice %18 {offsets = [0, 0], sizes = [4, 517], strides = [1, 1]} : vector<4x521xf32> to vector<4x517xf32>
    %21 = vector.extract_strided_slice %18 {offsets = [0, 1], sizes = [4, 517], strides = [1, 1]} : vector<4x521xf32> to vector<4x517xf32>
    %22 = vector.extract_strided_slice %18 {offsets = [0, 2], sizes = [4, 517], strides = [1, 1]} : vector<4x521xf32> to vector<4x517xf32>
    %23 = vector.extract_strided_slice %18 {offsets = [0, 3], sizes = [4, 517], strides = [1, 1]} : vector<4x521xf32> to vector<4x517xf32>
    %24 = vector.extract_strided_slice %18 {offsets = [0, 4], sizes = [4, 517], strides = [1, 1]} : vector<4x521xf32> to vector<4x517xf32>
    %cst_14 = arith.constant 1.000000e+00 : f32
    %25 = vector.broadcast %cst_14 : f32 to vector<1x517xf32>
    %26 = tpu.concatenate %20, %21, %22, %23, %24, %25 in 0 : vector<4x517xf32>, vector<4x517xf32>, vector<4x517xf32>, vector<4x517xf32>, vector<4x517xf32>, vector<1x517xf32> -> vector<21x517xf32>
    %27 = arith.truncf %26 : vector<21x517xf32> to vector<21x517xbf16>
    %cst_15 = arith.constant dense<0.000000e+00> : vector<8x517xf32>
    %28 = tpu.matmul %19, %27, %cst_15 {dimension_numbers = #tpu.dot_dimension_numbers<[1], [0], [0], [1], [0, 0, 1, 1], [], []>} : vector<8x21xbf16>, vector<21x517xbf16>, vector<8x517xf32> -> vector<8x517xf32>
    %cst_16 = arith.constant 0.000000e+00 : f32
    %29 = vector.broadcast %cst_16 : f32 to vector<8x517xf32>
    %30 = arith.cmpf oge, %28, %29 : vector<8x517xf32>
    %cst_17 = arith.constant 0.00999999977 : f32
    %31 = vector.broadcast %cst_17 : f32 to vector<8x517xf32>
    %32 = arith.mulf %31, %28 : vector<8x517xf32>
    %33 = arith.select %30, %28, %32 : vector<8x517xi1>, vector<8x517xf32>
    %c32 = arith.constant 32 : index
    %c0_18 = arith.constant 0 : index
    %34 = vector.load %arg4[%c32, %c0_18] : memref<224x128xbf16, #tpu.memory_space<vmem>>, vector<8x41xbf16>
    %35 = vector.extract_strided_slice %33 {offsets = [0, 0], sizes = [8, 513], strides = [1, 1]} : vector<8x517xf32> to vector<8x513xf32>
    %36 = vector.extract_strided_slice %33 {offsets = [0, 1], sizes = [8, 513], strides = [1, 1]} : vector<8x517xf32> to vector<8x513xf32>
    %37 = vector.extract_strided_slice %33 {offsets = [0, 2], sizes = [8, 513], strides = [1, 1]} : vector<8x517xf32> to vector<8x513xf32>
    %38 = vector.extract_strided_slice %33 {offsets = [0, 3], sizes = [8, 513], strides = [1, 1]} : vector<8x517xf32> to vector<8x513xf32>
    %39 = vector.extract_strided_slice %33 {offsets = [0, 4], sizes = [8, 513], strides = [1, 1]} : vector<8x517xf32> to vector<8x513xf32>
    %cst_19 = arith.constant 1.000000e+00 : f32
    %40 = vector.broadcast %cst_19 : f32 to vector<1x513xf32>
    %41 = tpu.concatenate %35, %36, %37, %38, %39, %40 in 0 : vector<8x513xf32>, vector<8x513xf32>, vector<8x513xf32>, vector<8x513xf32>, vector<8x513xf32>, vector<1x513xf32> -> vector<41x513xf32>
    %42 = arith.truncf %41 : vector<41x513xf32> to vector<41x513xbf16>
    %cst_20 = arith.constant dense<0.000000e+00> : vector<8x513xf32>
    %43 = tpu.matmul %34, %42, %cst_20 {dimension_numbers = #tpu.dot_dimension_numbers<[1], [0], [0], [1], [0, 0, 1, 1], [], []>} : vector<8x41xbf16>, vector<41x513xbf16>, vector<8x513xf32> -> vector<8x513xf32>
    %44 = arith.truncf %43 : vector<8x513xf32> to vector<8x513xbf16>
    %c0_21 = arith.constant 0 : index
    %c0_22 = arith.constant 0 : index
    %45 = vector.load %arg5[%c0_21, %c0_22] : memref<513x257xbf16, #tpu.memory_space<vmem>>, vector<513x257xbf16>
    %cst_23 = arith.constant dense<0.000000e+00> : vector<8x257xf32>
    %46 = tpu.matmul %44, %45, %cst_23 {dimension_numbers = #tpu.dot_dimension_numbers<[1], [0], [0], [1], [0, 0, 1, 1], [], []>} : vector<8x513xbf16>, vector<513x257xbf16>, vector<8x257xf32> -> vector<8x257xf32>
    %cst_24 = arith.constant 0.000000e+00 : f32
    %47 = vector.broadcast %cst_24 : f32 to vector<8x257xf32>
    %48 = arith.cmpf oge, %46, %47 : vector<8x257xf32>
    %cst_25 = arith.constant 0.00999999977 : f32
    %49 = vector.broadcast %cst_25 : f32 to vector<8x257xf32>
    %50 = arith.mulf %49, %46 : vector<8x257xf32>
    %51 = arith.select %48, %46, %50 : vector<8x257xi1>, vector<8x257xf32>
    %52 = vector.shape_cast %1 : vector<1x1x256xf32> to vector<1x256xf32>
    %53 = vector.shape_cast %52 : vector<1x256xf32> to vector<1x256xf32>
    %54 = vector.broadcast %53 : vector<1x256xf32> to vector<8x256xf32>
    %cst_26 = arith.constant 0.000000e+00 : f32
    %55 = vector.broadcast %cst_26 : f32 to vector<8x1xf32>
    %56 = tpu.concatenate %54, %55 in 1 : vector<8x256xf32>, vector<8x1xf32> -> vector<8x257xf32>
    %57 = arith.addf %51, %56 : vector<8x257xf32>
    %c48 = arith.constant 48 : index
    %c0_27 = arith.constant 0 : index
    %58 = vector.load %arg4[%c48, %c0_27] : memref<224x128xbf16, #tpu.memory_space<vmem>>, vector<8x41xbf16>
    %59 = vector.extract_strided_slice %57 {offsets = [0, 0], sizes = [8, 253], strides = [1, 1]} : vector<8x257xf32> to vector<8x253xf32>
    %60 = vector.extract_strided_slice %57 {offsets = [0, 1], sizes = [8, 253], strides = [1, 1]} : vector<8x257xf32> to vector<8x253xf32>
    %61 = vector.extract_strided_slice %57 {offsets = [0, 2], sizes = [8, 253], strides = [1, 1]} : vector<8x257xf32> to vector<8x253xf32>
    %62 = vector.extract_strided_slice %57 {offsets = [0, 3], sizes = [8, 253], strides = [1, 1]} : vector<8x257xf32> to vector<8x253xf32>
    %63 = vector.extract_strided_slice %57 {offsets = [0, 4], sizes = [8, 253], strides = [1, 1]} : vector<8x257xf32> to vector<8x253xf32>
    %cst_28 = arith.constant 1.000000e+00 : f32
    %64 = vector.broadcast %cst_28 : f32 to vector<1x253xf32>
    %65 = tpu.concatenate %59, %60, %61, %62, %63, %64 in 0 : vector<8x253xf32>, vector<8x253xf32>, vector<8x253xf32>, vector<8x253xf32>, vector<8x253xf32>, vector<1x253xf32> -> vector<41x253xf32>
    %66 = arith.truncf %65 : vector<41x253xf32> to vector<41x253xbf16>
    %cst_29 = arith.constant dense<0.000000e+00> : vector<8x253xf32>
    %67 = tpu.matmul %58, %66, %cst_29 {dimension_numbers = #tpu.dot_dimension_numbers<[1], [0], [0], [1], [0, 0, 1, 1], [], []>} : vector<8x41xbf16>, vector<41x253xbf16>, vector<8x253xf32> -> vector<8x253xf32>
    %cst_30 = arith.constant 0.000000e+00 : f32
    %68 = vector.broadcast %cst_30 : f32 to vector<8x253xf32>
    %69 = arith.cmpf oge, %67, %68 : vector<8x253xf32>
    %cst_31 = arith.constant 0.00999999977 : f32
    %70 = vector.broadcast %cst_31 : f32 to vector<8x253xf32>
    %71 = arith.mulf %70, %67 : vector<8x253xf32>
    %72 = arith.select %69, %67, %71 : vector<8x253xi1>, vector<8x253xf32>
    %c64 = arith.constant 64 : index
    %c0_32 = arith.constant 0 : index
    %73 = vector.load %arg4[%c64, %c0_32] : memref<224x128xbf16, #tpu.memory_space<vmem>>, vector<16x41xbf16>
    %74 = vector.extract_strided_slice %72 {offsets = [0, 0], sizes = [8, 249], strides = [1, 1]} : vector<8x253xf32> to vector<8x249xf32>
    %75 = vector.extract_strided_slice %72 {offsets = [0, 1], sizes = [8, 249], strides = [1, 1]} : vector<8x253xf32> to vector<8x249xf32>
    %76 = vector.extract_strided_slice %72 {offsets = [0, 2], sizes = [8, 249], strides = [1, 1]} : vector<8x253xf32> to vector<8x249xf32>
    %77 = vector.extract_strided_slice %72 {offsets = [0, 3], sizes = [8, 249], strides = [1, 1]} : vector<8x253xf32> to vector<8x249xf32>
    %78 = vector.extract_strided_slice %72 {offsets = [0, 4], sizes = [8, 249], strides = [1, 1]} : vector<8x253xf32> to vector<8x249xf32>
    %cst_33 = arith.constant 1.000000e+00 : f32
    %79 = vector.broadcast %cst_33 : f32 to vector<1x249xf32>
    %80 = tpu.concatenate %74, %75, %76, %77, %78, %79 in 0 : vector<8x249xf32>, vector<8x249xf32>, vector<8x249xf32>, vector<8x249xf32>, vector<8x249xf32>, vector<1x249xf32> -> vector<41x249xf32>
    %81 = arith.truncf %80 : vector<41x249xf32> to vector<41x249xbf16>
    %cst_34 = arith.constant dense<0.000000e+00> : vector<16x249xf32>
    %82 = tpu.matmul %73, %81, %cst_34 {dimension_numbers = #tpu.dot_dimension_numbers<[1], [0], [0], [1], [0, 0, 1, 1], [], []>} : vector<16x41xbf16>, vector<41x249xbf16>, vector<16x249xf32> -> vector<16x249xf32>
    %cst_35 = arith.constant 0.000000e+00 : f32
    %83 = vector.broadcast %cst_35 : f32 to vector<16x249xf32>
    %84 = arith.cmpf oge, %82, %83 : vector<16x249xf32>
    %cst_36 = arith.constant 0.00999999977 : f32
    %85 = vector.broadcast %cst_36 : f32 to vector<16x249xf32>
    %86 = arith.mulf %85, %82 : vector<16x249xf32>
    %87 = arith.select %84, %82, %86 : vector<16x249xi1>, vector<16x249xf32>
    %c80 = arith.constant 80 : index
    %c0_37 = arith.constant 0 : index
    %88 = vector.load %arg4[%c80, %c0_37] : memref<224x128xbf16, #tpu.memory_space<vmem>>, vector<16x81xbf16>
    %89 = vector.extract_strided_slice %87 {offsets = [0, 0], sizes = [16, 245], strides = [1, 1]} : vector<16x249xf32> to vector<16x245xf32>
    %90 = vector.extract_strided_slice %87 {offsets = [0, 1], sizes = [16, 245], strides = [1, 1]} : vector<16x249xf32> to vector<16x245xf32>
    %91 = vector.extract_strided_slice %87 {offsets = [0, 2], sizes = [16, 245], strides = [1, 1]} : vector<16x249xf32> to vector<16x245xf32>
    %92 = vector.extract_strided_slice %87 {offsets = [0, 3], sizes = [16, 245], strides = [1, 1]} : vector<16x249xf32> to vector<16x245xf32>
    %93 = vector.extract_strided_slice %87 {offsets = [0, 4], sizes = [16, 245], strides = [1, 1]} : vector<16x249xf32> to vector<16x245xf32>
    %cst_38 = arith.constant 1.000000e+00 : f32
    %94 = vector.broadcast %cst_38 : f32 to vector<1x245xf32>
    %95 = tpu.concatenate %89, %90, %91, %92, %93, %94 in 0 : vector<16x245xf32>, vector<16x245xf32>, vector<16x245xf32>, vector<16x245xf32>, vector<16x245xf32>, vector<1x245xf32> -> vector<81x245xf32>
    %96 = arith.truncf %95 : vector<81x245xf32> to vector<81x245xbf16>
    %cst_39 = arith.constant dense<0.000000e+00> : vector<16x245xf32>
    %97 = tpu.matmul %88, %96, %cst_39 {dimension_numbers = #tpu.dot_dimension_numbers<[1], [0], [0], [1], [0, 0, 1, 1], [], []>} : vector<16x81xbf16>, vector<81x245xbf16>, vector<16x245xf32> -> vector<16x245xf32>
    %98 = arith.truncf %97 : vector<16x245xf32> to vector<16x245xbf16>
    %c0_40 = arith.constant 0 : index
    %c0_41 = arith.constant 0 : index
    %99 = vector.load %arg6[%c0_40, %c0_41] : memref<245x123xbf16, #tpu.memory_space<vmem>>, vector<245x123xbf16>
    %cst_42 = arith.constant dense<0.000000e+00> : vector<16x123xf32>
    %100 = tpu.matmul %98, %99, %cst_42 {dimension_numbers = #tpu.dot_dimension_numbers<[1], [0], [0], [1], [0, 0, 1, 1], [], []>} : vector<16x245xbf16>, vector<245x123xbf16>, vector<16x123xf32> -> vector<16x123xf32>
    %cst_43 = arith.constant 0.000000e+00 : f32
    %101 = vector.broadcast %cst_43 : f32 to vector<16x123xf32>
    %102 = arith.cmpf oge, %100, %101 : vector<16x123xf32>
    %cst_44 = arith.constant 0.00999999977 : f32
    %103 = vector.broadcast %cst_44 : f32 to vector<16x123xf32>
    %104 = arith.mulf %103, %100 : vector<16x123xf32>
    %105 = arith.select %102, %100, %104 : vector<16x123xi1>, vector<16x123xf32>
    %c96 = arith.constant 96 : index
    %c0_45 = arith.constant 0 : index
    %106 = vector.load %arg4[%c96, %c0_45] : memref<224x128xbf16, #tpu.memory_space<vmem>>, vector<16x81xbf16>
    %107 = vector.extract_strided_slice %105 {offsets = [0, 0], sizes = [16, 119], strides = [1, 1]} : vector<16x123xf32> to vector<16x119xf32>
    %108 = vector.extract_strided_slice %105 {offsets = [0, 1], sizes = [16, 119], strides = [1, 1]} : vector<16x123xf32> to vector<16x119xf32>
    %109 = vector.extract_strided_slice %105 {offsets = [0, 2], sizes = [16, 119], strides = [1, 1]} : vector<16x123xf32> to vector<16x119xf32>
    %110 = vector.extract_strided_slice %105 {offsets = [0, 3], sizes = [16, 119], strides = [1, 1]} : vector<16x123xf32> to vector<16x119xf32>
    %111 = vector.extract_strided_slice %105 {offsets = [0, 4], sizes = [16, 119], strides = [1, 1]} : vector<16x123xf32> to vector<16x119xf32>
    %cst_46 = arith.constant 1.000000e+00 : f32
    %112 = vector.broadcast %cst_46 : f32 to vector<1x119xf32>
    %113 = tpu.concatenate %107, %108, %109, %110, %111, %112 in 0 : vector<16x119xf32>, vector<16x119xf32>, vector<16x119xf32>, vector<16x119xf32>, vector<16x119xf32>, vector<1x119xf32> -> vector<81x119xf32>
    %114 = arith.truncf %113 : vector<81x119xf32> to vector<81x119xbf16>
    %cst_47 = arith.constant dense<0.000000e+00> : vector<16x119xf32>
    %115 = tpu.matmul %106, %114, %cst_47 {dimension_numbers = #tpu.dot_dimension_numbers<[1], [0], [0], [1], [0, 0, 1, 1], [], []>} : vector<16x81xbf16>, vector<81x119xbf16>, vector<16x119xf32> -> vector<16x119xf32>
    %cst_48 = arith.constant 0.000000e+00 : f32
    %116 = vector.broadcast %cst_48 : f32 to vector<16x119xf32>
    %117 = arith.cmpf oge, %115, %116 : vector<16x119xf32>
    %cst_49 = arith.constant 0.00999999977 : f32
    %118 = vector.broadcast %cst_49 : f32 to vector<16x119xf32>
    %119 = arith.mulf %118, %115 : vector<16x119xf32>
    %120 = arith.select %117, %115, %119 : vector<16x119xi1>, vector<16x119xf32>
    %121 = arith.truncf %120 : vector<16x119xf32> to vector<16x119xbf16>
    %c0_50 = arith.constant 0 : index
    %c0_51 = arith.constant 0 : index
    %122 = vector.load %arg7[%c0_50, %c0_51] : memref<119x237xbf16, #tpu.memory_space<vmem>>, vector<119x237xbf16>
    %cst_52 = arith.constant dense<0.000000e+00> : vector<16x237xf32>
    %123 = tpu.matmul %121, %122, %cst_52 {dimension_numbers = #tpu.dot_dimension_numbers<[1], [0], [0], [1], [0, 0, 1, 1], [], []>} : vector<16x119xbf16>, vector<119x237xbf16>, vector<16x237xf32> -> vector<16x237xf32>
    %c112 = arith.constant 112 : index
    %c0_53 = arith.constant 0 : index
    %124 = vector.load %arg4[%c112, %c0_53] : memref<224x128xbf16, #tpu.memory_space<vmem>>, vector<16x81xbf16>
    %125 = vector.extract_strided_slice %123 {offsets = [0, 0], sizes = [16, 233], strides = [1, 1]} : vector<16x237xf32> to vector<16x233xf32>
    %126 = vector.extract_strided_slice %123 {offsets = [0, 1], sizes = [16, 233], strides = [1, 1]} : vector<16x237xf32> to vector<16x233xf32>
    %127 = vector.extract_strided_slice %123 {offsets = [0, 2], sizes = [16, 233], strides = [1, 1]} : vector<16x237xf32> to vector<16x233xf32>
    %128 = vector.extract_strided_slice %123 {offsets = [0, 3], sizes = [16, 233], strides = [1, 1]} : vector<16x237xf32> to vector<16x233xf32>
    %129 = vector.extract_strided_slice %123 {offsets = [0, 4], sizes = [16, 233], strides = [1, 1]} : vector<16x237xf32> to vector<16x233xf32>
    %cst_54 = arith.constant 1.000000e+00 : f32
    %130 = vector.broadcast %cst_54 : f32 to vector<1x233xf32>
    %131 = tpu.concatenate %125, %126, %127, %128, %129, %130 in 0 : vector<16x233xf32>, vector<16x233xf32>, vector<16x233xf32>, vector<16x233xf32>, vector<16x233xf32>, vector<1x233xf32> -> vector<81x233xf32>
    %132 = arith.truncf %131 : vector<81x233xf32> to vector<81x233xbf16>
    %cst_55 = arith.constant dense<0.000000e+00> : vector<16x233xf32>
    %133 = tpu.matmul %124, %132, %cst_55 {dimension_numbers = #tpu.dot_dimension_numbers<[1], [0], [0], [1], [0, 0, 1, 1], [], []>} : vector<16x81xbf16>, vector<81x233xbf16>, vector<16x233xf32> -> vector<16x233xf32>
    %cst_56 = arith.constant 0.000000e+00 : f32
    %134 = vector.broadcast %cst_56 : f32 to vector<16x233xf32>
    %135 = arith.cmpf oge, %133, %134 : vector<16x233xf32>
    %cst_57 = arith.constant 0.00999999977 : f32
    %136 = vector.broadcast %cst_57 : f32 to vector<16x233xf32>
    %137 = arith.mulf %136, %133 : vector<16x233xf32>
    %138 = arith.select %135, %133, %137 : vector<16x233xi1>, vector<16x233xf32>
    %c128 = arith.constant 128 : index
    %c0_58 = arith.constant 0 : index
    %139 = vector.load %arg4[%c128, %c0_58] : memref<224x128xbf16, #tpu.memory_space<vmem>>, vector<8x81xbf16>
    %140 = vector.extract_strided_slice %138 {offsets = [0, 0], sizes = [16, 229], strides = [1, 1]} : vector<16x233xf32> to vector<16x229xf32>
    %141 = vector.extract_strided_slice %138 {offsets = [0, 1], sizes = [16, 229], strides = [1, 1]} : vector<16x233xf32> to vector<16x229xf32>
    %142 = vector.extract_strided_slice %138 {offsets = [0, 2], sizes = [16, 229], strides = [1, 1]} : vector<16x233xf32> to vector<16x229xf32>
    %143 = vector.extract_strided_slice %138 {offsets = [0, 3], sizes = [16, 229], strides = [1, 1]} : vector<16x233xf32> to vector<16x229xf32>
    %144 = vector.extract_strided_slice %138 {offsets = [0, 4], sizes = [16, 229], strides = [1, 1]} : vector<16x233xf32> to vector<16x229xf32>
    %cst_59 = arith.constant 1.000000e+00 : f32
    %145 = vector.broadcast %cst_59 : f32 to vector<1x229xf32>
    %146 = tpu.concatenate %140, %141, %142, %143, %144, %145 in 0 : vector<16x229xf32>, vector<16x229xf32>, vector<16x229xf32>, vector<16x229xf32>, vector<16x229xf32>, vector<1x229xf32> -> vector<81x229xf32>
    %147 = arith.truncf %146 : vector<81x229xf32> to vector<81x229xbf16>
    %cst_60 = arith.constant dense<0.000000e+00> : vector<8x229xf32>
    %148 = tpu.matmul %139, %147, %cst_60 {dimension_numbers = #tpu.dot_dimension_numbers<[1], [0], [0], [1], [0, 0, 1, 1], [], []>} : vector<8x81xbf16>, vector<81x229xbf16>, vector<8x229xf32> -> vector<8x229xf32>
    %cst_61 = arith.constant 0.000000e+00 : f32
    %149 = vector.broadcast %cst_61 : f32 to vector<8x229xf32>
    %150 = arith.cmpf oge, %148, %149 : vector<8x229xf32>
    %cst_62 = arith.constant 0.00999999977 : f32
    %151 = vector.broadcast %cst_62 : f32 to vector<8x229xf32>
    %152 = arith.mulf %151, %148 : vector<8x229xf32>
    %153 = arith.select %150, %148, %152 : vector<8x229xi1>, vector<8x229xf32>
    %154 = vector.extract_strided_slice %72 {offsets = [0, 12], sizes = [8, 229], strides = [1, 1]} : vector<8x253xf32> to vector<8x229xf32>
    %155 = vector.extract_strided_slice %2 {offsets = [0, 1, 0], sizes = [1, 1, 1], strides = [1, 1, 1]} : vector<1x2x1xf32> to vector<1x1x1xf32>
    %156 = vector.shape_cast %155 : vector<1x1x1xf32> to vector<1x1xf32>
    %157 = vector.broadcast %156 : vector<1x1xf32> to vector<8x229xf32>
    %158 = arith.mulf %154, %157 : vector<8x229xf32>
    %159 = tpu.concatenate %158, %153 in 0 : vector<8x229xf32>, vector<8x229xf32> -> vector<16x229xf32>
    %c144 = arith.constant 144 : index
    %c0_63 = arith.constant 0 : index
    %160 = vector.load %arg4[%c144, %c0_63] : memref<224x128xbf16, #tpu.memory_space<vmem>>, vector<8x81xbf16>
    %161 = vector.extract_strided_slice %159 {offsets = [0, 0], sizes = [16, 225], strides = [1, 1]} : vector<16x229xf32> to vector<16x225xf32>
    %162 = vector.extract_strided_slice %159 {offsets = [0, 1], sizes = [16, 225], strides = [1, 1]} : vector<16x229xf32> to vector<16x225xf32>
    %163 = vector.extract_strided_slice %159 {offsets = [0, 2], sizes = [16, 225], strides = [1, 1]} : vector<16x229xf32> to vector<16x225xf32>
    %164 = vector.extract_strided_slice %159 {offsets = [0, 3], sizes = [16, 225], strides = [1, 1]} : vector<16x229xf32> to vector<16x225xf32>
    %165 = vector.extract_strided_slice %159 {offsets = [0, 4], sizes = [16, 225], strides = [1, 1]} : vector<16x229xf32> to vector<16x225xf32>
    %cst_64 = arith.constant 1.000000e+00 : f32
    %166 = vector.broadcast %cst_64 : f32 to vector<1x225xf32>
    %167 = tpu.concatenate %161, %162, %163, %164, %165, %166 in 0 : vector<16x225xf32>, vector<16x225xf32>, vector<16x225xf32>, vector<16x225xf32>, vector<16x225xf32>, vector<1x225xf32> -> vector<81x225xf32>
    %168 = arith.truncf %167 : vector<81x225xf32> to vector<81x225xbf16>
    %cst_65 = arith.constant dense<0.000000e+00> : vector<8x225xf32>
    %169 = tpu.matmul %160, %168, %cst_65 {dimension_numbers = #tpu.dot_dimension_numbers<[1], [0], [0], [1], [0, 0, 1, 1], [], []>} : vector<8x81xbf16>, vector<81x225xbf16>, vector<8x225xf32> -> vector<8x225xf32>
    %cst_66 = arith.constant 0.000000e+00 : f32
    %170 = vector.broadcast %cst_66 : f32 to vector<8x225xf32>
    %171 = arith.cmpf oge, %169, %170 : vector<8x225xf32>
    %cst_67 = arith.constant 0.00999999977 : f32
    %172 = vector.broadcast %cst_67 : f32 to vector<8x225xf32>
    %173 = arith.mulf %172, %169 : vector<8x225xf32>
    %174 = arith.select %171, %169, %173 : vector<8x225xi1>, vector<8x225xf32>
    %175 = arith.truncf %174 : vector<8x225xf32> to vector<8x225xbf16>
    %c0_68 = arith.constant 0 : index
    %c0_69 = arith.constant 0 : index
    %176 = vector.load %arg8[%c0_68, %c0_69] : memref<225x449xbf16, #tpu.memory_space<vmem>>, vector<225x449xbf16>
    %cst_70 = arith.constant dense<0.000000e+00> : vector<8x449xf32>
    %177 = tpu.matmul %175, %176, %cst_70 {dimension_numbers = #tpu.dot_dimension_numbers<[1], [0], [0], [1], [0, 0, 1, 1], [], []>} : vector<8x225xbf16>, vector<225x449xbf16>, vector<8x449xf32> -> vector<8x449xf32>
    %c160 = arith.constant 160 : index
    %c0_71 = arith.constant 0 : index
    %178 = vector.load %arg4[%c160, %c0_71] : memref<224x128xbf16, #tpu.memory_space<vmem>>, vector<8x41xbf16>
    %179 = vector.extract_strided_slice %177 {offsets = [0, 0], sizes = [8, 445], strides = [1, 1]} : vector<8x449xf32> to vector<8x445xf32>
    %180 = vector.extract_strided_slice %177 {offsets = [0, 1], sizes = [8, 445], strides = [1, 1]} : vector<8x449xf32> to vector<8x445xf32>
    %181 = vector.extract_strided_slice %177 {offsets = [0, 2], sizes = [8, 445], strides = [1, 1]} : vector<8x449xf32> to vector<8x445xf32>
    %182 = vector.extract_strided_slice %177 {offsets = [0, 3], sizes = [8, 445], strides = [1, 1]} : vector<8x449xf32> to vector<8x445xf32>
    %183 = vector.extract_strided_slice %177 {offsets = [0, 4], sizes = [8, 445], strides = [1, 1]} : vector<8x449xf32> to vector<8x445xf32>
    %cst_72 = arith.constant 1.000000e+00 : f32
    %184 = vector.broadcast %cst_72 : f32 to vector<1x445xf32>
    %185 = tpu.concatenate %179, %180, %181, %182, %183, %184 in 0 : vector<8x445xf32>, vector<8x445xf32>, vector<8x445xf32>, vector<8x445xf32>, vector<8x445xf32>, vector<1x445xf32> -> vector<41x445xf32>
    %186 = arith.truncf %185 : vector<41x445xf32> to vector<41x445xbf16>
    %cst_73 = arith.constant dense<0.000000e+00> : vector<8x445xf32>
    %187 = tpu.matmul %178, %186, %cst_73 {dimension_numbers = #tpu.dot_dimension_numbers<[1], [0], [0], [1], [0, 0, 1, 1], [], []>} : vector<8x41xbf16>, vector<41x445xbf16>, vector<8x445xf32> -> vector<8x445xf32>
    %cst_74 = arith.constant 0.000000e+00 : f32
    %188 = vector.broadcast %cst_74 : f32 to vector<8x445xf32>
    %189 = arith.cmpf oge, %187, %188 : vector<8x445xf32>
    %cst_75 = arith.constant 0.00999999977 : f32
    %190 = vector.broadcast %cst_75 : f32 to vector<8x445xf32>
    %191 = arith.mulf %190, %187 : vector<8x445xf32>
    %192 = arith.select %189, %187, %191 : vector<8x445xi1>, vector<8x445xf32>
    %c176 = arith.constant 176 : index
    %c0_76 = arith.constant 0 : index
    %193 = vector.load %arg4[%c176, %c0_76] : memref<224x128xbf16, #tpu.memory_space<vmem>>, vector<4x41xbf16>
    %194 = vector.extract_strided_slice %192 {offsets = [0, 0], sizes = [8, 441], strides = [1, 1]} : vector<8x445xf32> to vector<8x441xf32>
    %195 = vector.extract_strided_slice %192 {offsets = [0, 1], sizes = [8, 441], strides = [1, 1]} : vector<8x445xf32> to vector<8x441xf32>
    %196 = vector.extract_strided_slice %192 {offsets = [0, 2], sizes = [8, 441], strides = [1, 1]} : vector<8x445xf32> to vector<8x441xf32>
    %197 = vector.extract_strided_slice %192 {offsets = [0, 3], sizes = [8, 441], strides = [1, 1]} : vector<8x445xf32> to vector<8x441xf32>
    %198 = vector.extract_strided_slice %192 {offsets = [0, 4], sizes = [8, 441], strides = [1, 1]} : vector<8x445xf32> to vector<8x441xf32>
    %cst_77 = arith.constant 1.000000e+00 : f32
    %199 = vector.broadcast %cst_77 : f32 to vector<1x441xf32>
    %200 = tpu.concatenate %194, %195, %196, %197, %198, %199 in 0 : vector<8x441xf32>, vector<8x441xf32>, vector<8x441xf32>, vector<8x441xf32>, vector<8x441xf32>, vector<1x441xf32> -> vector<41x441xf32>
    %201 = arith.truncf %200 : vector<41x441xf32> to vector<41x441xbf16>
    %cst_78 = arith.constant dense<0.000000e+00> : vector<4x441xf32>
    %202 = tpu.matmul %193, %201, %cst_78 {dimension_numbers = #tpu.dot_dimension_numbers<[1], [0], [0], [1], [0, 0, 1, 1], [], []>} : vector<4x41xbf16>, vector<41x441xbf16>, vector<4x441xf32> -> vector<4x441xf32>
    %cst_79 = arith.constant 0.000000e+00 : f32
    %203 = vector.broadcast %cst_79 : f32 to vector<4x441xf32>
    %204 = arith.cmpf oge, %202, %203 : vector<4x441xf32>
    %cst_80 = arith.constant 0.00999999977 : f32
    %205 = vector.broadcast %cst_80 : f32 to vector<4x441xf32>
    %206 = arith.mulf %205, %202 : vector<4x441xf32>
    %207 = arith.select %204, %202, %206 : vector<4x441xi1>, vector<4x441xf32>
    %208 = vector.extract_strided_slice %18 {offsets = [0, 40], sizes = [4, 441], strides = [1, 1]} : vector<4x521xf32> to vector<4x441xf32>
    %209 = vector.extract_strided_slice %2 {offsets = [0, 0, 0], sizes = [1, 1, 1], strides = [1, 1, 1]} : vector<1x2x1xf32> to vector<1x1x1xf32>
    %210 = vector.shape_cast %209 : vector<1x1x1xf32> to vector<1x1xf32>
    %211 = vector.broadcast %210 : vector<1x1xf32> to vector<4x441xf32>
    %212 = arith.mulf %208, %211 : vector<4x441xf32>
    %213 = tpu.concatenate %212, %207 in 0 : vector<4x441xf32>, vector<4x441xf32> -> vector<8x441xf32>
    %c192 = arith.constant 192 : index
    %c0_81 = arith.constant 0 : index
    %214 = vector.load %arg4[%c192, %c0_81] : memref<224x128xbf16, #tpu.memory_space<vmem>>, vector<4x41xbf16>
    %215 = vector.extract_strided_slice %213 {offsets = [0, 0], sizes = [8, 437], strides = [1, 1]} : vector<8x441xf32> to vector<8x437xf32>
    %216 = vector.extract_strided_slice %213 {offsets = [0, 1], sizes = [8, 437], strides = [1, 1]} : vector<8x441xf32> to vector<8x437xf32>
    %217 = vector.extract_strided_slice %213 {offsets = [0, 2], sizes = [8, 437], strides = [1, 1]} : vector<8x441xf32> to vector<8x437xf32>
    %218 = vector.extract_strided_slice %213 {offsets = [0, 3], sizes = [8, 437], strides = [1, 1]} : vector<8x441xf32> to vector<8x437xf32>
    %219 = vector.extract_strided_slice %213 {offsets = [0, 4], sizes = [8, 437], strides = [1, 1]} : vector<8x441xf32> to vector<8x437xf32>
    %cst_82 = arith.constant 1.000000e+00 : f32
    %220 = vector.broadcast %cst_82 : f32 to vector<1x437xf32>
    %221 = tpu.concatenate %215, %216, %217, %218, %219, %220 in 0 : vector<8x437xf32>, vector<8x437xf32>, vector<8x437xf32>, vector<8x437xf32>, vector<8x437xf32>, vector<1x437xf32> -> vector<41x437xf32>
    %222 = arith.truncf %221 : vector<41x437xf32> to vector<41x437xbf16>
    %cst_83 = arith.constant dense<0.000000e+00> : vector<4x437xf32>
    %223 = tpu.matmul %214, %222, %cst_83 {dimension_numbers = #tpu.dot_dimension_numbers<[1], [0], [0], [1], [0, 0, 1, 1], [], []>} : vector<4x41xbf16>, vector<41x437xbf16>, vector<4x437xf32> -> vector<4x437xf32>
    %cst_84 = arith.constant 0.000000e+00 : f32
    %224 = vector.broadcast %cst_84 : f32 to vector<4x437xf32>
    %225 = arith.cmpf oge, %223, %224 : vector<4x437xf32>
    %cst_85 = arith.constant 0.00999999977 : f32
    %226 = vector.broadcast %cst_85 : f32 to vector<4x437xf32>
    %227 = arith.mulf %226, %223 : vector<4x437xf32>
    %228 = arith.select %225, %223, %227 : vector<4x437xi1>, vector<4x437xf32>
    %c208 = arith.constant 208 : index
    %c0_86 = arith.constant 0 : index
    %229 = vector.load %arg4[%c208, %c0_86] : memref<224x128xbf16, #tpu.memory_space<vmem>>, vector<4x5xbf16>
    %cst_87 = arith.constant 1.000000e+00 : f32
    %230 = vector.broadcast %cst_87 : f32 to vector<1x437xf32>
    %231 = tpu.concatenate %228, %230 in 0 : vector<4x437xf32>, vector<1x437xf32> -> vector<5x437xf32>
    %232 = arith.truncf %231 : vector<5x437xf32> to vector<5x437xbf16>
    %cst_88 = arith.constant dense<0.000000e+00> : vector<4x437xf32>
    %233 = tpu.matmul %229, %232, %cst_88 {dimension_numbers = #tpu.dot_dimension_numbers<[1], [0], [0], [1], [0, 0, 1, 1], [], []>} : vector<4x5xbf16>, vector<5x437xbf16>, vector<4x437xf32> -> vector<4x437xf32>
    %cst_89 = arith.constant -1.000000e+00 : f32
    %cst_90 = arith.constant 1.000000e+00 : f32
    %234 = vector.broadcast %cst_89 : f32 to vector<4x437xf32>
    %235 = arith.maximumf %234, %233 : vector<4x437xf32>
    %236 = vector.broadcast %cst_90 : f32 to vector<4x437xf32>
    %237 = arith.minimumf %236, %235 : vector<4x437xf32>
    %cst_91 = arith.constant 0.000000e+00 : f32
    %238 = vector.broadcast %cst_91 : f32 to vector<4x75xf32>
    %239 = tpu.concatenate %237, %238 in 1 : vector<4x437xf32>, vector<4x75xf32> -> vector<4x512xf32>
    %cst_92 = arith.constant 0.000000e+00 : f32
    %240 = vector.broadcast %cst_92 : f32 to vector<4x512xf32>
    %241 = tpu.concatenate %239, %240 in 0 : vector<4x512xf32>, vector<4x512xf32> -> vector<8x512xf32>
    %c0_93 = arith.constant 0 : index
    %c0_94 = arith.constant 0 : index
    %c0_95 = arith.constant 0 : index
    %242 = vector.load %arg9[%c0_93, %c0_94, %c0_95] : memref<1x8x512xf32, #tpu.memory_space<vmem>>, vector<1x8x512xf32>
    %243 = vector.shape_cast %242 : vector<1x8x512xf32> to vector<8x512xf32>
    %244 = vector.shape_cast %241 : vector<8x512xf32> to vector<1x8x512xf32>
    tpu.vector_store %arg9[%c0_93, %c0_94, %c0_95], %244 {strides = array<i32>} : memref<1x8x512xf32, #tpu.memory_space<vmem>>, vector<1x8x512xf32>,
    return
  }
  func.func @transform_0(%arg0: i32) -> (i32, i32, i32) {
    %c0_i32 = arith.constant 0 : i32
    %c0_i32_0 = arith.constant 0 : i32
    %c0_i32_1 = arith.constant 0 : i32
    return %arg0, %c0_i32, %c0_i32_0 : i32, i32, i32
  }
  func.func @transform_1(%arg0: i32) -> (i32, i32, i32) {
    %c0_i32 = arith.constant 0 : i32
    %c0_i32_0 = arith.constant 0 : i32
    %c0_i32_1 = arith.constant 0 : i32
    return %arg0, %c0_i32, %c0_i32_0 : i32, i32, i32
  }
  func.func @transform_2(%arg0: i32) -> (i32, i32, i32) {
    %c0_i32 = arith.constant 0 : i32
    %c0_i32_0 = arith.constant 0 : i32
    %c0_i32_1 = arith.constant 0 : i32
    return %arg0, %c0_i32, %c0_i32_0 : i32, i32, i32
  }
  func.func @transform_3(%arg0: i32) -> (i32, i32) {
    %c0_i32 = arith.constant 0 : i32
    %c0_i32_0 = arith.constant 0 : i32
    %c0_i32_1 = arith.constant 0 : i32
    return %c0_i32, %c0_i32_0 : i32, i32
  }
  func.func @transform_4(%arg0: i32) -> (i32, i32) {
    %c0_i32 = arith.constant 0 : i32
    %c0_i32_0 = arith.constant 0 : i32
    %c0_i32_1 = arith.constant 0 : i32
    return %c0_i32, %c0_i32_0 : i32, i32
  }
  func.func @transform_5(%arg0: i32) -> (i32, i32) {
    %c0_i32 = arith.constant 0 : i32
    %c0_i32_0 = arith.constant 0 : i32
    %c0_i32_1 = arith.constant 0 : i32
    return %c0_i32, %c0_i32_0 : i32, i32
  }
  func.func @transform_6(%arg0: i32) -> (i32, i32) {
    %c0_i32 = arith.constant 0 : i32
    %c0_i32_0 = arith.constant 0 : i32
    %c0_i32_1 = arith.constant 0 : i32
    return %c0_i32, %c0_i32_0 : i32, i32
  }
  func.func @transform_7(%arg0: i32) -> (i32, i32) {
    %c0_i32 = arith.constant 0 : i32
    %c0_i32_0 = arith.constant 0 : i32
    %c0_i32_1 = arith.constant 0 : i32
    return %c0_i32, %c0_i32_0 : i32, i32
  }
  func.func @transform_8(%arg0: i32) -> (i32, i32, i32) {
    %c0_i32 = arith.constant 0 : i32
    %c0_i32_0 = arith.constant 0 : i32
    %c0_i32_1 = arith.constant 0 : i32
    return %arg0, %c0_i32, %c0_i32_0 : i32, i32, i32
  }
}

</mosaic_0001>

<bundles_post_ra>
// kernel: forward.1
= control target key start
LH: loop header
LB: loop body
LE: loop exit
PB: predicated region body
PF: predicated region fallthrough
CT: control target
= control target key end

     0   :  { %s5819_s27 = smov 0   ;;  %s7039_s0 = inlined_call_operand.vmem [shape: f32[2,2,525], index: 0, kind: input, shape index: {}]   ;;  %s7040_s1 = inlined_call_operand.vmem [shape: f32[2,1,256], index: 1, kind: input, shape index: {}]   ;;  %s7041_s2 = inlined_call_operand.vmem [shape: f32[2,2,1], index: 2, kind: input, shape index: {}]   ;;  %s7042_s3 = inlined_call_operand.vmem [shape: bf16[224,128], index: 3, kind: input, shape index: {}]   ;;  %s7043_s4 = inlined_call_operand.vmem [shape: bf16[513,257], index: 4, kind: input, shape index: {}]   ;;  %s7044_s5 = inlined_call_operand.vmem [shape: bf16[245,123], index: 5, kind: input, shape index: {}]   ;;  %s7045_s6 = inlined_call_operand.vmem [shape: bf16[119,237], index: 6, kind: input, shape index: {}]   ;;  %s7046_s7 = inlined_call_operand.vmem [shape: bf16[225,449], index: 7, kind: input, shape index: {}]   ;;  %s7047_s8 = inlined_call_operand.vmem [shape: f32[2,8,512], index: 8, kind: output, shape index: {}]  }
   0x1 LB: > { %s4603_s28 = sadd.s32 4294967295, %s5757_s27   ;;  %p4607_p0 = scmp.ge.s32.totalorder %s5757_s27, 1  ;;  %s5757_s27 = sphi %s5819_s27, %s18_s27  }
   0x2   : > { %p280_p1 = scmp.lt.s32.totalorder %s5757_s27, 3 }
   0x4   : > { %p281_p2 = pnand %p4607_p0, %p280_p1 }
   0x5   : > { %p322_p3 = scmp.lt.s32.totalorder (!%p281_p2), %s4603_s28, 1  ;;  %v352_v0 = vlaneseq (!%p281_p2)  ;;  %v5759_v1 = vmov (!%p281_p2), 1983009808   ;;  %s5760_s11 = smov (!%p281_p2), 124   ;;  %v5764_v29 = vmov (!%p281_p2), 0   ;;  %vm511_vm0 = vcmask (!%p281_p2), 1044480  }
   0x6   : > { %284 = sbr.rel (%p281_p2) target bundleno = 6322 (0x18b2), region = 52  ;;  %v350_v2 = vunpack.c.l.s4 (!%p281_p2), %v5759_v1  ;;  %s5761_s12 = smov (!%p281_p2), 127   ;;  %561 = vmatprep.mubr.bf16.mxu0 (!%p281_p2), %v5764_v29  ;;  %602 = vmatprep.mubr.bf16.mxu1 (!%p281_p2), %v5764_v29  ;;  %vm404_vm1 = vcmask (!%p281_p2), 1039360   ;;  %vm427_vm2 = vcmask (!%p281_p2), 1031168   ;;  %vm479_vm3 = vcmask (!%p281_p2), 1041408  }
   0x7   : > { %v353_v3 = vshrl.u32 (!%p281_p2), %v352_v0, 7  ;;  %s5762_s13 = smov (!%p281_p2), 126   ;;  %s5763_s14 = smov (!%p281_p2), 125   ;;  %vm449_vm4 = vcmask (!%p281_p2), 1022976   ;;  %vm469_vm5 = vcmask (!%p281_p2), 1014784   ;;  %vm485_vm6 = vcmask (!%p281_p2), 1043456  }
   0x8   : > { %v351_v4 = vunpack.c.0.s8 (!%p281_p2), %v350_v2  ;;  %v5765_v47 = vmov (!%p281_p2), 65535   ;;  %vm491_vm7 = vcmask (!%p281_p2), 1045504   ;;  %vm507_vm8 = vcmask (!%p281_p2), 89088   ;;  %s5770_s30 = smov (!%p281_p2), 116   ;;  %s5772_s23 = smov (!%p281_p2), 40  }
   0x9   : > { %v2103_v33 = vsub.s32 (!%p281_p2), 0, %v353_v3  ;;  %v2107_v34 = vsub.s32 (!%p281_p2), 1, %v353_v3  ;;  %v512_v48 = vsel (!%p281_p2), %vm511_vm0, 4294967295, %v5765_v47  ;;  %vm5767_vm9 = vmmov (!%p281_p2), 0  }
   0xa   : > { %v354_v5 = vsub.s32 (!%p281_p2), %v351_v4, %v353_v3  ;;  %v5899_v60 = vsel (!%p281_p2), %vm491_vm7, %v512_v48, 0  ;;  %vm782_vm15 = vcmask (!%p281_p2), 1042432  }
   0xd   : > { %s7049_s28 = smov (!%p322_p3, %s4603_s28), 1 }
   0xe   : > { %s4983_s29 = smul.u32 10, %s7049_s28  ;;  %s4609_s15 = sshll.u32 %s7049_s28, 1 }
   0xf   : > { %s330_s18 = scalar_lea.vmem %s7040_s1, %s4609_s15  ;;  %s334_s21 = scalar_lea.vmem %s7041_s2, %s4609_s15 }
  0x10   : > { %s326_s10 = scalar_lea.vmem %s7039_s0, %s4983_s29  ;;  %v343_v35 = vld [vmem:[%s330_s18] sm:$0x3]  ;;  %s5769_s29 = smov 12  }
  0x11   : > { %v341_v6 = vld [vmem:[%s326_s10] sm:$0xff]  ;;  %v342_v16 = vld [vmem:[%s326_s10 + $0x8] sm:$0x3]  ;;  %v5884_v37 = vrot.slane %v343_v35, %v2103_v33  ;;  %v5886_v38 = vrot.slane %v343_v35, %v2107_v34  ;;  %s4844_s26 = sshll.u32 %s7049_s28, 5 }
  0x12   : > { %v5833_v7 = vrot.slane %v341_v6, %v354_v5  ;;  %v377_v8 = vcombine.low %v341_v6, %v341_v6  ;;  %v348_v9 = vcombine.high %v341_v6, %v341_v6  ;;  %v5853_v21 = vrot.slane %v342_v16, %v354_v5  ;;  %v344_v36 = vld [vmem:[%s334_s21] sm:$0x3]  ;;  %s339_s10 = scalar_lea.vmem %s7047_s8, %s4844_s26 }
  0x13   : > { %v386_v25 = vcombine.low %v342_v16, %v342_v16  ;;  %v3117_v39 = vrot.slane %v344_v36, 1 }
  0x14   : > { %459 = vrot.lane.b32.xlu1 %v5833_v7, %s5760_s11  ;;  %v5839_v10 = vcombine.high %v5833_v7, %v5833_v7  ;;  %v384_v11 = vrot.slane %v377_v8, %v354_v5  ;;  %v5841_v12 = vrot.slane %v348_v9, %v354_v5  ;;  %v414_v13 = vcombine.low %v5833_v7, %v5833_v7 }
  0x15   : > { %v416_v27 = vcombine.low %v5853_v21, %v5853_v21  ;;  %v393_v30 = vrot.slane %v386_v25, %v354_v5  ;;  %4984 = vpush %v3117_v39 }
  0x16   : > { %v5011_v14 = vpack.i.bf16 %v5839_v10, %v384_v11  ;;  %v5016_v15 = vpack.i.bf16 %v5841_v12, %v414_v13  ;;  %v5021_v17 = vpack.i.bf16 %v414_v13, %v384_v11  ;;  %v5026_v18 = vpack.i.bf16 %v5841_v12, %v5839_v10  ;;  %4986 = vpush %v344_v36 }
  0x17   : > { %v385_v19 = vcombine.high %v384_v11, %v384_v11  ;;  %v415_v20 = vcombine.low %v5841_v12, %v5841_v12  ;;  %v437_v24 = vcombine.low %v384_v11, %v384_v11  ;;  %v5866_v28 = vcombine.high %v5841_v12, %v5841_v12 }
  0x18   : > { %5012 = vrot.lane.b32.xlu0 %v5011_v14, %s5761_s12  ;;  %5017 = vrot.lane.b32.xlu1 %v5016_v15, %s5762_s13  ;;  %v438_v32 = vcombine.low %v393_v30, %v393_v30 }
  0x19   : > { %v5031_v22 = vpack.i.bf16 %v5833_v7, %v385_v19  ;;  %v5036_v23 = vpack.i.bf16 %v415_v20, %v5833_v7  ;;  %v5041_v26 = vpack.i.bf16 %v5833_v7, %v437_v24  ;;  %v5046_v31 = vpack.i.bf16 %v5853_v21, %v5866_v28 }
  0x1c   : > { %5022 = vrot.lane.b32.xlu0 %v5021_v17, %s5763_s14  ;;  %5027 = vrot.lane.b32.xlu1 %v5026_v18, %s5760_s11 }
  0x20   : > { %5032 = vrot.lane.b32.xlu0 %v5031_v22, %s5761_s12  ;;  %5037 = vrot.lane.b32.xlu1 %v5036_v23, %s5762_s13 }
  0x24   : > { %5042 = vrot.lane.b32.xlu0 %v5041_v26, %s5763_s14  ;;  %425 = vrot.lane.b32.xlu1 %v416_v27, %s5762_s13 }
  0x28   : > { %402 = vrot.lane.b32.xlu0 %v393_v30, %s5761_s12  ;;  %5047 = vrot.lane.b32.xlu1 %v5046_v31, %s5760_s11 }
  0x2c   : > { %447 = vrot.lane.b32.xlu0 %v438_v32, %s5763_s14 }
  0x46   : > { %s4985_s24 = spop %4984 }
  0x86   : > { %v460_v40 = vpop.permute.xlu1 %459 }
  0x8a   : > { %v5013_v41 = vpop.permute.xlu0 %5012  ;;  %v5018_v42 = vpop.permute.xlu1 %5017 }
  0x8b   : > { %v5014_v49 = vunpack.i.l.bf16 %v5013_v41  ;;  %v5015_v58 = vunpack.i.h.bf16 %v5013_v41  ;;  %v5019_v59 = vunpack.i.l.bf16 %v5018_v42  ;;  %v5020_v14 = vunpack.i.h.bf16 %v5018_v42 }
  0x8e   : > { %v5888_v43 = vpop.permute.xlu0 %5022  ;;  %v5890_v44 = vpop.permute.xlu1 %5027 }
  0x8f   : > { %v5030_v45 = vunpack.i.h.bf16 %v5890_v44  ;;  %v5029_v46 = vunpack.i.l.bf16 %v5890_v44  ;;  %v5025_v50 = vunpack.i.h.bf16 %v5888_v43  ;;  %v5024_v51 = vunpack.i.l.bf16 %v5888_v43 }
  0x91   : > { %v471_v63 = vsel %vm469_vm5, %v5029_v46, %v5030_v45  ;;  %v470_v0 = vsel %vm469_vm5, %v460_v40, %v5029_v46  ;;  %v451_v11 = vsel %vm449_vm4, %v5024_v51, %v5025_v50 }
  0x92   : > { %v5033_v52 = vpop.permute.xlu0 %5032  ;;  %v5038_v53 = vpop.permute.xlu1 %5037  ;;  %v498_v17 = vsel %vm479_vm3, %v471_v63, 1.0 }
  0x93   : > { %v5035_v54 = vunpack.i.h.bf16 %v5033_v52  ;;  %v5034_v55 = vunpack.i.l.bf16 %v5033_v52  ;;  %v5040_v56 = vunpack.i.h.bf16 %v5038_v53  ;;  %v5039_v57 = vunpack.i.l.bf16 %v5038_v53 }
  0x95   : > { %v405_v61 = vsel %vm404_vm1, %v5014_v49, %v5034_v55  ;;  %v406_v62 = vsel %vm404_vm1, %v5034_v55, %v5035_v54  ;;  %v428_v1 = vsel %vm427_vm2, %v5019_v59, %v5039_v57  ;;  %v429_v4 = vsel %vm427_vm2, %v5039_v57, %v5040_v56 }
  0x96   : > { %v5043_v2 = vpop.permute.xlu0 %5042  ;;  %v426_v3 = vpop.permute.xlu1 %425  ;;  %v481_v5 = vsel %vm479_vm3, %v5839_v10, %v406_v62  ;;  %v480_v6 = vsel %vm479_vm3, %v5833_v7, %v405_v61  ;;  %v407_v8 = vsel %vm404_vm1, %v5035_v54, %v5015_v58  ;;  %v497_v7 = vsel %vm479_vm3, %v470_v0, 1.0 }
  0x97   : > { %v5044_v9 = vunpack.i.l.bf16 %v5043_v2  ;;  %v487_v13 = vsel %vm485_vm6, %v481_v5, %v429_v4  ;;  %v5045_v15 = vunpack.i.h.bf16 %v5043_v2  ;;  %v486_v10 = vsel %vm485_vm6, %v480_v6, %v428_v1 }
  0x98   : > { %v493_v16 = vsel %vm491_vm7, %v487_v13, %v451_v11  ;;  %v430_v20 = vsel %vm427_vm2, %v5040_v56, %v5020_v14  ;;  %v431_v22 = vsel %vm427_vm2, %v5020_v14, %v426_v3  ;;  %v482_v26 = vsel %vm479_vm3, %v5841_v12, %v407_v8 }
  0x99   : > { %v503_v18 = vpack.c.bf16 %v498_v17, %v493_v16  ;;  %v450_v19 = vsel %vm449_vm4, %v5044_v9, %v5024_v51  ;;  %v452_v36 = vsel %vm449_vm4, %v5025_v50, %v5045_v15  ;;  %v488_v41 = vsel %vm485_vm6, %v482_v26, %v430_v20  ;;  %v345_v51 = vld [vmem:[%s7042_s3] sm:$0x3] }
  0x9a   : > { %v403_v23 = vpop.permute.xlu0 %402  ;;  %v5048_v24 = vpop.permute.xlu1 %5047  ;;  %v492_v25 = vsel %vm491_vm7, %v486_v10, %v450_v19  ;;  %v5766_v54 = vmov 0.0  }
  0x9b   : > { %v408_v27 = vsel %vm404_vm1, %v5015_v58, %v403_v23  ;;  %v484_v30 = vsel %vm479_vm3, %v5853_v21, %v403_v23  ;;  %v5050_v31 = vunpack.i.h.bf16 %v5048_v24  ;;  %v5049_v32 = vunpack.i.l.bf16 %v5048_v24 }
  0x9c   : > { %v483_v33 = vsel %vm479_vm3, %v5866_v28, %v408_v27  ;;  %v518_v34 = vand.u32 %v5899_v60, %v503_v18  ;;  %v502_v35 = vpack.c.bf16 %v497_v7, %v492_v25  ;;  %v490_v42 = vsel %vm485_vm6, %v484_v30, %v426_v3 }
  0x9d   : > { %v501_v39 = vsel %vm479_vm3, %v5050_v31, 1.0  ;;  %v473_v40 = vsel %vm469_vm5, %v5049_v32, %v5050_v31  ;;  %v472_v12 = vsel %vm469_vm5, %v5030_v45, %v5049_v32  ;;  %v489_v49 = vsel %vm485_vm6, %v483_v33, %v431_v22 }
  0x9e   : > { %529 = vmatprep.subr.bf16.mxu0 %v518_v34  ;;  %v448_v21 = vpop.permute.xlu0 %447  ;;  %v515_v43 = vand.u32 %v5899_v60, %v502_v35  ;;  %v500_v28 = vsel %vm479_vm3, %v473_v40, 1.0  ;;  %v499_v44 = vsel %vm479_vm3, %v472_v12, 1.0  ;;  %v494_v45 = vsel %vm491_vm7, %v488_v41, %v452_v36 }
  0x9f   : > { %v453_v46 = vsel %vm449_vm4, %v5045_v15, %v448_v21  ;;  %v496_v48 = vsel %vm491_vm7, %v490_v42, %v448_v21  ;;  %v504_v53 = vpack.c.bf16 %v499_v44, %v494_v45 }
  0xa0   : > { %v506_v50 = vpack.c.bf16 %v501_v39, %v496_v48  ;;  %530 = vmatpush1.bf16.msra.mxu0 %v515_v43  ;;  %v495_v52 = vsel %vm491_vm7, %v489_v49, %v453_v46 }
  0xa1   : > { %4929 = vmatprep.subr.bf16.mxu0 %v5766_v54  ;;  %v505_v55 = vpack.c.bf16 %v500_v28, %v495_v52  ;;  %v521_v58 = vand.u32 %v5899_v60, %v504_v53  ;;  %v783_v52 = vsel %vm479_vm3, 4294967295, %v5765_v47  ;;  %vm778_vm3 = vcmask 171008  }
  0xa2   : > { %v527_v56 = vand.u32 %v5899_v60, %v506_v50 }
  0xa3   : > { %4613 = vmatmul.mubr.msk.bf16.vlgmr.msra.gmra.mrb[0].mxu0 %vm507_vm8, %v345_v51  ;;  %v524_v57 = vand.u32 %v5899_v60, %v505_v55 }
  0xa4   : > { %4930 = vmatpush3.bf16.msra.mxu0 %v527_v56  ;;  %4931 = vmatprep.mubr.msk.bf16.mxu0 %vm5767_vm9, %v5766_v54 }
  0xa5   : > { %570 = vmatprep.subr.bf16.mxu1 %v524_v57 }
  0xa6   : > { %571 = vmatpush1.bf16.msra.mxu1 %v521_v58 }
  0xa9   : > { %4614 = vmatmul.mubr.msk.bf16.vlgmr.msra.gmra.mrb[0].mxu1 %vm507_vm8, %v345_v51 }
  0xaa   : > { %832 = vmatprep.mubr.bf16.mxu1 %v5764_v29 }
  0xab   : > { %4932 = vmatmul.mubr.msk.bf16.vlgmr.msra.gmra.mrb[4].mxu0 %vm507_vm8, %v345_v51 }
  0xac   : > { %873 = vmatprep.mubr.bf16.mxu0 %v5764_v29 }
 0x176   : > { %v563_v59 = vpop.f32.mrb[0].mxu0 }
 0x177   : > { %v565_v61 = vpop.f32.mrb[1].mxu0  ;;  %v656_v60 = vmul.f32 0.01, %v563_v59  ;;  %vm651_vm11 = vcmp.ge.f32.partialorder %v563_v59, 0.0 }
 0x178   : > { %v567_v62 = vpop.f32.mrb[2].mxu0  ;;  %v657_v63 = vmul.f32 0.01, %v565_v61  ;;  %vm652_vm10 = vcmp.ge.f32.partialorder %v565_v61, 0.0 }
 0x179   : > { %v568_v0 = vpop.f32.mrb[3].mxu0  ;;  %v5962_v14 = vsel %vm651_vm11, %v563_v59, %v656_v60 }
 0x17a   : > { %v5958_v2 = vsel %vm652_vm10, %v565_v61, %v657_v63  ;;  %v672_v25 = vrot.slane %v5962_v14, 4  ;;  %v6003_v61 = vsel %vm782_vm15, %v783_v52, 0 }
 0x17b   : > { %v673_v16 = vrot.slane %v5958_v2, 4 }
 0x17c   : > { %v604_v1 = vpop.f32.mrb[0].mxu1 }
 0x17d   : > { %vm653_vm12 = vcmp.ge.f32.partialorder %v604_v1, 0.0  ;;  %v658_v3 = vmul.f32 0.01, %v604_v1  ;;  %v606_v4 = vpop.f32.mrb[1].mxu1 }
 0x17e   : > { %vm654_vm13 = vcmp.ge.f32.partialorder %v606_v4, 0.0  ;;  %v659_v5 = vmul.f32 0.01, %v606_v4  ;;  %v608_v6 = vpop.f32.mrb[2].mxu1  ;;  %v645_v8 = vpop.f32.mrb[4].mxu0 }
 0x17f   : > { %v5960_v9 = vsel %vm653_vm12, %v604_v1, %v658_v3  ;;  %v609_v11 = vpop.f32.mrb[3].mxu1  ;;  %v4933_v13 = vpop.f32.mrb[5].mxu0  ;;  %v660_v22 = vmul.f32 0.01, %v645_v8  ;;  %vm655_vm14 = vcmp.ge.f32.partialorder %v645_v8, 0.0 }
 0x180   : > { %v5964_v15 = vsel %vm654_vm13, %v606_v4, %v659_v5  ;;  %v674_v17 = vrot.slane %v5960_v9, 4  ;;  %v648_v18 = vpop.f32.mrb[6].mxu0  ;;  %v5056_v20 = vpack.i.bf16 %v5960_v9, %v5958_v2  ;;  %vm1836_vm13 = vcmask 1040384  }
 0x181   : > { %v5051_v19 = vpack.i.bf16 %v5964_v15, %v5962_v14  ;;  %v4934_v10 = vpop.f32.mrb[7].mxu0  ;;  %v675_v23 = vrot.slane %v5964_v15, 4  ;;  %v5978_v24 = vsel %vm655_vm14, %v645_v8, %v660_v22  ;;  %vm1832_vm14 = vcmask 7168  }
 0x182   : > { %v5076_v7 = vpack.i.bf16 %v674_v17, %v673_v16  ;;  %v676_v27 = vrot.slane %v5978_v24, 4 }
 0x183   : > { %5052 = vrot.lane.b32.xlu1 %v5051_v19, %s5762_s13  ;;  %v5066_v26 = vpack.i.bf16 %v675_v23, %v672_v25 }
 0x184   : > { %5077 = vrot.lane.b32.xlu0 %v5076_v7, %s5761_s12 }
 0x187   : > { %5057 = vrot.lane.b32.xlu1 %v5056_v20, %s5762_s13 }
 0x188   : > { %5082 = vrot.lane.b32.xlu0 %v5076_v7, %s5763_s14 }
 0x18b   : > { %5062 = vrot.lane.b32.xlu1 %v5056_v20, %s5760_s11 }
 0x18c   : > { %704 = vrot.lane.b32.xlu0 %v5978_v24, %s5762_s13 }
 0x18f   : > { %5067 = vrot.lane.b32.xlu1 %v5066_v26, %s5761_s12 }
 0x190   : > { %685 = vrot.lane.b32.xlu0 %v676_v27, %s5761_s12 }
 0x193   : > { %5072 = vrot.lane.b32.xlu1 %v5066_v26, %s5763_s14 }
 0x194   : > { %723 = vrot.lane.b32.xlu0 %v676_v27, %s5763_s14 }
 0x197   : > { %742 = vrot.lane.b32.xlu1 %v5978_v24, %s5760_s11 }
 0x198   : > { %5087 = vrot.lane.b32.xlu0 %v5051_v19, %s5760_s11 }
 0x1f5   : > { %v5053_v30 = vpop.permute.xlu1 %5052 }
 0x1f6   : > { %v5078_v31 = vpop.permute.xlu0 %5077  ;;  %v5054_v57 = vunpack.i.l.bf16 %v5053_v30  ;;  %v5055_v62 = vunpack.i.h.bf16 %v5053_v30 }
 0x1f7   : > { %v5080_v32 = vunpack.i.h.bf16 %v5078_v31  ;;  %v5079_v33 = vunpack.i.l.bf16 %v5078_v31 }
 0x1f9   : > { %v5058_v34 = vpop.permute.xlu1 %5057  ;;  %v688_v41 = vsel %vm404_vm1, %v5079_v33, %v5080_v32 }
 0x1fa   : > { %v5060_v35 = vunpack.i.h.bf16 %v5058_v34  ;;  %v5059_v36 = vunpack.i.l.bf16 %v5058_v34  ;;  %v5083_v39 = vpop.permute.xlu0 %5082  ;;  %v754_v48 = vsel %vm485_vm6, %v5958_v2, %v688_v41 }
 0x1fb   : > { %v5085_v40 = vunpack.i.h.bf16 %v5083_v39  ;;  %v5084_v12 = vunpack.i.l.bf16 %v5083_v39 }
 0x1fc   : > { %v707_v21 = vsel %vm427_vm2, %v5059_v36, %v5060_v35  ;;  %v706_v60 = vsel %vm427_vm2, %v5054_v57, %v5059_v36  ;;  %v708_v6 = vsel %vm427_vm2, %v5060_v35, %v5055_v62 }
 0x1fd   : > { %v5063_v42 = vpop.permute.xlu1 %5062  ;;  %v726_v43 = vsel %vm449_vm4, %v5084_v12, %v5085_v40 }
 0x1fe   : > { %v5065_v28 = vunpack.i.h.bf16 %v5063_v42  ;;  %v5064_v44 = vunpack.i.l.bf16 %v5063_v42  ;;  %v705_v46 = vpop.permute.xlu0 %704  ;;  %v759_v49 = vsel %vm485_vm6, %v707_v21, %v726_v43 }
 0x1ff   : > { %v769_v45 = vpack.c.bf16 %v759_v49, %v754_v48  ;;  %v709_v8 = vsel %vm427_vm2, %v5055_v62, %v705_v46 }
 0x200   : > { %v745_v51 = vsel %vm469_vm5, %v5064_v44, %v5065_v28 }
 0x201   : > { %800 = vmatprep.subr.bf16.mxu1 %v769_v45  ;;  %v5068_v50 = vpop.permute.xlu1 %5067  ;;  %v764_v59 = vsel %vm485_vm6, %v745_v51, 1.0  ;;  %v666_v45 = vld [vmem:[%s7042_s3 + $0x8] sm:$0xf] }
 0x202   : > { %v5070_v53 = vunpack.i.h.bf16 %v5068_v50  ;;  %v5069_v55 = vunpack.i.l.bf16 %v5068_v50  ;;  %v686_v56 = vpop.permute.xlu0 %685  ;;  %v774_v13 = vpack.c.bf16 %v764_v59, %v764_v59 }
 0x203   : > { %v757_v50 = vsel %vm485_vm6, %v5978_v24, %v686_v56 }
 0x204   : > { %v687_v58 = vsel %vm404_vm1, %v5069_v55, %v5079_v33  ;;  %v690_v63 = vsel %vm404_vm1, %v5070_v53, %v686_v56  ;;  %v689_v1 = vsel %vm404_vm1, %v5080_v32, %v5070_v53  ;;  %v789_v32 = vand.u32 %v6003_v61, %v774_v13 }
 0x205   : > { %v5073_v0 = vpop.permute.xlu1 %5072  ;;  %v753_v11 = vsel %vm485_vm6, %v5962_v14, %v687_v58  ;;  %v756_v19 = vsel %vm485_vm6, %v5964_v15, %v690_v63  ;;  %v755_v20 = vsel %vm485_vm6, %v5960_v9, %v689_v1 }
 0x206   : > { %v5075_v3 = vunpack.i.h.bf16 %v5073_v0  ;;  %v5074_v4 = vunpack.i.l.bf16 %v5073_v0  ;;  %v724_v5 = vpop.permute.xlu0 %723 }
 0x208   : > { %v727_v16 = vsel %vm449_vm4, %v5085_v40, %v5075_v3  ;;  %v725_v17 = vsel %vm449_vm4, %v5074_v4, %v5084_v12  ;;  %v728_v18 = vsel %vm449_vm4, %v5075_v3, %v724_v5 }
 0x209   : > { %v758_v10 = vsel %vm485_vm6, %v706_v60, %v725_v17  ;;  %v761_v7 = vsel %vm485_vm6, %v709_v8, %v728_v18  ;;  %v760_v22 = vsel %vm485_vm6, %v708_v6, %v727_v16  ;;  %v743_v33 = vpop.permute.xlu1 %742 }
 0x20a   : > { %v5088_v23 = vpop.permute.xlu0 %5087  ;;  %v768_v25 = vpack.c.bf16 %v758_v10, %v753_v11  ;;  %v771_v26 = vpack.c.bf16 %v761_v7, %v756_v19  ;;  %v770_v27 = vpack.c.bf16 %v760_v22, %v755_v20 }
 0x20b   : > { %v5090_v30 = vunpack.i.h.bf16 %v5088_v23  ;;  %v5089_v31 = vunpack.i.l.bf16 %v5088_v23 }
 0x20c   : > { %801 = vmatpush1.bf16.msra.mxu1 %v768_v25  ;;  %841 = vmatprep.subr.bf16.mxu0 %v771_v26 }
 0x20d   : > { %v744_v34 = vsel %vm469_vm5, %v5089_v31, %v5064_v44  ;;  %v746_v35 = vsel %vm469_vm5, %v5065_v28, %v5090_v30  ;;  %802 = vmatprep.subr.bf16.mxu1 %v789_v32  ;;  %842 = vmatpush1.bf16.msra.mxu0 %v770_v27  ;;  %v747_v40 = vsel %vm469_vm5, %v5090_v30, %v743_v33  ;;  %v767_v28 = vsel %vm485_vm6, %v743_v33, 1.0 }
 0x20e   : > { %v763_v36 = vsel %vm485_vm6, %v744_v34, 1.0  ;;  %v765_v39 = vsel %vm485_vm6, %v746_v35, 1.0  ;;  %v766_v21 = vsel %vm485_vm6, %v747_v40, 1.0  ;;  %v762_v44 = vsel %vm485_vm6, %v705_v46, %v724_v5 }
 0x20f   : > { %v773_v12 = vpack.c.bf16 %v763_v36, %v763_v36  ;;  %v775_v41 = vpack.c.bf16 %v765_v39, %v765_v39  ;;  %v776_v42 = vpack.c.bf16 %v766_v21, %v766_v21  ;;  %v772_v51 = vpack.c.bf16 %v762_v44, %v757_v50 }
 0x210   : > { %v777_v52 = vpack.c.bf16 %v767_v28, %v767_v28 }
 0x211   : > { %v786_v43 = vand.u32 %v6003_v61, %v773_v12  ;;  %v792_v48 = vand.u32 %v6003_v61, %v775_v41  ;;  %v795_v49 = vand.u32 %v6003_v61, %v776_v42 }
 0x212   : > { %v798_v46 = vand.u32 %v6003_v61, %v777_v52 }
 0x213   : > { %803 = vmatpush1.bf16.msra.mxu1 %v786_v43  ;;  %843 = vmatprep.subr.bf16.mxu0 %v795_v49  ;;  %v1038_v43 = vsel %vm485_vm6, 4294967295, %v5765_v47 }
 0x214   : > { %4935 = vmatprep.subr.bf16.mxu1 %v5766_v54  ;;  %844 = vmatpush1.bf16.msra.mxu0 %v792_v48 }
 0x216   : > { %4616 = vmatmul.mubr.msk.bf16.vlgmr.msra.gmra.mrb[4].mxu1 %vm778_vm3, %v666_v45 }
 0x217   : > { %4936 = vmatpush3.bf16.msra.mxu1 %v772_v51  ;;  %4939 = vmatprep.mubr.msk.bf16.mxu1 %vm5767_vm9, %v5766_v54  ;;  %v6076_v51 = vsel %vm511_vm0, %v1038_v43, 0  ;;  %vm1034_vm0 = vcmask 334848   ;;  %v5492_v43 = vld [vmem:[%s7043_s4 + $0x18] ss:$12 sps:$4 sm:$0xff]  }
 0x218   : > { %4617 = vmatmul.mubr.msk.bf16.vlgmr.msra.gmra.mrb[8].mxu0 %vm778_vm3, %v666_v45  ;;  %4937 = vmatprep.subr.bf16.mxu1 %v5766_v54 }
 0x219   : > { %1087 = vmatprep.mubr.bf16.mxu0 %v5764_v29 }
 0x21b   : > { %4938 = vmatpush3.bf16.msra.mxu1 %v798_v46 }
 0x21e   : > { %4940 = vmatmul.mubr.msk.bf16.vlgmr.msra.gmra.mrb[8].mxu1 %vm778_vm3, %v666_v45 }
 0x21f   : > { %1128 = vmatprep.mubr.bf16.mxu1 %v5764_v29 }
 0x2e9   : > { %v834_v24 = vpop.f32.mrb[4].mxu1 }
 0x2ea   : > { %vm922_vm7 = vcmp.ge.f32.partialorder %v834_v24, 0.0  ;;  %v927_v53 = vmul.f32 0.01, %v834_v24  ;;  %v836_v55 = vpop.f32.mrb[5].mxu1 }
 0x2eb   : > { %vm923_vm8 = vcmp.ge.f32.partialorder %v836_v55, 0.0  ;;  %v928_v56 = vmul.f32 0.01, %v836_v55  ;;  %v875_v57 = vpop.f32.mrb[8].mxu0  ;;  %v838_v58 = vpop.f32.mrb[6].mxu1 }
 0x2ec   : > { %v932_v59 = vsel %vm922_vm7, %v834_v24, %v927_v53  ;;  %vm924_vm10 = vcmp.ge.f32.partialorder %v875_v57, 0.0  ;;  %v929_v62 = vmul.f32 0.01, %v875_v57  ;;  %v877_v63 = vpop.f32.mrb[9].mxu0  ;;  %v839_v0 = vpop.f32.mrb[7].mxu1  ;;  %v5768_v24 = vmov 1.0  }
 0x2ed   : > { %v933_v60 = vsel %vm923_vm8, %v836_v55, %v928_v56  ;;  %v879_v1 = vpop.f32.mrb[10].mxu0  ;;  %962 = vrot.lane.b32.xlu0 %v932_v59, %s5762_s13  ;;  %943 = vrot.lane.b32.xlu1 %v932_v59, %s5761_s12  ;;  %v930_v17 = vmul.f32 0.01, %v877_v63  ;;  %vm925_vm12 = vcmp.ge.f32.partialorder %v877_v63, 0.0 }
 0x2ee   : > { %v6048_v3 = vsel %vm924_vm10, %v875_v57, %v929_v62  ;;  %v880_v4 = vpop.f32.mrb[11].mxu0 }
 0x2ef   : > { %v5091_v5 = vpack.i.bf16 %v6048_v3, %v933_v60  ;;  %v6059_v19 = vsel %vm925_vm12, %v877_v63, %v930_v17 }
 0x2f1   : > { %981 = vrot.lane.b32.xlu1 %v932_v59, %s5763_s14  ;;  %5092 = vrot.lane.b32.xlu0 %v5091_v5, %s5761_s12  ;;  %v916_v6 = vpop.f32.mrb[8].mxu1 }
 0x2f2   : > { %v4941_v8 = vpop.f32.mrb[9].mxu1  ;;  %v931_v13 = vmul.f32 0.01, %v916_v6  ;;  %vm926_vm11 = vcmp.ge.f32.partialorder %v916_v6, 0.0 }
 0x2f3   : > { %v919_v11 = vpop.f32.mrb[10].mxu1 }
 0x2f4   : > { %v4942_v16 = vpop.f32.mrb[11].mxu1  ;;  %v6055_v18 = vsel %vm926_vm11, %v916_v6, %v931_v13 }
 0x2f5   : > { %5102 = vrot.lane.b32.xlu1 %v5091_v5, %s5763_s14  ;;  %5097 = vrot.lane.b32.xlu0 %v5091_v5, %s5762_s13  ;;  %v5116_v10 = vpack.i.bf16 %v6055_v18, %v6059_v19 }
 0x2f9   : > { %1000 = vrot.lane.b32.xlu1 %v932_v59, %s5760_s11  ;;  %5107 = vrot.lane.b32.xlu0 %v5091_v5, %s5760_s11 }
 0x2fd   : > { %5117 = vrot.lane.b32.xlu1 %v5116_v10, %s5762_s13  ;;  %5112 = vrot.lane.b32.xlu0 %v5116_v10, %s5761_s12 }
 0x301   : > { %5127 = vrot.lane.b32.xlu1 %v5116_v10, %s5760_s11  ;;  %5122 = vrot.lane.b32.xlu0 %v5116_v10, %s5763_s14 }
 0x35f   : > { %v963_v7 = vpop.permute.xlu0 %962  ;;  %v944_v20 = vpop.permute.xlu1 %943 }
 0x363   : > { %v982_v22 = vpop.permute.xlu1 %981  ;;  %v5093_v23 = vpop.permute.xlu0 %5092 }
 0x364   : > { %v5095_v25 = vunpack.i.h.bf16 %v5093_v23  ;;  %v5094_v26 = vunpack.i.l.bf16 %v5093_v23 }
 0x366   : > { %v953_v27 = vsel %vm404_vm1, %v944_v20, %v5094_v26  ;;  %v954_v30 = vsel %vm404_vm1, %v5094_v26, %v5095_v25 }
 0x367   : > { %v5103_v31 = vpop.permute.xlu1 %5102  ;;  %v5098_v32 = vpop.permute.xlu0 %5097  ;;  %v1020_v33 = vpack.c.bf16 %v954_v30, %v933_v60  ;;  %v1019_v34 = vpack.c.bf16 %v953_v27, %v932_v59 }
 0x368   : > { %v5105_v35 = vunpack.i.h.bf16 %v5103_v31  ;;  %v5104_v36 = vunpack.i.l.bf16 %v5103_v31  ;;  %v5100_v39 = vunpack.i.h.bf16 %v5098_v32  ;;  %v5099_v40 = vunpack.i.l.bf16 %v5098_v32 }
 0x369   : > { %1055 = vmatprep.subr.bf16.mxu0 %v1020_v33 }
 0x36a   : > { %v991_v12 = vsel %vm449_vm4, %v982_v22, %v5104_v36  ;;  %v972_v41 = vsel %vm427_vm2, %v963_v7, %v5099_v40  ;;  %1056 = vmatpush1.bf16.msra.mxu0 %v1019_v34  ;;  %v973_v21 = vsel %vm427_vm2, %v5099_v40, %v5100_v39  ;;  %v992_v42 = vsel %vm449_vm4, %v5104_v36, %v5105_v35  ;;  %v937_v7 = vld [vmem:[%s7042_s3 + $0x10] sm:$0xf] }
 0x36b   : > { %v1001_v48 = vpop.permute.xlu1 %1000  ;;  %v5108_v44 = vpop.permute.xlu0 %5107  ;;  %v1025_v28 = vpack.c.bf16 %v992_v42, %v973_v21  ;;  %v1024_v49 = vpack.c.bf16 %v991_v12, %v972_v41  ;;  %v5489_v12 = vld [vmem:[%s7043_s4] ss:$12 sps:$4 sm:$0xff]   ;;  %v5494_v41 = vld [vmem:[%s7043_s4 + $0x1c] ss:$12 sps:$4 sm:$0xff]  }
 0x36c   : > { %v5110_v45 = vunpack.i.h.bf16 %v5108_v44  ;;  %v5109_v50 = vunpack.i.l.bf16 %v5108_v44  ;;  %v5517_v21 = vld [vmem:[%s7043_s4 + $0x8] ss:$12 sps:$4 sm:$0xff]   ;;  %v5521_v42 = vld [vmem:[%s7043_s4 + $0xe0] ss:$12 sps:$4 sm:$0xff]  }
 0x36d   : > { %1057 = vmatprep.subr.bf16.mxu0 %v1025_v28  ;;  %v5522_v44 = vld [vmem:[%s7043_s4 + $0x20] ss:$12 sps:$4 sm:$0xff]   ;;  %v5526_v28 = vld [vmem:[%s7043_s4 + $0xf8] ss:$12 sps:$4 sm:$0xff]  }
 0x36e   : > { %v1010_v52 = vsel %vm469_vm5, %v1001_v48, %v5109_v50  ;;  %1058 = vmatpush1.bf16.msra.mxu0 %v1024_v49  ;;  %v1011_v46 = vsel %vm469_vm5, %v5109_v50, %v5110_v45  ;;  %v5497_v48 = vld [vmem:[%s7043_s4 + $0x34] ss:$12 sps:$4 sm:$0xff]   ;;  %v5495_v49 = vld [vmem:[%s7043_s4 + $0x30] ss:$12 sps:$4 sm:$0xff]   ;;  %v5527_v50 = vld [vmem:[%s7043_s4 + $0x38] ss:$12 sps:$4 sm:$0xff]  }
 0x36f   : > { %v1029_v53 = vpack.c.bf16 %v5768_v24, %v1010_v52  ;;  %v5118_v55 = vpop.permute.xlu1 %5117  ;;  %v5113_v56 = vpop.permute.xlu0 %5112  ;;  %v1030_v57 = vpack.c.bf16 %v5768_v24, %v1011_v46  ;;  %v5531_v52 = vld [vmem:[%s7043_s4 + $0x110] ss:$12 sps:$4 sm:$0xff]   ;;  %v5498_v46 = vld [vmem:[%s7043_s4 + $0x48] ss:$12 sps:$4 sm:$0xff]  }
 0x370   : > { %v5115_v58 = vunpack.i.h.bf16 %v5113_v56  ;;  %v5114_v59 = vunpack.i.l.bf16 %v5113_v56  ;;  %v5119_v0 = vunpack.i.l.bf16 %v5118_v55  ;;  %v5120_v4 = vunpack.i.h.bf16 %v5118_v55  ;;  %v5532_v55 = vld [vmem:[%s7043_s4 + $0x50] ss:$12 sps:$4 sm:$0xff]   ;;  %v5536_v56 = vld [vmem:[%s7043_s4 + $0x128] ss:$12 sps:$4 sm:$0xff]  }
 0x371   : > { %v1044_v62 = vand.u32 %v6076_v51, %v1030_v57  ;;  %v1041_v63 = vand.u32 %v6076_v51, %v1029_v53  ;;  %v5503_v53 = vld [vmem:[%s7043_s4 + $0x64] ss:$12 sps:$4 sm:$0xff]   ;;  %v5501_v57 = vld [vmem:[%s7043_s4 + $0x60] ss:$12 sps:$4 sm:$0xff]  }
 0x372   : > { %v955_v60 = vsel %vm404_vm1, %v5095_v25, %v5114_v59  ;;  %v956_v1 = vsel %vm404_vm1, %v5114_v59, %v5115_v58  ;;  %v974_v20 = vsel %vm427_vm2, %v5100_v39, %v5119_v0  ;;  %v1023_v22 = vpack.c.bf16 %v5115_v58, %v6055_v18  ;;  %v5516_v39 = vld [vmem:[%s7043_s4 + $0xc8] ss:$12 sps:$4 sm:$0xff]  }
 0x373   : > { %1059 = vmatprep.subr.bf16.mxu0 %v1044_v62  ;;  %v5128_v5 = vpop.permute.xlu1 %5127  ;;  %v5123_v6 = vpop.permute.xlu0 %5122  ;;  %v1022_v8 = vpack.c.bf16 %v956_v1, %v6059_v19  ;;  %v1021_v11 = vpack.c.bf16 %v955_v60, %v6048_v3  ;;  %v975_v25 = vsel %vm427_vm2, %v5119_v0, %v5120_v4  ;;  %v5506_v58 = vld [vmem:[%s7043_s4 + $0x7c] ss:$12 sps:$4 sm:$0xff]   ;;  %v5541_v62 = vld [vmem:[%s7043_s4 + $0x140] ss:$12 sps:$4 sm:$0xff]   ;;  %v5546_v1 = vld [vmem:[%s7043_s4 + $0x158] ss:$12 sps:$4 sm:$0xff]  }
 0x374   : > { %v5130_v13 = vunpack.i.h.bf16 %v5128_v5  ;;  %v5129_v16 = vunpack.i.l.bf16 %v5128_v5  ;;  %v5125_v17 = vunpack.i.h.bf16 %v5123_v6  ;;  %v5124_v10 = vunpack.i.l.bf16 %v5123_v6  ;;  %1060 = vmatpush1.bf16.msra.mxu0 %v1041_v63  ;;  %v5537_v59 = vld [vmem:[%s7043_s4 + $0x68] ss:$12 sps:$4 sm:$0xff]   ;;  %v5504_v63 = vld [vmem:[%s7043_s4 + $0x78] ss:$12 sps:$4 sm:$0xff]   ;;  %v5542_v60 = vld [vmem:[%s7043_s4 + $0x80] ss:$12 sps:$4 sm:$0xff]  }
 0x375   : > { %1096 = vmatprep.subr.bf16.mxu1 %v1022_v8  ;;  %4943 = vmatprep.subr.bf16.mxu0 %v5766_v54  ;;  %v5509_v0 = vld [vmem:[%s7043_s4 + $0x94] ss:$12 sps:$4 sm:$0xff]   ;;  %v5512_v5 = vld [vmem:[%s7043_s4 + $0xac] ss:$12 sps:$4 sm:$0xff]  }
 0x376   : > { %v1012_v19 = vsel %vm469_vm5, %v5110_v45, %v5129_v16  ;;  %v1013_v3 = vsel %vm469_vm5, %v5129_v16, %v5130_v13  ;;  %1097 = vmatpush1.bf16.msra.mxu1 %v1021_v11  ;;  %v993_v23 = vsel %vm449_vm4, %v5105_v35, %v5124_v10  ;;  %v994_v26 = vsel %vm449_vm4, %v5124_v10, %v5125_v17  ;;  %v5491_v35 = vld [vmem:[%s7043_s4 + $0x4] ss:$12 sps:$4 sm:$0xff]   ;;  %v5500_v45 = vld [vmem:[%s7043_s4 + $0x4c] ss:$12 sps:$4 sm:$0xff]   ;;  %v5510_v8 = vld [vmem:[%s7043_s4 + $0xa8] ss:$12 sps:$4 sm:$0xff]  }
 0x377   : > { %4619 = vmatmul.mubr.msk.bf16.vlgmr.msra.gmra.mrb[12].mxu0 %vm1034_vm0, %v937_v7  ;;  %v1032_v27 = vpack.c.bf16 %v5768_v24, %v1013_v3  ;;  %v1026_v30 = vpack.c.bf16 %v993_v23, %v974_v20  ;;  %v1027_v31 = vpack.c.bf16 %v994_v26, %v975_v25  ;;  %v1031_v18 = vpack.c.bf16 %v5768_v24, %v1012_v19  ;;  %v5547_v6 = vld [vmem:[%s7043_s4 + $0x98] ss:$12 sps:$4 sm:$0xff]   ;;  %v5520_v16 = vld [vmem:[%s7043_s4 + $0xdc] ss:$12 sps:$4 sm:$0xff]   ;;  %v5525_v10 = vld [vmem:[%s7043_s4 + $0xf4] ss:$12 sps:$4 sm:$0xff]  }
 0x378   : > { %4944 = vmatpush3.bf16.msra.mxu0 %v1023_v22  ;;  %4949 = vmatprep.mubr.msk.bf16.mxu0 %vm5767_vm9, %v5766_v54  ;;  %v1033_v33 = vpack.c.bf16 %v5768_v24, %v5130_v13  ;;  %v1028_v34 = vpack.c.bf16 %v5125_v17, %v5120_v4  ;;  %v5507_v4 = vld [vmem:[%s7043_s4 + $0x90] ss:$12 sps:$4 sm:$0xff]   ;;  %v5513_v13 = vld [vmem:[%s7043_s4 + $0xc0] ss:$12 sps:$4 sm:$0xff]   ;;  %v5518_v17 = vld [vmem:[%s7043_s4 + $0xd8] ss:$12 sps:$4 sm:$0xff]  }
 0x379   : > { %v1050_v32 = vand.u32 %v6076_v51, %v1032_v27  ;;  %4945 = vmatprep.subr.bf16.mxu0 %v5766_v54  ;;  %1098 = vmatprep.subr.bf16.mxu1 %v1027_v31  ;;  %v1047_v36 = vand.u32 %v6076_v51, %v1031_v18  ;;  %v5515_v11 = vld [vmem:[%s7043_s4 + $0xc4] ss:$12 sps:$4 sm:$0xff]   ;;  %v5530_v20 = vld [vmem:[%s7043_s4 + $0x10c] ss:$12 sps:$4 sm:$0xff]   ;;  %v5528_v22 = vld [vmem:[%s7043_s4 + $0x108] ss:$12 sps:$4 sm:$0xff]  }
 0x37a   : > { %1099 = vmatpush1.bf16.msra.mxu1 %v1026_v30  ;;  %v1053_v40 = vand.u32 %v6076_v51, %v1033_v33  ;;  %v5535_v19 = vld [vmem:[%s7043_s4 + $0x124] ss:$12 sps:$4 sm:$0xff]   ;;  %v5533_v3 = vld [vmem:[%s7043_s4 + $0x120] ss:$12 sps:$4 sm:$0xff]   ;;  %v5540_v23 = vld [vmem:[%s7043_s4 + $0x13c] ss:$12 sps:$4 sm:$0xff]  }
 0x37b   : > { %1100 = vmatprep.subr.bf16.mxu1 %v1050_v32  ;;  %v5538_v25 = vld [vmem:[%s7043_s4 + $0x138] ss:$12 sps:$4 sm:$0xff]   ;;  %v5545_v26 = vld [vmem:[%s7043_s4 + $0x154] ss:$12 sps:$4 sm:$0xff]   ;;  %v5543_v27 = vld [vmem:[%s7043_s4 + $0x150] ss:$12 sps:$4 sm:$0xff]  }
 0x37c   : > { %4946 = vmatpush3.bf16.msra.mxu0 %v1028_v34  ;;  %v5550_v30 = vld [vmem:[%s7043_s4 + $0x16c] ss:$12 sps:$4 sm:$0xff]   ;;  %v5551_v31 = vld [vmem:[%s7043_s4 + $0x170] ss:$12 sps:$4 sm:$0xff]   ;;  %v5548_v18 = vld [vmem:[%s7043_s4 + $0x168] ss:$12 sps:$4 sm:$0xff]  }
 0x37d   : > { %4947 = vmatprep.subr.bf16.mxu0 %v5766_v54  ;;  %v5552_v32 = vld [vmem:[%s7043_s4 + $0xb0] ss:$12 sps:$4 sm:$0xff]   ;;  %v5556_v34 = vld [vmem:[%s7043_s4 + $0x248] ss:$12 sps:$4 sm:$0xff]  }
 0x37e   : > { %1101 = vmatpush1.bf16.msra.mxu1 %v1047_v36  ;;  %v5555_v33 = vld [vmem:[%s7043_s4 + $0x184] ss:$12 sps:$4 sm:$0xff]  }
 0x37f   : > { %1848 = vmatprep.subr.bf16.mxu1 %v5491_v35 }
 0x380   : > { %4948 = vmatpush3.bf16.msra.mxu0 %v1053_v40 }
 0x381   : > { %4854 = vmatprep.subr.bf16.mxu0 %v5516_v39  ;;  %4620 = vmatmul.mubr.msk.bf16.vlgmr.msra.gmra.mrb[12].mxu1 %vm1034_vm0, %v937_v7 }
 0x382   : > { %1849 = vmatpush1.bf16.msra.mxu1 %v5489_v12  ;;  %v5553_v12 = vld [vmem:[%s7043_s4 + $0x180] ss:$12 sps:$4 sm:$0xff]  }
 0x383   : > { %4950 = vmatmul.mubr.msk.bf16.vlgmr.msra.gmra.mrb[16].mxu0 %vm1034_vm0, %v937_v7  ;;  %1850 = vmatprep.subr.bf16.mxu1 %v5494_v41  ;;  %v5523_v7 = vld [vmem:[%s7043_s4 + $0xf0] ss:$12 sps:$4 sm:$0xff]   ;;  %v5557_v41 = vld [vmem:[%s7043_s4 + $0x188] ss:$12 sps:$4 sm:$0xff]  }
 0x384   : > { %4855 = vmatpush3.bf16.msra.mxu0 %v5517_v21 }
 0x385   : > { %4856 = vmatprep.subr.bf16.mxu0 %v5521_v42 }
 0x386   : > { %1851 = vmatpush1.bf16.msra.mxu1 %v5492_v43  ;;  %v5560_v43 = vld [vmem:[%s7043_s4 + $0x19c] ss:$12 sps:$4 sm:$0xff]  }
 0x387   : > { %1852 = vmatprep.subr.bf16.mxu1 %v5497_v48  ;;  %v5561_v48 = vld [vmem:[%s7043_s4 + $0x260] ss:$12 sps:$4 sm:$0xff]  }
 0x388   : > { %4857 = vmatpush3.bf16.msra.mxu0 %v5522_v44  ;;  %v5558_v44 = vld [vmem:[%s7043_s4 + $0x198] ss:$12 sps:$4 sm:$0xff]  }
 0x389   : > { %4858 = vmatprep.subr.bf16.mxu0 %v5526_v28  ;;  %v5562_v28 = vld [vmem:[%s7043_s4 + $0x1a0] ss:$12 sps:$4 sm:$0xff]  }
 0x38a   : > { %1853 = vmatpush1.bf16.msra.mxu1 %v5495_v49  ;;  %v5565_v49 = vld [vmem:[%s7043_s4 + $0x1b4] ss:$12 sps:$4 sm:$0xff]  }
 0x38b   : > { %1854 = vmatprep.subr.bf16.mxu1 %v5500_v45  ;;  %v5566_v45 = vld [vmem:[%s7043_s4 + $0x278] ss:$12 sps:$4 sm:$0xff]  }
 0x38c   : > { %4859 = vmatpush3.bf16.msra.mxu0 %v5527_v50  ;;  %v5563_v50 = vld [vmem:[%s7043_s4 + $0x1b0] ss:$12 sps:$4 sm:$0xff]  }
 0x38d   : > { %4860 = vmatprep.subr.bf16.mxu0 %v5531_v52  ;;  %v5567_v52 = vld [vmem:[%s7043_s4 + $0x1b8] ss:$12 sps:$4 sm:$0xff]  }
 0x38e   : > { %1855 = vmatpush1.bf16.msra.mxu1 %v5498_v46  ;;  %v5570_v46 = vld [vmem:[%s7043_s4 + $0x1cc] ss:$12 sps:$4 sm:$0xff]  }
 0x38f   : > { %1856 = vmatprep.subr.bf16.mxu1 %v5503_v53  ;;  %v5571_v53 = vld [vmem:[%s7043_s4 + $0x290] ss:$12 sps:$4 sm:$0xff]  }
 0x390   : > { %4861 = vmatpush3.bf16.msra.mxu0 %v5532_v55 }
 0x391   : > { %4862 = vmatprep.subr.bf16.mxu0 %v5536_v56 }
 0x392   : > { %1857 = vmatpush1.bf16.msra.mxu1 %v5501_v57 }
 0x393   : > { %1858 = vmatprep.subr.bf16.mxu1 %v5506_v58 }
 0x394   : > { %4863 = vmatpush3.bf16.msra.mxu0 %v5537_v59 }
 0x395   : > { %4864 = vmatprep.subr.bf16.mxu0 %v5541_v62 }
 0x396   : > { %1859 = vmatpush1.bf16.msra.mxu1 %v5504_v63  ;;  %v5568_v63 = vld [vmem:[%s7043_s4 + $0x1c8] ss:$12 sps:$4 sm:$0xff]  }
 0x397   : > { %1860 = vmatprep.subr.bf16.mxu1 %v5509_v0  ;;  %v5572_v0 = vld [vmem:[%s7043_s4 + $0x1d0] ss:$12 sps:$4 sm:$0xff]  }
 0x398   : > { %4865 = vmatpush3.bf16.msra.mxu0 %v5542_v60 }
 0x399   : > { %4866 = vmatprep.subr.bf16.mxu0 %v5546_v1 }
 0x39a   : > { %1861 = vmatpush1.bf16.msra.mxu1 %v5507_v4  ;;  %v5575_v4 = vld [vmem:[%s7043_s4 + $0x1e4] ss:$12 sps:$4 sm:$0xff]  }
 0x39b   : > { %1862 = vmatprep.subr.bf16.mxu1 %v5512_v5  ;;  %v5576_v5 = vld [vmem:[%s7043_s4 + $0x2a8] ss:$12 sps:$4 sm:$0xff]  }
 0x39c   : > { %4867 = vmatpush3.bf16.msra.mxu0 %v5547_v6 }
 0x39d   : > { %4868 = vmatprep.subr.bf16.mxu0 %v5551_v31  ;;  %v6361_v31 = vsel %vm1836_vm13, 65535, %v5764_v29 }
 0x39e   : > { %1863 = vmatpush1.bf16.msra.mxu1 %v5510_v8  ;;  %v5573_v8 = vld [vmem:[%s7043_s4 + $0x1e0] ss:$12 sps:$4 sm:$0xff]  }
 0x39f   : > { %1864 = vmatprep.subr.bf16.mxu1 %v5515_v11  ;;  %v5577_v11 = vld [vmem:[%s7043_s4 + $0x1e8] ss:$12 sps:$4 sm:$0xff]  }
 0x3a0   : > { %4869 = vmatpush3.bf16.msra.mxu0 %v5552_v32  ;;  %v5593_v32 = vld [vmem:[%s7043_s4 + $0x240] ss:$12 sps:$4 sm:$0xff]  }
 0x3a1   : > { %4876 = vmatprep.subr.bf16.mxu0 %v5556_v34  ;;  %v5598_v34 = vld [vmem:[%s7043_s4 + $0x25c] ss:$12 sps:$4 sm:$0xff]  }
 0x3a2   : > { %1865 = vmatpush1.bf16.msra.mxu1 %v5513_v13  ;;  %v5580_v13 = vld [vmem:[%s7043_s4 + $0x1fc] ss:$12 sps:$4 sm:$0xff]  }
 0x3a3   : > { %1866 = vmatprep.subr.bf16.mxu1 %v5520_v16  ;;  %v5581_v16 = vld [vmem:[%s7043_s4 + $0x2c0] ss:$12 sps:$4 sm:$0xff]  }
 0x3a6   : > { %1867 = vmatpush1.bf16.msra.mxu1 %v5518_v17  ;;  %v5578_v17 = vld [vmem:[%s7043_s4 + $0x1f8] ss:$12 sps:$4 sm:$0xff]  }
 0x3a7   : > { %1868 = vmatprep.subr.bf16.mxu1 %v5525_v10  ;;  %v5582_v10 = vld [vmem:[%s7043_s4 + $0x200] ss:$12 sps:$4 sm:$0xff]  }
 0x3aa   : > { %1869 = vmatpush1.bf16.msra.mxu1 %v5523_v7  ;;  %v5585_v7 = vld [vmem:[%s7043_s4 + $0x214] ss:$12 sps:$4 sm:$0xff]  }
 0x3ab   : > { %1870 = vmatprep.subr.bf16.mxu1 %v5530_v20  ;;  %v5586_v20 = vld [vmem:[%s7043_s4 + $0x2d8] ss:$12 sps:$4 sm:$0xff]  }
 0x3ae   : > { %1871 = vmatpush1.bf16.msra.mxu1 %v5528_v22  ;;  %v5583_v22 = vld [vmem:[%s7043_s4 + $0x210] ss:$12 sps:$4 sm:$0xff]  }
 0x3af   : > { %1872 = vmatprep.subr.bf16.mxu1 %v5535_v19  ;;  %v5587_v19 = vld [vmem:[%s7043_s4 + $0x218] ss:$12 sps:$4 sm:$0xff]  }
 0x3b2   : > { %1873 = vmatpush1.bf16.msra.mxu1 %v5533_v3  ;;  %v5590_v3 = vld [vmem:[%s7043_s4 + $0x22c] ss:$12 sps:$4 sm:$0xff]  }
 0x3b3   : > { %1874 = vmatprep.subr.bf16.mxu1 %v5540_v23  ;;  %v5591_v23 = vld [vmem:[%s7043_s4 + $0x2f0] ss:$12 sps:$4 sm:$0xff]  }
 0x3b6   : > { %1875 = vmatpush1.bf16.msra.mxu1 %v5538_v25  ;;  %v5588_v25 = vld [vmem:[%s7043_s4 + $0x228] ss:$12 sps:$4 sm:$0xff]  }
 0x3b7   : > { %1876 = vmatprep.subr.bf16.mxu1 %v5545_v26  ;;  %v5592_v26 = vld [vmem:[%s7043_s4 + $0x230] ss:$12 sps:$4 sm:$0xff]  }
 0x3ba   : > { %1877 = vmatpush1.bf16.msra.mxu1 %v5543_v27  ;;  %v5599_v27 = vld [vmem:[%s7043_s4 + $0x308] ss:$0 sps:$4 sm:$0x11]  }
 0x3bb   : > { %1878 = vmatprep.subr.bf16.mxu1 %v5550_v30  ;;  %v5595_v30 = vld [vmem:[%s7043_s4 + $0x244] ss:$12 sps:$4 sm:$0xff]  }
 0x3be   : > { %1879 = vmatpush1.bf16.msra.mxu1 %v5548_v18 }
 0x3bf   : > { %1889 = vmatprep.subr.bf16.mxu1 %v5555_v33  ;;  %v1846_v33 = vand.u32 %v5599_v27, %v6361_v31 }
 0x44a   : > { %v1089_v35 = vpop.f32.mrb[12].mxu0 }
 0x44b   : > { %v1091_v36 = vpop.f32.mrb[13].mxu0  ;;  %v1177_v21 = vpack.c.bf16 %v1089_v35, %v1089_v35  ;;  %v5596_v35 = vld [vmem:[%s7043_s4 + $0x258] ss:$12 sps:$4 sm:$0xff]  }
 0x44c   : > { %v1178_v39 = vpack.c.bf16 %v1091_v36, %v1091_v36  ;;  %v1093_v40 = vpop.f32.mrb[14].mxu0  ;;  %v5602_v36 = vld [vmem:[%s7043_s4 + $0x274] ss:$12 sps:$4 sm:$0xff]  }
 0x44d   : > { %v1094_v42 = vpop.f32.mrb[15].mxu0  ;;  %v5600_v40 = vld [vmem:[%s7043_s4 + $0x270] ss:$12 sps:$4 sm:$0xff]  }
 0x44e   : > { %1880 = vmatprep.mubr.bf16.mxu1 %v1178_v39  ;;  %2003 = vmatprep.mubr.bf16.mxu0 %v1178_v39  ;;  %v5606_v42 = vld [vmem:[%s7043_s4 + $0x2a0] ss:$12 sps:$4 sm:$0xff]  }
 0x44f   : > { %1881 = vmatmul.mubr.bf16.vlgmr.msra.gmra.mrb[16].mxu1 %v1177_v21  ;;  %2004 = vmatmul.mubr.bf16.vlgmr.msra.gmra.mrb[20].mxu0 %v1177_v21  ;;  %v5608_v21 = vld [vmem:[%s7043_s4 + $0x2a4] ss:$12 sps:$4 sm:$0xff]  }
 0x450   : > { %1890 = vmatpush1.bf16.msra.mxu1 %v5553_v12  ;;  %4877 = vmatpush3.bf16.msra.mxu0 %v5557_v41  ;;  %v5605_v12 = vld [vmem:[%s7043_s4 + $0x28c] ss:$12 sps:$4 sm:$0xff]   ;;  %v5603_v41 = vld [vmem:[%s7043_s4 + $0x288] ss:$12 sps:$4 sm:$0xff]  }
 0x451   : > { %1891 = vmatprep.subr.bf16.mxu1 %v5560_v43  ;;  %4878 = vmatprep.subr.bf16.mxu0 %v5561_v48  ;;  %v5611_v43 = vld [vmem:[%s7043_s4 + $0x2bc] ss:$12 sps:$4 sm:$0xff]   ;;  %v5609_v48 = vld [vmem:[%s7043_s4 + $0x2b8] ss:$12 sps:$4 sm:$0xff]  }
 0x454   : > { %1892 = vmatpush1.bf16.msra.mxu1 %v5558_v44  ;;  %4879 = vmatpush3.bf16.msra.mxu0 %v5562_v28  ;;  %v1130_v55 = vpop.f32.mrb[12].mxu1  ;;  %v5614_v44 = vld [vmem:[%s7043_s4 + $0x2d4] ss:$12 sps:$4 sm:$0xff]  }
 0x455   : > { %1893 = vmatprep.subr.bf16.mxu1 %v5565_v49  ;;  %4880 = vmatprep.subr.bf16.mxu0 %v5566_v45  ;;  %v1132_v56 = vpop.f32.mrb[13].mxu1  ;;  %v1179_v18 = vpack.c.bf16 %v1130_v55, %v1130_v55  ;;  %v1310_v28 = vld [vmem:[%s7043_s4 + $0x300] sm:$0x11]  ;;  %v5612_v49 = vld [vmem:[%s7043_s4 + $0x2d0] ss:$12 sps:$4 sm:$0xff]  }
 0x456   : > { %v6298_v57 = vpop.f32.mrb[16].mxu0  ;;  %v1180_v58 = vpack.c.bf16 %v1132_v56, %v1132_v56  ;;  %v1134_v59 = vpop.f32.mrb[14].mxu1  ;;  %v5617_v45 = vld [vmem:[%s7043_s4 + $0x2ec] ss:$12 sps:$4 sm:$0xff]  }
 0x457   : > { %v4951_v62 = vpop.f32.mrb[17].mxu0  ;;  %v1135_v60 = vpop.f32.mrb[15].mxu1  ;;  %v1181_v39 = vpack.c.bf16 %v6298_v57, %v6298_v57 }
 0x458   : > { %1894 = vmatpush1.bf16.msra.mxu1 %v5563_v50  ;;  %4881 = vmatpush3.bf16.msra.mxu0 %v5567_v52  ;;  %v1174_v1 = vpop.f32.mrb[18].mxu0  ;;  %v4719_v50 = vcombine.high %v1310_v28, %v1310_v28  ;;  %v5615_v52 = vld [vmem:[%s7043_s4 + $0x2e8] ss:$12 sps:$4 sm:$0xff]  }
 0x459   : > { %1895 = vmatprep.subr.bf16.mxu1 %v5570_v46  ;;  %4882 = vmatprep.subr.bf16.mxu0 %v5571_v53  ;;  %v4952_v6 = vpop.f32.mrb[19].mxu0  ;;  %v4718_v46 = vcombine.low %v1310_v28, %v1310_v28 }
 0x45a   : > { %2043 = vmatprep.mubr.bf16.mxu0 %v1180_v58  ;;  %1921 = vmatprep.mubr.bf16.mxu1 %v1180_v58  ;;  %v1843_v53 = vand.u32 %v4719_v50, %v6361_v31 }
 0x45b   : > { %v1840_v55 = vand.u32 %v4718_v46, %v6361_v31 }
 0x45c   : > { %1896 = vmatpush1.bf16.msra.mxu1 %v5568_v63  ;;  %4883 = vmatpush3.bf16.msra.mxu0 %v5572_v0 }
 0x45d   : > { %1897 = vmatprep.subr.bf16.mxu1 %v5575_v4  ;;  %4884 = vmatprep.subr.bf16.mxu0 %v5576_v5 }
 0x460   : > { %1898 = vmatpush1.bf16.msra.mxu1 %v5573_v8  ;;  %4885 = vmatpush3.bf16.msra.mxu0 %v5577_v11 }
 0x461   : > { %1899 = vmatprep.subr.bf16.mxu1 %v5580_v13  ;;  %4886 = vmatprep.subr.bf16.mxu0 %v5581_v16 }
 0x464   : > { %1900 = vmatpush1.bf16.msra.mxu1 %v5578_v17  ;;  %4887 = vmatpush3.bf16.msra.mxu0 %v5582_v10 }
 0x465   : > { %1901 = vmatprep.subr.bf16.mxu1 %v5585_v7  ;;  %4888 = vmatprep.subr.bf16.mxu0 %v5586_v20 }
 0x468   : > { %1902 = vmatpush1.bf16.msra.mxu1 %v5583_v22  ;;  %4889 = vmatpush3.bf16.msra.mxu0 %v5587_v19 }
 0x469   : > { %1903 = vmatprep.subr.bf16.mxu1 %v5590_v3  ;;  %4890 = vmatprep.subr.bf16.mxu0 %v5591_v23 }
 0x46c   : > { %1904 = vmatpush1.bf16.msra.mxu1 %v5588_v25  ;;  %4891 = vmatpush3.bf16.msra.mxu0 %v5592_v26 }
 0x46d   : > { %1905 = vmatprep.subr.bf16.mxu1 %v5595_v30  ;;  %4953 = vmatprep.subr.bf16.mxu0 %v5766_v54 }
 0x46f   : > { %2044 = vmatmul.mubr.bf16.vlgmr.msra.gmra.mrb[24].mxu0 %v1179_v18 }
 0x470   : > { %1906 = vmatpush1.bf16.msra.mxu1 %v5593_v32  ;;  %4954 = vmatpush3.bf16.msra.mxu0 %v1846_v33 }
 0x471   : > { %1907 = vmatprep.subr.bf16.mxu1 %v5598_v34  ;;  %4955 = vmatprep.mubr.msk.bf16.mxu0 %vm5767_vm9, %v5766_v54 }
 0x474   : > { %1908 = vmatpush1.bf16.msra.mxu1 %v5596_v35 }
 0x475   : > { %1909 = vmatprep.subr.bf16.mxu1 %v5602_v36 }
 0x477   : > { %4956 = vmatmul.mubr.msk.bf16.vlgmr.msra.gmra.mrb[28].mxu0 %vm1832_vm14, %v1181_v39 }
 0x478   : > { %1910 = vmatpush1.bf16.msra.mxu1 %v5600_v40  ;;  %2196 = vmatprep.mubr.bf16.mxu0 %v5764_v29 }
 0x479   : > { %1911 = vmatprep.subr.bf16.mxu1 %v5605_v12 }
 0x47c   : > { %1912 = vmatpush1.bf16.msra.mxu1 %v5603_v41 }
 0x47d   : > { %1913 = vmatprep.subr.bf16.mxu1 %v5608_v21 }
 0x480   : > { %1914 = vmatpush1.bf16.msra.mxu1 %v5606_v42 }
 0x481   : > { %1915 = vmatprep.subr.bf16.mxu1 %v5611_v43 }
 0x484   : > { %1916 = vmatpush1.bf16.msra.mxu1 %v5609_v48 }
 0x485   : > { %1917 = vmatprep.subr.bf16.mxu1 %v5614_v44 }
 0x488   : > { %1918 = vmatpush1.bf16.msra.mxu1 %v5612_v49 }
 0x489   : > { %1919 = vmatprep.subr.bf16.mxu1 %v5617_v45 }
 0x48c   : > { %1920 = vmatpush1.bf16.msra.mxu1 %v5615_v52 }
 0x48d   : > { %1930 = vmatprep.subr.bf16.mxu1 %v1843_v53 }
 0x48f   : > { %1922 = vmatmul.mubr.bf16.vlgmr.msra.gmra.mrb[16].mxu1 %v1179_v18 }
 0x490   : > { %1931 = vmatpush1.bf16.msra.mxu1 %v1840_v55  ;;  %1962 = vmatprep.mubr.bf16.mxu1 %v5764_v29 }
 0x491   : > { %4959 = vmatprep.subr.bf16.mxu1 %v5766_v54 }
 0x49b   : > { %4721 = vmatmul.mubr.msk.bf16.vlgmr.msra.gmra.mrb[16].mxu1 %vm1832_vm14, %v1181_v39 }
 0x49c   : > { %4971 = vmatprep.mubr.msk.bf16.mxu1 %vm5767_vm9, %v5766_v54 }
 0x522   : > { %v4870_v56 = vpop.f32.mrb[20].mxu0 }
 0x523   : > { %v4871_v57 = vpop.f32.mrb[21].mxu0 }
 0x524   : > { %v4872_v58 = vadd.f32 %v4871_v57, %v4870_v56  ;;  %v4873_v59 = vpop.f32.mrb[22].mxu0 }
 0x525   : > { %v4874_v62 = vpop.f32.mrb[23].mxu0  ;;  %v2114_v59 = vld [vmem:[%s7042_s3 + $0x18] sm:$0xf] }
 0x542   : > { %v4892_v63 = vpop.f32.mrb[24].mxu0 }
 0x543   : > { %v4893_v0 = vpop.f32.mrb[25].mxu0 }
 0x544   : > { %v4894_v60 = vadd.f32 %v4893_v0, %v4892_v63  ;;  %v4895_v1 = vpop.f32.mrb[26].mxu0 }
 0x545   : > { %v4896_v4 = vpop.f32.mrb[27].mxu0 }
 0x546   : > { %v2046_v5 = vadd.f32 %v4894_v60, %v4872_v58 }
 0x54a   : > { %v2085_v6 = vpop.f32.mrb[28].mxu0 }
 0x54b   : > { %v2086_v8 = vadd.f32 %v2085_v6, %v2046_v5  ;;  %v4957_v11 = vpop.f32.mrb[29].mxu0 }
 0x54c   : > { %v2088_v13 = vpop.f32.mrb[30].mxu0 }
 0x54d   : > { %v4958_v16 = vpop.f32.mrb[31].mxu0  ;;  %v2096_v27 = vmul.f32 0.01, %v2086_v8  ;;  %vm2093_vm7 = vcmp.ge.f32.partialorder %v2086_v8, 0.0 }
 0x54f   : > { %v2099_v18 = vsel %vm2093_vm7, %v2086_v8, %v2096_v27 }
 0x56e   : > { %v1964_v17 = vpop.f32.mrb[16].mxu1 }
 0x56f   : > { %vm2091_vm3 = vcmp.ge.f32.partialorder %v1964_v17, 0.0  ;;  %v2094_v10 = vmul.f32 0.01, %v1964_v17  ;;  %v1966_v7 = vpop.f32.mrb[17].mxu1 }
 0x570   : > { %vm2092_vm9 = vcmp.ge.f32.partialorder %v1966_v7, 0.0  ;;  %v2095_v20 = vmul.f32 0.01, %v1966_v7  ;;  %v1968_v22 = vpop.f32.mrb[18].mxu1 }
 0x571   : > { %v2097_v19 = vsel %vm2091_vm3, %v1964_v17, %v2094_v10  ;;  %v1969_v3 = vpop.f32.mrb[19].mxu1  ;;  %vm2396_vm3 = vcmask 662528  }
 0x572   : > { %v2111_v23 = vadd.f32 %v5884_v37, %v2097_v19  ;;  %v2098_v25 = vsel %vm2092_vm9, %v1966_v7, %v2095_v20  ;;  %vm2572_vm9 = vcmask 957440  }
 0x573   : > { %v2112_v26 = vadd.f32 %v5886_v38, %v2098_v25 }
 0x575   : > { %v5136_v30 = vpack.i.bf16 %v2112_v26, %v2111_v23  ;;  %v5146_v32 = vpack.i.bf16 %v2099_v18, %v2112_v26 }
 0x577   : > { %5137 = vrot.lane.b32.xlu1 %v5136_v30, %s5762_s13  ;;  %5132 = vrot.lane.b32.xlu0 %v5136_v30, %s5761_s12 }
 0x57b   : > { %5147 = vrot.lane.b32.xlu1 %v5146_v32, %s5760_s11  ;;  %5142 = vrot.lane.b32.xlu0 %v5136_v30, %s5763_s14 }
 0x57f   : > { %2139 = vrot.lane.b32.xlu0 %v2111_v23, %s5760_s11 }
 0x5e9   : > { %v5138_v33 = vpop.permute.xlu1 %5137  ;;  %v5133_v37 = vpop.permute.xlu0 %5132 }
 0x5ea   : > { %v5135_v34 = vunpack.i.h.bf16 %v5133_v37  ;;  %v5134_v35 = vunpack.i.l.bf16 %v5133_v37  ;;  %v5140_v38 = vunpack.i.h.bf16 %v5138_v33  ;;  %v5139_v36 = vunpack.i.l.bf16 %v5138_v33 }
 0x5ec   : > { %v2150_v39 = vpack.c.bf16 %v5135_v34, %v2112_v26  ;;  %v2121_v40 = vsel %vm404_vm1, %v5134_v35, %v5135_v34  ;;  %v2128_v28 = vsel %vm427_vm2, %v5139_v36, %v5140_v38 }
 0x5ed   : > { %v2149_v12 = vpack.c.bf16 %v2121_v40, %v2111_v23  ;;  %v5148_v41 = vpop.permute.xlu1 %5147  ;;  %v5143_v21 = vpop.permute.xlu0 %5142  ;;  %v5620_v40 = vld [vmem:[%s7042_s3 + $0x20] sm:$0xff]  }
 0x5ee   : > { %v5150_v42 = vunpack.i.h.bf16 %v5148_v41  ;;  %v5149_v43 = vunpack.i.l.bf16 %v5148_v41  ;;  %v5145_v48 = vunpack.i.h.bf16 %v5143_v21  ;;  %v5144_v44 = vunpack.i.l.bf16 %v5143_v21  ;;  %2164 = vmatprep.subr.bf16.mxu0 %v2150_v39 }
 0x5ef   : > { %2165 = vmatpush1.bf16.msra.mxu0 %v2149_v12 }
 0x5f0   : > { %v2146_v49 = vsel %vm469_vm5, %v5149_v43, %v5150_v42  ;;  %v2152_v45 = vpack.c.bf16 %v5145_v48, %v5140_v38  ;;  %v2135_v50 = vsel %vm449_vm4, %v5144_v44, %v5145_v48 }
 0x5f1   : > { %v2151_v52 = vpack.c.bf16 %v2135_v50, %v2128_v28  ;;  %v2140_v46 = vpop.permute.xlu0 %2139  ;;  %v2154_v53 = vpack.c.bf16 %v5768_v24, %v2146_v49 }
 0x5f2   : > { %v2145_v55 = vsel %vm469_vm5, %v2140_v46, %v5149_v43  ;;  %2166 = vmatprep.subr.bf16.mxu0 %v2152_v45 }
 0x5f3   : > { %v2153_v56 = vpack.c.bf16 %v5768_v24, %v2145_v55  ;;  %2167 = vmatpush1.bf16.msra.mxu0 %v2151_v52  ;;  %v2162_v57 = vand.u32 %v2154_v53, %v6076_v51 }
 0x5f5   : > { %v2159_v58 = vand.u32 %v2153_v56, %v6076_v51  ;;  %2168 = vmatprep.subr.bf16.mxu0 %v2162_v57 }
 0x5f7   : > { %2169 = vmatpush1.bf16.msra.mxu0 %v2159_v58 }
 0x5fa   : > { %4723 = vmatmul.mubr.msk.bf16.vlgmr.msra.gmra.mrb[32].mxu0 %vm1034_vm0, %v2114_v59 }
 0x5fb   : > { %2295 = vmatprep.mubr.bf16.mxu0 %v5764_v29 }
 0x6cd   : > { %v2198_v62 = vpop.f32.mrb[32].mxu0 }
 0x6ce   : > { %vm2205_vm8 = vcmp.ge.f32.partialorder %v2198_v62, 0.0  ;;  %v2207_v63 = vmul.f32 0.01, %v2198_v62  ;;  %v2200_v0 = vpop.f32.mrb[33].mxu0 }
 0x6cf   : > { %vm2206_vm10 = vcmp.ge.f32.partialorder %v2200_v0, 0.0  ;;  %v2208_v60 = vmul.f32 0.01, %v2200_v0  ;;  %v2202_v1 = vpop.f32.mrb[34].mxu0 }
 0x6d0   : > { %v6447_v4 = vsel %vm2205_vm8, %v2198_v62, %v2207_v63  ;;  %v2203_v5 = vpop.f32.mrb[35].mxu0 }
 0x6d1   : > { %v6449_v6 = vsel %vm2206_vm10, %v2200_v0, %v2208_v60 }
 0x6d2   : > { %v5156_v8 = vpack.i.bf16 %v6449_v6, %v6447_v4 }
 0x6d4   : > { %5157 = vrot.lane.b32.xlu0 %v5156_v8, %s5762_s13  ;;  %5152 = vrot.lane.b32.xlu1 %v5156_v8, %s5761_s12 }
 0x6d8   : > { %5167 = vrot.lane.b32.xlu0 %v5156_v8, %s5760_s11  ;;  %5162 = vrot.lane.b32.xlu1 %v5156_v8, %s5763_s14 }
 0x746   : > { %v5158_v11 = vpop.permute.xlu0 %5157  ;;  %v5153_v13 = vpop.permute.xlu1 %5152 }
 0x747   : > { %v5155_v16 = vunpack.i.h.bf16 %v5153_v13  ;;  %v5154_v17 = vunpack.i.l.bf16 %v5153_v13  ;;  %v5160_v10 = vunpack.i.h.bf16 %v5158_v11  ;;  %v5159_v7 = vunpack.i.l.bf16 %v5158_v11 }
 0x749   : > { %v2244_v20 = vpack.c.bf16 %v5155_v16, %v6449_v6  ;;  %v2219_v22 = vsel %vm404_vm1, %v5154_v17, %v5155_v16  ;;  %v2226_v18 = vsel %vm427_vm2, %v5159_v7, %v5160_v10 }
 0x74a   : > { %v2243_v19 = vpack.c.bf16 %v2219_v22, %v6447_v4  ;;  %v5168_v3 = vpop.permute.xlu0 %5167  ;;  %v5163_v23 = vpop.permute.xlu1 %5162 }
 0x74b   : > { %v5170_v25 = vunpack.i.h.bf16 %v5168_v3  ;;  %v5169_v26 = vunpack.i.l.bf16 %v5168_v3  ;;  %v5165_v27 = vunpack.i.h.bf16 %v5163_v23  ;;  %v5164_v30 = vunpack.i.l.bf16 %v5163_v23  ;;  %2263 = vmatprep.subr.bf16.mxu0 %v2244_v20 }
 0x74c   : > { %2264 = vmatpush1.bf16.msra.mxu0 %v2243_v19 }
 0x74d   : > { %v2248_v32 = vpack.c.bf16 %v5768_v24, %v5170_v25  ;;  %v2240_v33 = vsel %vm469_vm5, %v5169_v26, %v5170_v25  ;;  %v2246_v37 = vpack.c.bf16 %v5165_v27, %v5160_v10  ;;  %v2233_v34 = vsel %vm449_vm4, %v5164_v30, %v5165_v27 }
 0x74e   : > { %v2247_v35 = vpack.c.bf16 %v5768_v24, %v2240_v33  ;;  %v2245_v38 = vpack.c.bf16 %v2233_v34, %v2226_v18 }
 0x74f   : > { %2265 = vmatprep.subr.bf16.mxu0 %v2246_v37  ;;  %v2261_v36 = vand.u32 %v2248_v32, %v6076_v51 }
 0x750   : > { %2266 = vmatpush1.bf16.msra.mxu0 %v2245_v38  ;;  %v2258_v39 = vand.u32 %v2247_v35, %v6076_v51 }
 0x751   : > { %2267 = vmatprep.subr.bf16.mxu0 %v2261_v36 }
 0x754   : > { %2268 = vmatpush1.bf16.msra.mxu0 %v2258_v39 }
 0x757   : > { %4725 = vmatmul.mubr.msk.bf16.vlgmr.msra.gmra.mrb[36].mxu0 %vm1034_vm0, %v5620_v40 }
 0x758   : > { %2435 = vmatprep.mubr.bf16.mxu0 %v5764_v29 }
 0x82a   : > { %v2297_v12 = vpop.f32.mrb[36].mxu0 }
 0x82b   : > { %vm2306_vm11 = vcmp.ge.f32.partialorder %v2297_v12, 0.0  ;;  %v2310_v41 = vmul.f32 0.01, %v2297_v12  ;;  %v2299_v21 = vpop.f32.mrb[37].mxu0 }
 0x82c   : > { %vm2307_vm12 = vcmp.ge.f32.partialorder %v2299_v21, 0.0  ;;  %v2311_v42 = vmul.f32 0.01, %v2299_v21  ;;  %v2301_v43 = vpop.f32.mrb[38].mxu0 }
 0x82d   : > { %v2314_v48 = vsel %vm2306_vm11, %v2297_v12, %v2310_v41  ;;  %vm2308_vm13 = vcmp.ge.f32.partialorder %v2301_v43, 0.0  ;;  %v2312_v44 = vmul.f32 0.01, %v2301_v43  ;;  %v2303_v28 = vpop.f32.mrb[39].mxu0 }
 0x82e   : > { %v2315_v49 = vsel %vm2307_vm12, %v2299_v21, %v2311_v42  ;;  %vm2309_vm14 = vcmp.ge.f32.partialorder %v2303_v28, 0.0  ;;  %v2313_v45 = vmul.f32 0.01, %v2303_v28  ;;  %vm2805_vm12 = vcmask 973824  }
 0x82f   : > { %v2316_v50 = vsel %vm2308_vm13, %v2301_v43, %v2312_v44  ;;  %v5171_v52 = vpack.i.bf16 %v2315_v49, %v2314_v48  ;;  %v6489_v43 = vand.u32 1.0|1.0, %v6361_v31  ;;  %v5622_v44 = vld [vmem:[%s7044_s5 + $0x40] sm:$0xff]  }
 0x830   : > { %v2317_v46 = vsel %vm2309_vm14, %v2303_v28, %v2313_v45  ;;  %v2380_v53 = vpack.c.bf16 %v2316_v50, %v2314_v48  ;;  %v5621_v28 = vld [vmem:[%s7042_s3 + $0x28] sm:$0xff]  }
 0x831   : > { %5172 = vrot.lane.b32.xlu1 %v5171_v52, %s5761_s12  ;;  %v5191_v55 = vpack.i.bf16 %v2317_v46, %v2316_v50  ;;  %v2381_v56 = vpack.c.bf16 %v2317_v46, %v2315_v49  ;;  %v5623_v49 = vld [vmem:[%s7044_s5] sm:$0xff]   ;;  %v5624_v45 = vld [vmem:[%s7044_s5 + $0x48] sm:$0xff]   ;;  %v5627_v46 = vld [vmem:[%s7044_s5 + $0x10] sm:$0xff]  }
 0x832   : > { %v5625_v50 = vld [vmem:[%s7044_s5 + $0x8] sm:$0xff]  }
 0x833   : > { %5192 = vrot.lane.b32.xlu0 %v5191_v55, %s5761_s12  ;;  %2403 = vmatprep.subr.bf16.mxu0 %v2381_v56  ;;  %v5630_v56 = vld [vmem:[%s7044_s5 + $0x60] sm:$0xff]  }
 0x834   : > { %2404 = vmatpush1.bf16.msra.mxu0 %v2380_v53  ;;  %v5628_v53 = vld [vmem:[%s7044_s5 + $0x58] sm:$0xff]  }
 0x835   : > { %5177 = vrot.lane.b32.xlu1 %v5171_v52, %s5762_s13 }
 0x837   : > { %5197 = vrot.lane.b32.xlu0 %v5191_v55, %s5762_s13 }
 0x839   : > { %5182 = vrot.lane.b32.xlu1 %v5171_v52, %s5763_s14 }
 0x83b   : > { %5202 = vrot.lane.b32.xlu0 %v5191_v55, %s5763_s14 }
 0x83d   : > { %5187 = vrot.lane.b32.xlu1 %v5171_v52, %s5760_s11  ;;  %v5626_v52 = vld [vmem:[%s7044_s5 + $0x50] sm:$0xff]  }
 0x83f   : > { %5207 = vrot.lane.b32.xlu0 %v5191_v55, %s5760_s11  ;;  %v5629_v55 = vld [vmem:[%s7044_s5 + $0x18] sm:$0xff]  }
 0x8a3   : > { %v5173_v57 = vpop.permute.xlu1 %5172 }
 0x8a4   : > { %v5175_v58 = vunpack.i.h.bf16 %v5173_v57  ;;  %v5174_v59 = vunpack.i.l.bf16 %v5173_v57  ;;  %v5631_v57 = vld [vmem:[%s7044_s5 + $0x20] sm:$0xff]  }
 0x8a5   : > { %v5193_v62 = vpop.permute.xlu0 %5192 }
 0x8a6   : > { %v5195_v63 = vunpack.i.h.bf16 %v5193_v62  ;;  %v5194_v0 = vunpack.i.l.bf16 %v5193_v62  ;;  %v2332_v60 = vsel %vm404_vm1, %v5174_v59, %v5175_v58  ;;  %v5633_v59 = vld [vmem:[%s7044_s5 + $0x28] sm:$0xff]   ;;  %v5634_v62 = vld [vmem:[%s7044_s5 + $0x70] sm:$0xff]  }
 0x8a7   : > { %v5178_v1 = vpop.permute.xlu1 %5177 }
 0x8a8   : > { %v2383_v5 = vpack.c.bf16 %v5195_v63, %v5175_v58  ;;  %v2333_v8 = vsel %vm404_vm1, %v5194_v0, %v5195_v63  ;;  %v5180_v11 = vunpack.i.h.bf16 %v5178_v1  ;;  %v5179_v13 = vunpack.i.l.bf16 %v5178_v1  ;;  %v5632_v58 = vld [vmem:[%s7044_s5 + $0x68] sm:$0xff]   ;;  %v5635_v63 = vld [vmem:[%s7044_s5 + $0x30] sm:$0xff]   ;;  %v5636_v0 = vld [vmem:[%s7044_s5 + $0x78] ss:$0 sps:$4 sm:$0x77]  }
 0x8a9   : > { %v2382_v16 = vpack.c.bf16 %v2333_v8, %v2332_v60  ;;  %v5198_v17 = vpop.permute.xlu0 %5197  ;;  %v2577_v60 = vand.u32 %v5636_v0, %v6003_v61  ;;  %v5637_v1 = vld [vmem:[%s7044_s5 + $0x38] sm:$0xff]   ;;  %v5657_v0 = vld [vmem:[%s7045_s6 + $0x60] ss:$8 sps:$4 sm:$0xff]  }
 0x8aa   : > { %v5200_v10 = vunpack.i.h.bf16 %v5198_v17  ;;  %v5199_v7 = vunpack.i.l.bf16 %v5198_v17  ;;  %2405 = vmatprep.subr.bf16.mxu0 %v2383_v5  ;;  %v2346_v20 = vsel %vm427_vm2, %v5179_v13, %v5180_v11 }
 0x8ab   : > { %v5183_v22 = vpop.permute.xlu1 %5182  ;;  %2406 = vmatpush1.bf16.msra.mxu0 %v2382_v16 }
 0x8ac   : > { %v2385_v19 = vpack.c.bf16 %v5200_v10, %v5180_v11  ;;  %v2347_v3 = vsel %vm427_vm2, %v5199_v7, %v5200_v10  ;;  %v5185_v23 = vunpack.i.h.bf16 %v5183_v22  ;;  %v5184_v25 = vunpack.i.l.bf16 %v5183_v22 }
 0x8ad   : > { %v2384_v26 = vpack.c.bf16 %v2347_v3, %v2346_v20  ;;  %v5203_v27 = vpop.permute.xlu0 %5202 }
 0x8ae   : > { %v5205_v30 = vunpack.i.h.bf16 %v5203_v27  ;;  %v5204_v18 = vunpack.i.l.bf16 %v5203_v27  ;;  %2407 = vmatprep.subr.bf16.mxu0 %v2385_v19  ;;  %v2360_v32 = vsel %vm449_vm4, %v5184_v25, %v5185_v23 }
 0x8af   : > { %v5188_v33 = vpop.permute.xlu1 %5187  ;;  %2408 = vmatpush1.bf16.msra.mxu0 %v2384_v26 }
 0x8b0   : > { %v2387_v37 = vpack.c.bf16 %v5205_v30, %v5185_v23  ;;  %v2361_v34 = vsel %vm449_vm4, %v5204_v18, %v5205_v30  ;;  %v5190_v35 = vunpack.i.h.bf16 %v5188_v33  ;;  %v5189_v38 = vunpack.i.l.bf16 %v5188_v33 }
 0x8b1   : > { %v2386_v36 = vpack.c.bf16 %v2361_v34, %v2360_v32  ;;  %v5208_v39 = vpop.permute.xlu0 %5207 }
 0x8b2   : > { %v5210_v40 = vunpack.i.h.bf16 %v5208_v39  ;;  %v5209_v12 = vunpack.i.l.bf16 %v5208_v39  ;;  %2409 = vmatprep.subr.bf16.mxu0 %v2387_v37  ;;  %v2374_v41 = vsel %vm469_vm5, %v5189_v38, %v5190_v35 }
 0x8b3   : > { %2410 = vmatpush1.bf16.msra.mxu0 %v2386_v36 }
 0x8b4   : > { %v2389_v21 = vpack.c.bf16 %v5210_v40, %v5190_v35  ;;  %v2375_v42 = vsel %vm469_vm5, %v5209_v12, %v5210_v40 }
 0x8b5   : > { %v2388_v48 = vpack.c.bf16 %v2375_v42, %v2374_v41 }
 0x8b6   : > { %2411 = vmatprep.subr.bf16.mxu0 %v2389_v21 }
 0x8b7   : > { %2412 = vmatpush1.bf16.msra.mxu0 %v2388_v48 }
 0x8b8   : > { %2413 = vmatprep.subr.bf16.mxu0 %v6489_v43 }
 0x8bb   : > { %2414 = vmatpush1.bf16.msra.mxu0 %v6489_v43 }
 0x8bc   : > { %4900 = vmatprep.subr.bf16.mxu0 %v5622_v44 }
 0x8be   : > { %4727 = vmatmul.mubr.msk.bf16.vlgmr.msra.gmra.mrb[40].mxu0 %vm2396_vm3, %v5621_v28 }
 0x8bf   : > { %4901 = vmatpush3.bf16.msra.mxu0 %v5623_v49  ;;  %v5641_v49 = vld [vmem:[%s7045_s6 + $0x4] ss:$8 sps:$4 sm:$0xff]  }
 0x8c0   : > { %4902 = vmatprep.subr.bf16.mxu0 %v5624_v45  ;;  %v5638_v45 = vld [vmem:[%s7042_s3 + $0x30] sm:$0xff]  }
 0x8c3   : > { %4903 = vmatpush3.bf16.msra.mxu0 %v5625_v50  ;;  %v5639_v50 = vld [vmem:[%s7045_s6] ss:$8 sps:$4 sm:$0xff]  }
 0x8c4   : > { %4904 = vmatprep.subr.bf16.mxu0 %v5626_v52  ;;  %v5644_v52 = vld [vmem:[%s7045_s6 + $0x14] ss:$8 sps:$4 sm:$0xff]  }
 0x8c7   : > { %4905 = vmatpush3.bf16.msra.mxu0 %v5627_v46  ;;  %v5647_v46 = vld [vmem:[%s7045_s6 + $0x24] ss:$8 sps:$4 sm:$0xff]  }
 0x8c8   : > { %4906 = vmatprep.subr.bf16.mxu0 %v5628_v53  ;;  %v5645_v53 = vld [vmem:[%s7045_s6 + $0x20] ss:$8 sps:$4 sm:$0xff]  }
 0x8cb   : > { %4907 = vmatpush3.bf16.msra.mxu0 %v5629_v55  ;;  %v5650_v55 = vld [vmem:[%s7045_s6 + $0x34] ss:$8 sps:$4 sm:$0xff]  }
 0x8cc   : > { %4908 = vmatprep.subr.bf16.mxu0 %v5630_v56  ;;  %v5648_v56 = vld [vmem:[%s7045_s6 + $0x30] ss:$8 sps:$4 sm:$0xff]  }
 0x8cf   : > { %4909 = vmatpush3.bf16.msra.mxu0 %v5631_v57  ;;  %v5653_v57 = vld [vmem:[%s7045_s6 + $0x44] ss:$8 sps:$4 sm:$0xff]  }
 0x8d0   : > { %4910 = vmatprep.subr.bf16.mxu0 %v5632_v58  ;;  %v5651_v58 = vld [vmem:[%s7045_s6 + $0x40] ss:$8 sps:$4 sm:$0xff]  }
 0x8d3   : > { %4911 = vmatpush3.bf16.msra.mxu0 %v5633_v59  ;;  %v5656_v59 = vld [vmem:[%s7045_s6 + $0x54] ss:$8 sps:$4 sm:$0xff]  }
 0x8d4   : > { %4912 = vmatprep.subr.bf16.mxu0 %v5634_v62  ;;  %v5654_v62 = vld [vmem:[%s7045_s6 + $0x50] ss:$8 sps:$4 sm:$0xff]  }
 0x8d7   : > { %4913 = vmatpush3.bf16.msra.mxu0 %v5635_v63  ;;  %v5659_v63 = vld [vmem:[%s7045_s6 + $0x64] ss:$8 sps:$4 sm:$0xff]  }
 0x8d8   : > { %4914 = vmatprep.subr.bf16.mxu0 %v2577_v60  ;;  %v2729_v60 = vld [vmem:[%s7045_s6 + $0x70] sm:$0xff] }
 0x8db   : > { %4915 = vmatpush3.bf16.msra.mxu0 %v5637_v1  ;;  %v4762_v1 = vcombine.high %v2729_v60, %v2729_v60 }
 0x991   : > { %v2437_v5 = vpop.f32.mrb[40].mxu0 }
 0x992   : > { %v2439_v8 = vpop.f32.mrb[41].mxu0 }
 0x993   : > { %v2441_v11 = vpop.f32.mrb[42].mxu0 }
 0x994   : > { %v2446_v13 = vpack.c.bf16 %v2441_v11, %v2437_v5  ;;  %v2443_v16 = vpop.f32.mrb[43].mxu0  ;;  %v2809_v5 = vsel %vm782_vm15, 4294967295, %v5765_v47 }
 0x995   : > { %v2447_v17 = vpack.c.bf16 %v2443_v16, %v2439_v8  ;;  %v4761_v8 = vcombine.low %v2729_v60, %v2729_v60  ;;  %v2810_v11 = vsel %vm485_vm6, %v2809_v5, 0 }
 0x997   : > { %4744 = vmatprep.mubr.msk.bf16.mxu0 %vm2572_vm9, %v2447_v17  ;;  %v2812_v16 = vand.u32 %v4761_v8, %v2810_v11 }
 0x998   : > { %2612 = vmatmul.mubr.bf16.vlgmr.msra.gmra.mrb[44].mxu0 %v2446_v13  ;;  %v2815_v13 = vand.u32 %v4762_v1, %v2810_v11 }
 0x999   : > { %2972 = vmatprep.mubr.bf16.mxu0 %v5764_v29 }
 0xa6b   : > { %v4916_v10 = vpop.f32.mrb[44].mxu0 }
 0xa6c   : > { %v4917_v7 = vpop.f32.mrb[45].mxu0 }
 0xa6d   : > { %v4918_v20 = vadd.f32 %v4917_v7, %v4916_v10  ;;  %v4919_v22 = vpop.f32.mrb[46].mxu0 }
 0xa6e   : > { %v4920_v19 = vpop.f32.mrb[47].mxu0 }
 0xa6f   : > { %v2622_v3 = vmul.f32 0.01, %v4918_v20  ;;  %v4921_v23 = vadd.f32 %v4920_v19, %v4919_v22  ;;  %vm2620_vm7 = vcmp.ge.f32.partialorder %v4918_v20, 0.0 }
 0xa71   : > { %vm2621_vm8 = vcmp.ge.f32.partialorder %v4921_v23, 0.0  ;;  %v2623_v25 = vmul.f32 0.01, %v4921_v23  ;;  %v2624_v26 = vsel %vm2620_vm7, %v4918_v20, %v2622_v3 }
 0xa73   : > { %v2625_v27 = vsel %vm2621_vm8, %v4921_v23, %v2623_v25 }
 0xa74   : > { %v5216_v30 = vpack.i.bf16 %v2625_v27, %v2624_v26  ;;  %v2654_v18 = vpack.c.bf16 %v2625_v27, %v2624_v26 }
 0xa76   : > { %5217 = vrot.lane.b32.xlu0 %v5216_v30, %s5762_s13  ;;  %5212 = vrot.lane.b32.xlu1 %v5216_v30, %s5761_s12 }
 0xa77   : > { %4960 = vmatpush3.bf16.msra.mxu1 %v2654_v18 }
 0xa78   : > { %4961 = vmatprep.subr.bf16.mxu1 %v5766_v54 }
 0xa7a   : > { %5227 = vrot.lane.b32.xlu0 %v5216_v30, %s5760_s11  ;;  %5222 = vrot.lane.b32.xlu1 %v5216_v30, %s5763_s14 }
 0xae8   : > { %v5218_v32 = vpop.permute.xlu0 %5217  ;;  %v5213_v33 = vpop.permute.xlu1 %5212 }
 0xae9   : > { %v5215_v37 = vunpack.i.h.bf16 %v5213_v33  ;;  %v5214_v34 = vunpack.i.l.bf16 %v5213_v33  ;;  %v5220_v35 = vunpack.i.h.bf16 %v5218_v32  ;;  %v5219_v38 = vunpack.i.l.bf16 %v5218_v32 }
 0xaeb   : > { %v2655_v36 = vpack.c.bf16 %v5215_v37, %v5214_v34  ;;  %v2656_v40 = vpack.c.bf16 %v5220_v35, %v5219_v38 }
 0xaec   : > { %v5223_v39 = vpop.permute.xlu1 %5222  ;;  %v5228_v21 = vpop.permute.xlu0 %5227 }
 0xaed   : > { %4962 = vmatpush3.bf16.msra.mxu1 %v2655_v36  ;;  %v5225_v12 = vunpack.i.h.bf16 %v5223_v39  ;;  %v5224_v41 = vunpack.i.l.bf16 %v5223_v39  ;;  %v5230_v42 = vunpack.i.h.bf16 %v5228_v21  ;;  %v5229_v48 = vunpack.i.l.bf16 %v5228_v21 }
 0xaee   : > { %4963 = vmatprep.subr.bf16.mxu1 %v5766_v54 }
 0xaef   : > { %v2657_v44 = vpack.c.bf16 %v5225_v12, %v5224_v41  ;;  %v2658_v28 = vpack.c.bf16 %v5230_v42, %v5229_v48 }
 0xaf1   : > { %4964 = vmatpush3.bf16.msra.mxu1 %v2656_v40 }
 0xaf2   : > { %4965 = vmatprep.subr.bf16.mxu1 %v5766_v54 }
 0xaf5   : > { %4966 = vmatpush3.bf16.msra.mxu1 %v2657_v44 }
 0xaf6   : > { %4967 = vmatprep.subr.bf16.mxu1 %v5766_v54 }
 0xaf9   : > { %4968 = vmatpush3.bf16.msra.mxu1 %v2658_v28 }
 0xafa   : > { %4969 = vmatprep.subr.bf16.mxu1 %v5766_v54  ;;  %v5642_v54 = vld [vmem:[%s7045_s6 + $0x10] ss:$8 sps:$4 sm:$0xff]  }
 0xafd   : > { %4970 = vmatpush3.bf16.msra.mxu1 %v6489_v43 }
 0xafe   : > { %2817 = vmatprep.subr.bf16.mxu1 %v5641_v49 }
 0xb00   : > { %4972 = vmatmul.mubr.msk.bf16.vlgmr.msra.gmra.mrb[20].mxu1 %vm2396_vm3, %v5638_v45 }
 0xb01   : > { %2818 = vmatpush1.bf16.msra.mxu1 %v5639_v50  ;;  %2849 = vmatprep.mubr.bf16.mxu1 %v5764_v29 }
 0xb02   : > { %2819 = vmatprep.subr.bf16.mxu1 %v5644_v52 }
 0xb05   : > { %2820 = vmatpush1.bf16.msra.mxu1 %v5642_v54 }
 0xb06   : > { %2821 = vmatprep.subr.bf16.mxu1 %v5647_v46 }
 0xb09   : > { %2822 = vmatpush1.bf16.msra.mxu1 %v5645_v53 }
 0xb0a   : > { %2823 = vmatprep.subr.bf16.mxu1 %v5650_v55 }
 0xb0d   : > { %2824 = vmatpush1.bf16.msra.mxu1 %v5648_v56 }
 0xb0e   : > { %2825 = vmatprep.subr.bf16.mxu1 %v5653_v57 }
 0xb11   : > { %2826 = vmatpush1.bf16.msra.mxu1 %v5651_v58 }
 0xb12   : > { %2827 = vmatprep.subr.bf16.mxu1 %v5656_v59 }
 0xb15   : > { %2828 = vmatpush1.bf16.msra.mxu1 %v5654_v62 }
 0xb16   : > { %2829 = vmatprep.subr.bf16.mxu1 %v5659_v63 }
 0xb19   : > { %2830 = vmatpush1.bf16.msra.mxu1 %v5657_v0 }
 0xb1a   : > { %2831 = vmatprep.subr.bf16.mxu1 %v2815_v13 }
 0xb1d   : > { %2832 = vmatpush1.bf16.msra.mxu1 %v2812_v16 }
 0xbd3   : > { %v2701_v17 = vpop.f32.mrb[20].mxu1 }
 0xbd4   : > { %v2710_v10 = vmul.f32 0.01, %v2701_v17  ;;  %v4973_v7 = vpop.f32.mrb[21].mxu1  ;;  %vm2708_vm10 = vcmp.ge.f32.partialorder %v2701_v17, 0.0 }
 0xbd5   : > { %v2704_v20 = vpop.f32.mrb[22].mxu1 }
 0xbd6   : > { %vm2709_vm11 = vcmp.ge.f32.partialorder %v2704_v20, 0.0  ;;  %v2711_v22 = vmul.f32 0.01, %v2704_v20  ;;  %v4974_v19 = vpop.f32.mrb[23].mxu1  ;;  %v2712_v3 = vsel %vm2708_vm10, %v2701_v17, %v2710_v10  ;;  %vm3129_vm10 = vcmask 97280  }
 0xbd7   : > { %v5662_v19 = vld [vmem:[%s7042_s3 + $0x38] sm:$0xff]  }
 0xbd8   : > { %v2713_v23 = vsel %vm2709_vm11, %v2704_v20, %v2711_v22  ;;  %vm3235_vm11 = vcmask 949248  }
 0xbd9   : > { %v2714_v47 = vpack.c.bf16 %v2713_v23, %v2712_v3 }
 0xbdb   : > { %4763 = vmatmul.mubr.msk.bf16.vlgmr.msra.gmra.mrb[24].mxu1 %vm2805_vm12, %v2714_v47 }
 0xbdc   : > { %3289 = vmatprep.mubr.bf16.mxu1 %v5764_v29 }
 0xcae   : > { %v2851_v25 = vpop.f32.mrb[24].mxu1 }
 0xcaf   : > { %v2853_v26 = vpop.f32.mrb[25].mxu1 }
 0xcb0   : > { %v2855_v27 = vpop.f32.mrb[26].mxu1  ;;  %v5231_v30 = vpack.i.bf16 %v2853_v26, %v2851_v25 }
 0xcb1   : > { %v2857_v18 = vpop.f32.mrb[27].mxu1  ;;  %v2922_v32 = vpack.c.bf16 %v2855_v27, %v2851_v25 }
 0xcb2   : > { %5232 = vrot.lane.b32.xlu1 %v5231_v30, %s5761_s12  ;;  %v5251_v33 = vpack.i.bf16 %v2857_v18, %v2855_v27  ;;  %v2923_v37 = vpack.c.bf16 %v2857_v18, %v2853_v26 }
 0xcb4   : > { %5252 = vrot.lane.b32.xlu0 %v5251_v33, %s5761_s12  ;;  %2940 = vmatprep.subr.bf16.mxu0 %v2923_v37 }
 0xcb5   : > { %2941 = vmatpush1.bf16.msra.mxu0 %v2922_v32 }
 0xcb6   : > { %5237 = vrot.lane.b32.xlu1 %v5231_v30, %s5762_s13 }
 0xcb8   : > { %5257 = vrot.lane.b32.xlu0 %v5251_v33, %s5762_s13 }
 0xcba   : > { %5242 = vrot.lane.b32.xlu1 %v5231_v30, %s5763_s14 }
 0xcbc   : > { %5262 = vrot.lane.b32.xlu0 %v5251_v33, %s5763_s14 }
 0xcbe   : > { %5247 = vrot.lane.b32.xlu1 %v5231_v30, %s5760_s11 }
 0xcc0   : > { %5267 = vrot.lane.b32.xlu0 %v5251_v33, %s5760_s11 }
 0xd24   : > { %v5233_v34 = vpop.permute.xlu1 %5232 }
 0xd25   : > { %v5235_v35 = vunpack.i.h.bf16 %v5233_v34  ;;  %v5234_v38 = vunpack.i.l.bf16 %v5233_v34 }
 0xd26   : > { %v5253_v36 = vpop.permute.xlu0 %5252 }
 0xd27   : > { %v5255_v39 = vunpack.i.h.bf16 %v5253_v36  ;;  %v5254_v40 = vunpack.i.l.bf16 %v5253_v36  ;;  %v2874_v12 = vsel %vm404_vm1, %v5234_v38, %v5235_v35 }
 0xd28   : > { %v5238_v41 = vpop.permute.xlu1 %5237 }
 0xd29   : > { %v2925_v21 = vpack.c.bf16 %v5255_v39, %v5235_v35  ;;  %v2875_v42 = vsel %vm404_vm1, %v5254_v40, %v5255_v39  ;;  %v5240_v48 = vunpack.i.h.bf16 %v5238_v41  ;;  %v5239_v44 = vunpack.i.l.bf16 %v5238_v41 }
 0xd2a   : > { %v2924_v28 = vpack.c.bf16 %v2875_v42, %v2874_v12  ;;  %v5258_v49 = vpop.permute.xlu0 %5257  ;;  %v3119_v40 = vstv %s4985_s24  ;;  %s4987_s24 = spop %4986 }
 0xd2b   : > { %v5260_v45 = vunpack.i.h.bf16 %v5258_v49  ;;  %v5259_v50 = vunpack.i.l.bf16 %v5258_v49  ;;  %2942 = vmatprep.subr.bf16.mxu0 %v2925_v21  ;;  %v2888_v52 = vsel %vm427_vm2, %v5239_v44, %v5240_v48  ;;  %v6641_v12 = vmul.f32 %v3119_v40, %v6447_v4 }
 0xd2c   : > { %v5243_v54 = vpop.permute.xlu1 %5242  ;;  %2943 = vmatpush1.bf16.msra.mxu0 %v2924_v28  ;;  %v6644_v41 = vmul.f32 %v3119_v40, %v6449_v6 }
 0xd2d   : > { %v2927_v46 = vpack.c.bf16 %v5260_v45, %v5240_v48  ;;  %v2889_v53 = vsel %vm427_vm2, %v5259_v50, %v5260_v45  ;;  %v5245_v55 = vunpack.i.h.bf16 %v5243_v54  ;;  %v5244_v56 = vunpack.i.l.bf16 %v5243_v54 }
 0xd2e   : > { %v2926_v57 = vpack.c.bf16 %v2889_v53, %v2888_v52  ;;  %v5263_v58 = vpop.permute.xlu0 %5262  ;;  %v5316_v21 = vpack.i.bf16 %v6644_v41, %v6641_v12 }
 0xd2f   : > { %v5265_v59 = vunpack.i.h.bf16 %v5263_v58  ;;  %v5264_v62 = vunpack.i.l.bf16 %v5263_v58  ;;  %2944 = vmatprep.subr.bf16.mxu0 %v2927_v46  ;;  %v2902_v63 = vsel %vm449_vm4, %v5244_v56, %v5245_v55 }
 0xd30   : > { %v5248_v0 = vpop.permute.xlu1 %5247  ;;  %2945 = vmatpush1.bf16.msra.mxu0 %v2926_v57 }
 0xd31   : > { %v2929_v60 = vpack.c.bf16 %v5265_v59, %v5245_v55  ;;  %v2903_v1 = vsel %vm449_vm4, %v5264_v62, %v5265_v59  ;;  %v5250_v5 = vunpack.i.h.bf16 %v5248_v0  ;;  %v5249_v8 = vunpack.i.l.bf16 %v5248_v0 }
 0xd32   : > { %v2928_v11 = vpack.c.bf16 %v2903_v1, %v2902_v63  ;;  %v5268_v13 = vpop.permute.xlu0 %5267 }
 0xd33   : > { %v5270_v16 = vunpack.i.h.bf16 %v5268_v13  ;;  %v5269_v17 = vunpack.i.l.bf16 %v5268_v13  ;;  %2946 = vmatprep.subr.bf16.mxu0 %v2929_v60  ;;  %v2916_v10 = vsel %vm469_vm5, %v5249_v8, %v5250_v5 }
 0xd34   : > { %2947 = vmatpush1.bf16.msra.mxu0 %v2928_v11 }
 0xd35   : > { %v2931_v7 = vpack.c.bf16 %v5270_v16, %v5250_v5  ;;  %v2917_v20 = vsel %vm469_vm5, %v5269_v17, %v5270_v16 }
 0xd36   : > { %v2930_v22 = vpack.c.bf16 %v2917_v20, %v2916_v10 }
 0xd37   : > { %2948 = vmatprep.subr.bf16.mxu0 %v2931_v7 }
 0xd38   : > { %2949 = vmatpush1.bf16.msra.mxu0 %v2930_v22 }
 0xd39   : > { %2950 = vmatprep.subr.bf16.mxu0 %v6489_v43 }
 0xd3c   : > { %2951 = vmatpush1.bf16.msra.mxu0 %v6489_v43 }
 0xd3f   : > { %4765 = vmatmul.mubr.msk.bf16.vlgmr.msra.gmra.mrb[48].mxu0 %vm2396_vm3, %v5662_v19 }
 0xd40   : > { %3101 = vmatprep.mubr.bf16.mxu0 %v5764_v29 }
 0xe12   : > { %v2974_v3 = vpop.f32.mrb[48].mxu0 }
 0xe13   : > { %vm2983_vm15 = vcmp.ge.f32.partialorder %v2974_v3, 0.0  ;;  %v2987_v23 = vmul.f32 0.01, %v2974_v3  ;;  %v2976_v47 = vpop.f32.mrb[49].mxu0 }
 0xe14   : > { %vm2984_vm13 = vcmp.ge.f32.partialorder %v2976_v47, 0.0  ;;  %v2988_v25 = vmul.f32 0.01, %v2976_v47  ;;  %v2978_v26 = vpop.f32.mrb[50].mxu0 }
 0xe15   : > { %v2991_v27 = vsel %vm2983_vm15, %v2974_v3, %v2987_v23  ;;  %vm2985_vm14 = vcmp.ge.f32.partialorder %v2978_v26, 0.0  ;;  %v2989_v30 = vmul.f32 0.01, %v2978_v26  ;;  %v2980_v18 = vpop.f32.mrb[51].mxu0  ;;  %vm3654_vm15 = vcmask 793600  }
 0xe16   : > { %v2992_v32 = vsel %vm2984_vm13, %v2976_v47, %v2988_v25  ;;  %vm2986_vm9 = vcmp.ge.f32.partialorder %v2980_v18, 0.0  ;;  %v2990_v33 = vmul.f32 0.01, %v2980_v18 }
 0xe17   : > { %v2993_v37 = vsel %vm2985_vm14, %v2978_v26, %v2989_v30  ;;  %v5271_v34 = vpack.i.bf16 %v2992_v32, %v2991_v27  ;;  %v2995_v30 = vld [vmem:[%s7042_s3 + $0x40] sm:$0xf] }
 0xe18   : > { %v2994_v35 = vsel %vm2986_vm9, %v2980_v18, %v2990_v33  ;;  %v3056_v38 = vpack.c.bf16 %v2993_v37, %v2991_v27 }
 0xe19   : > { %5272 = vrot.lane.b32.xlu1 %v5271_v34, %s5761_s12  ;;  %v5291_v36 = vpack.i.bf16 %v2994_v35, %v2993_v37  ;;  %v3057_v39 = vpack.c.bf16 %v2994_v35, %v2992_v32 }
 0xe1b   : > { %5292 = vrot.lane.b32.xlu0 %v5291_v36, %s5761_s12  ;;  %3069 = vmatprep.subr.bf16.mxu0 %v3057_v39 }
 0xe1c   : > { %3070 = vmatpush1.bf16.msra.mxu0 %v3056_v38 }
 0xe1d   : > { %5277 = vrot.lane.b32.xlu1 %v5271_v34, %s5762_s13 }
 0xe1f   : > { %5297 = vrot.lane.b32.xlu0 %v5291_v36, %s5762_s13 }
 0xe21   : > { %5282 = vrot.lane.b32.xlu1 %v5271_v34, %s5763_s14 }
 0xe23   : > { %5302 = vrot.lane.b32.xlu0 %v5291_v36, %s5763_s14 }
 0xe25   : > { %5287 = vrot.lane.b32.xlu1 %v5271_v34, %s5760_s11 }
 0xe27   : > { %5307 = vrot.lane.b32.xlu0 %v5291_v36, %s5760_s11 }
 0xe2b   : > { %5317 = vrot.lane.b32.xlu0 %v5316_v21, %s5761_s12 }
 0xe2f   : > { %5322 = vrot.lane.b32.xlu0 %v5316_v21, %s5762_s13 }
 0xe33   : > { %5327 = vrot.lane.b32.xlu0 %v5316_v21, %s5763_s14 }
 0xe37   : > { %5332 = vrot.lane.b32.xlu0 %v5316_v21, %s5760_s11 }
 0xe8b   : > { %v5273_v4 = vpop.permute.xlu1 %5272 }
 0xe8c   : > { %v5275_v42 = vunpack.i.h.bf16 %v5273_v4  ;;  %v5274_v48 = vunpack.i.l.bf16 %v5273_v4 }
 0xe8d   : > { %v5293_v6 = vpop.permute.xlu0 %5292 }
 0xe8e   : > { %v5295_v44 = vunpack.i.h.bf16 %v5293_v6  ;;  %v5294_v28 = vunpack.i.l.bf16 %v5293_v6  ;;  %v3008_v49 = vsel %vm404_vm1, %v5274_v48, %v5275_v42 }
 0xe8f   : > { %v5278_v45 = vpop.permute.xlu1 %5277 }
 0xe90   : > { %v3059_v50 = vpack.c.bf16 %v5295_v44, %v5275_v42  ;;  %v3009_v52 = vsel %vm404_vm1, %v5294_v28, %v5295_v44  ;;  %v5280_v54 = vunpack.i.h.bf16 %v5278_v45  ;;  %v5279_v46 = vunpack.i.l.bf16 %v5278_v45 }
 0xe91   : > { %v3058_v53 = vpack.c.bf16 %v3009_v52, %v3008_v49  ;;  %v5298_v55 = vpop.permute.xlu0 %5297 }
 0xe92   : > { %v5300_v56 = vunpack.i.h.bf16 %v5298_v55  ;;  %v5299_v57 = vunpack.i.l.bf16 %v5298_v55  ;;  %3071 = vmatprep.subr.bf16.mxu0 %v3059_v50  ;;  %v3022_v58 = vsel %vm427_vm2, %v5279_v46, %v5280_v54 }
 0xe93   : > { %v5283_v59 = vpop.permute.xlu1 %5282  ;;  %3072 = vmatpush1.bf16.msra.mxu0 %v3058_v53 }
 0xe94   : > { %v3061_v62 = vpack.c.bf16 %v5300_v56, %v5280_v54  ;;  %v3023_v63 = vsel %vm427_vm2, %v5299_v57, %v5300_v56  ;;  %v5285_v0 = vunpack.i.h.bf16 %v5283_v59  ;;  %v5284_v60 = vunpack.i.l.bf16 %v5283_v59 }
 0xe95   : > { %v3060_v1 = vpack.c.bf16 %v3023_v63, %v3022_v58  ;;  %v5303_v5 = vpop.permute.xlu0 %5302 }
 0xe96   : > { %v5305_v8 = vunpack.i.h.bf16 %v5303_v5  ;;  %v5304_v11 = vunpack.i.l.bf16 %v5303_v5  ;;  %3073 = vmatprep.subr.bf16.mxu0 %v3061_v62  ;;  %v3036_v13 = vsel %vm449_vm4, %v5284_v60, %v5285_v0 }
 0xe97   : > { %v5288_v16 = vpop.permute.xlu1 %5287  ;;  %3074 = vmatpush1.bf16.msra.mxu0 %v3060_v1 }
 0xe98   : > { %v3063_v17 = vpack.c.bf16 %v5305_v8, %v5285_v0  ;;  %v3037_v10 = vsel %vm449_vm4, %v5304_v11, %v5305_v8  ;;  %v5290_v7 = vunpack.i.h.bf16 %v5288_v16  ;;  %v5289_v20 = vunpack.i.l.bf16 %v5288_v16 }
 0xe99   : > { %v3062_v22 = vpack.c.bf16 %v3037_v10, %v3036_v13  ;;  %v5308_v19 = vpop.permute.xlu0 %5307 }
 0xe9a   : > { %v5310_v3 = vunpack.i.h.bf16 %v5308_v19  ;;  %v5309_v23 = vunpack.i.l.bf16 %v5308_v19  ;;  %3075 = vmatprep.subr.bf16.mxu0 %v3063_v17  ;;  %v3050_v47 = vsel %vm469_vm5, %v5289_v20, %v5290_v7 }
 0xe9b   : > { %3076 = vmatpush1.bf16.msra.mxu0 %v3062_v22 }
 0xe9c   : > { %v3065_v25 = vpack.c.bf16 %v5310_v3, %v5290_v7  ;;  %v3051_v26 = vsel %vm469_vm5, %v5309_v23, %v5310_v3 }
 0xe9d   : > { %v3064_v27 = vpack.c.bf16 %v3051_v26, %v3050_v47  ;;  %v5318_v44 = vpop.permute.xlu0 %5317 }
 0xe9e   : > { %3077 = vmatprep.subr.bf16.mxu0 %v3065_v25  ;;  %v5320_v49 = vunpack.i.h.bf16 %v5318_v44 }
 0xe9f   : > { %3078 = vmatpush1.bf16.msra.mxu0 %v3064_v27 }
 0xea0   : > { %3079 = vmatprep.subr.bf16.mxu0 %v6489_v43 }
 0xea1   : > { %v5323_v28 = vpop.permute.xlu0 %5322 }
 0xea2   : > { %v5325_v53 = vunpack.i.h.bf16 %v5323_v28  ;;  %v5324_v55 = vunpack.i.l.bf16 %v5323_v28  ;;  %v5701_v28 = vld [vmem:[%s7046_s7 + $0xc4] ss:$16 sps:$4 sm:$0xff]  }
 0xea3   : > { %3080 = vmatpush1.bf16.msra.mxu0 %v6489_v43 }
 0xea4   : > { %v3158_v1 = vsel %vm427_vm2, %v5324_v55, %v5325_v53  ;;  %v5723_v55 = vld [vmem:[%s7046_s7 + $0x140] ss:$16 sps:$4 sm:$0xff]  }
 0xea5   : > { %v5328_v54 = vpop.permute.xlu0 %5327 }
 0xea6   : > { %4766 = vmatmul.mubr.msk.bf16.vlgmr.msra.gmra.mrb[52].mxu0 %vm2396_vm3, %v2995_v30  ;;  %v5330_v63 = vunpack.i.h.bf16 %v5328_v54  ;;  %v5329_v0 = vunpack.i.l.bf16 %v5328_v54  ;;  %v5719_v54 = vld [vmem:[%s7046_s7 + $0x124] ss:$16 sps:$4 sm:$0xff]  }
 0xea8   : > { %v3172_v10 = vsel %vm449_vm4, %v5329_v0, %v5330_v63 }
 0xea9   : > { %v5333_v8 = vpop.permute.xlu0 %5332 }
 0xeaa   : > { %v5335_v7 = vunpack.i.h.bf16 %v5333_v8  ;;  %v5334_v20 = vunpack.i.l.bf16 %v5333_v8 }
 0xeac   : > { %v3186_v27 = vsel %vm469_vm5, %v5334_v20, %v5335_v7  ;;  %v5668_v20 = vld [vmem:[%s7046_s7 + $0xc] ss:$16 sps:$4 sm:$0xff]  }
 0xf79   : > { %v3103_v18 = vpop.f32.mrb[52].mxu0 }
 0xf7a   : > { %vm3110_vm7 = vcmp.ge.f32.partialorder %v3103_v18, 0.0  ;;  %v3112_v32 = vmul.f32 0.01, %v3103_v18  ;;  %v3105_v33 = vpop.f32.mrb[53].mxu0 }
 0xf7b   : > { %vm3111_vm8 = vcmp.ge.f32.partialorder %v3105_v33, 0.0  ;;  %v3113_v37 = vmul.f32 0.01, %v3105_v33  ;;  %v3107_v34 = vpop.f32.mrb[54].mxu0 }
 0xf7c   : > { %v3114_v35 = vsel %vm3110_vm7, %v3103_v18, %v3112_v32  ;;  %v3108_v38 = vpop.f32.mrb[55].mxu0  ;;  %v5665_v18 = vld [vmem:[%s7046_s7 + $0x4] ss:$16 sps:$4 sm:$0xff]   ;;  %v5663_v34 = vld [vmem:[%s7046_s7] ss:$16 sps:$4 sm:$0xff]  }
 0xf7d   : > { %v3115_v36 = vsel %vm3111_vm8, %v3105_v33, %v3113_v37  ;;  %v5671_v38 = vld [vmem:[%s7046_s7 + $0x24] ss:$16 sps:$4 sm:$0xff]   ;;  %3670 = vmatprep.subr.bf16.mxu0 %v5665_v18  ;;  %v5690_v18 = vld [vmem:[%s7046_s7 + $0x88] ss:$16 sps:$4 sm:$0xff]  }
 0xf7e   : > { %v5311_v39 = vpack.i.bf16 %v3115_v36, %v3114_v35  ;;  %3671 = vmatpush1.bf16.msra.mxu0 %v5663_v34  ;;  %v5669_v36 = vld [vmem:[%s7046_s7 + $0x20] ss:$16 sps:$4 sm:$0xff]   ;;  %v5702_v34 = vld [vmem:[%s7046_s7 + $0xc8] ss:$16 sps:$4 sm:$0xff]  }
 0xf7f   : > { %3672 = vmatprep.subr.bf16.mxu0 %v5671_v38  ;;  %v5708_v38 = vld [vmem:[%s7046_s7 + $0xe8] ss:$16 sps:$4 sm:$0xff]  }
 0xf80   : > { %5312 = vrot.lane.b32.xlu1 %v5311_v39, %s5769_s29  ;;  %v5677_v39 = vld [vmem:[%s7046_s7 + $0x44] ss:$16 sps:$4 sm:$0xff]  }
 0xf82   : > { %3673 = vmatpush1.bf16.msra.mxu0 %v5669_v36  ;;  %v5716_v36 = vld [vmem:[%s7046_s7 + $0x10c] ss:$16 sps:$4 sm:$0xff]  }
 0xf83   : > { %3674 = vmatprep.subr.bf16.mxu0 %v5677_v39  ;;  %v5714_v39 = vld [vmem:[%s7046_s7 + $0x108] ss:$16 sps:$4 sm:$0xff]  }
 0xff2   : > { %v5313_v43 = vpop.permute.xlu1 %5312 }
 0xff3   : > { %v5315_v40 = vunpack.i.h.bf16 %v5313_v43  ;;  %v5314_v21 = vunpack.i.l.bf16 %v5313_v43  ;;  %v5771_v43 = vmov 1.0|1.0  }
 0xff5   : > { %v3130_v4 = vsel %vm3129_vm10, %v5314_v21, %v5315_v40  ;;  %v3192_v42 = vpack.c.bf16 %v5314_v21, %v6641_v12  ;;  %v5319_v12 = vunpack.i.l.bf16 %v5318_v44  ;;  %v5675_v40 = vld [vmem:[%s7046_s7 + $0x40] ss:$16 sps:$4 sm:$0xff]  }
 0xff6   : > { %v5336_v48 = vpack.i.bf16 %v3130_v4, %v5314_v21  ;;  %v3193_v6 = vpack.c.bf16 %v3130_v4, %v6644_v41  ;;  %v5683_v21 = vld [vmem:[%s7046_s7 + $0x64] ss:$16 sps:$4 sm:$0xff]   ;;  %3675 = vmatpush1.bf16.msra.mxu0 %v5675_v40  ;;  %v5681_v4 = vld [vmem:[%s7046_s7 + $0x60] ss:$16 sps:$4 sm:$0xff]   ;;  %v5720_v40 = vld [vmem:[%s7046_s7 + $0x128] ss:$16 sps:$4 sm:$0xff]  }
 0xff7   : > { %3213 = vrot.lane.b32.xlu0 %v3192_v42, %s5770_s30  ;;  %v3144_v46 = vsel %vm404_vm1, %v5319_v12, %v5320_v49  ;;  %3676 = vmatprep.subr.bf16.mxu0 %v5683_v21  ;;  %v5689_v42 = vld [vmem:[%s7046_s7 + $0x84] ss:$16 sps:$4 sm:$0xff]   ;;  %v5693_v44 = vld [vmem:[%s7046_s7 + $0xa0] ss:$16 sps:$4 sm:$0xff]   ;;  %v5728_v21 = vld [vmem:[%s7046_s7 + $0x14c] ss:$16 sps:$4 sm:$0xff]  }
 0xff8   : > { %5337 = vrot.lane.b32.xlu1 %v5336_v48, %s5761_s12  ;;  %v5707_v12 = vld [vmem:[%s7046_s7 + $0xe4] ss:$16 sps:$4 sm:$0xff]  }
 0xffa   : > { %3677 = vmatpush1.bf16.msra.mxu0 %v5681_v4  ;;  %v5726_v4 = vld [vmem:[%s7046_s7 + $0x148] ss:$16 sps:$4 sm:$0xff]  }
 0xffb   : > { %3678 = vmatprep.subr.bf16.mxu0 %v5689_v42  ;;  %v5734_v42 = vld [vmem:[%s7046_s7 + $0x16c] ss:$16 sps:$4 sm:$0xff]  }
 0xffc   : > { %5342 = vrot.lane.b32.xlu1 %v5336_v48, %s5762_s13 }
0x1000   : > { %5347 = vrot.lane.b32.xlu1 %v5336_v48, %s5763_s14 }
0x1004   : > { %5352 = vrot.lane.b32.xlu1 %v5336_v48, %s5760_s11  ;;  %v5687_v48 = vld [vmem:[%s7046_s7 + $0x80] ss:$16 sps:$4 sm:$0xff]  }
0x1005   : > { %3679 = vmatpush1.bf16.msra.mxu0 %v5687_v48  ;;  %v5732_v48 = vld [vmem:[%s7046_s7 + $0x168] ss:$16 sps:$4 sm:$0xff]  }
0x1008   : > { %3215 = vrot.lane.b32.xlu1 %v3193_v6, %s5770_s30  ;;  %v5695_v6 = vld [vmem:[%s7046_s7 + $0xa4] ss:$16 sps:$4 sm:$0xff]  }
0x1009   : > { %3680 = vmatprep.subr.bf16.mxu0 %v5695_v6  ;;  %v5740_v6 = vld [vmem:[%s7046_s7 + $0x18c] ss:$16 sps:$4 sm:$0xff]  }
0x100a   : > { %3681 = vmatpush1.bf16.msra.mxu0 %v5693_v44  ;;  %v5738_v44 = vld [vmem:[%s7046_s7 + $0x188] ss:$16 sps:$4 sm:$0xff]  }
0x100b   : > { %3682 = vmatprep.subr.bf16.mxu0 %v5701_v28  ;;  %v5743_v28 = vld [vmem:[%s7046_s7 + $0x1a4] ss:$16 sps:$4 sm:$0xff]  }
0x1069   : > { %v3214_v32 = vpop.permute.xlu0 %3213 }
0x106a   : > { %v5338_v45 = vpop.permute.xlu1 %5337 }
0x106b   : > { %v5340_v50 = vunpack.i.h.bf16 %v5338_v45  ;;  %v5339_v52 = vunpack.i.l.bf16 %v5338_v45  ;;  %v5705_v45 = vld [vmem:[%s7046_s7 + $0xe0] ss:$16 sps:$4 sm:$0xff]  }
0x106d   : > { %v3195_v56 = vpack.c.bf16 %v5340_v50, %v5320_v49  ;;  %v3145_v57 = vsel %vm404_vm1, %v5339_v52, %v5340_v50  ;;  %v5699_v49 = vld [vmem:[%s7046_s7 + $0xc0] ss:$16 sps:$4 sm:$0xff]   ;;  %v5713_v50 = vld [vmem:[%s7046_s7 + $0x104] ss:$16 sps:$4 sm:$0xff]  }
0x106e   : > { %v5343_v58 = vpop.permute.xlu1 %5342  ;;  %v3194_v59 = vpack.c.bf16 %v3145_v57, %v3144_v46  ;;  %3683 = vmatpush1.bf16.msra.mxu0 %v5699_v49  ;;  %v5711_v52 = vld [vmem:[%s7046_s7 + $0x100] ss:$16 sps:$4 sm:$0xff]   ;;  %v5746_v49 = vld [vmem:[%s7046_s7 + $0x1ac] ss:$16 sps:$4 sm:$0xff]  }
0x106f   : > { %v5345_v41 = vunpack.i.h.bf16 %v5343_v58  ;;  %v5344_v62 = vunpack.i.l.bf16 %v5343_v58  ;;  %3219 = vrot.lane.b32.xlu1 %v3195_v56, %s5770_s30  ;;  %3684 = vmatprep.subr.bf16.mxu0 %v5707_v12  ;;  %v5717_v46 = vld [vmem:[%s7046_s7 + $0x120] ss:$16 sps:$4 sm:$0xff]   ;;  %v5731_v56 = vld [vmem:[%s7046_s7 + $0x164] ss:$16 sps:$4 sm:$0xff]  }
0x1070   : > { %3217 = vrot.lane.b32.xlu0 %v3194_v59, %s5770_s30  ;;  %v5729_v57 = vld [vmem:[%s7046_s7 + $0x160] ss:$16 sps:$4 sm:$0xff]   ;;  %v5737_v58 = vld [vmem:[%s7046_s7 + $0x184] ss:$16 sps:$4 sm:$0xff]  }
0x1071   : > { %v3197_v60 = vpack.c.bf16 %v5345_v41, %v5325_v53  ;;  %v3159_v5 = vsel %vm427_vm2, %v5344_v62, %v5345_v41  ;;  %v5725_v53 = vld [vmem:[%s7046_s7 + $0x144] ss:$16 sps:$4 sm:$0xff]   ;;  %v5735_v59 = vld [vmem:[%s7046_s7 + $0x180] ss:$16 sps:$4 sm:$0xff]  }
0x1072   : > { %v5348_v11 = vpop.permute.xlu1 %5347  ;;  %v3196_v13 = vpack.c.bf16 %v3159_v5, %v3158_v1  ;;  %3685 = vmatpush1.bf16.msra.mxu0 %v5705_v45  ;;  %v5741_v12 = vld [vmem:[%s7046_s7 + $0x1a0] ss:$16 sps:$4 sm:$0xff]   ;;  %v5744_v45 = vld [vmem:[%s7046_s7 + $0x1a8] ss:$16 sps:$4 sm:$0xff]  }
0x1073   : > { %v5350_v16 = vunpack.i.h.bf16 %v5348_v11  ;;  %v5349_v17 = vunpack.i.l.bf16 %v5348_v11  ;;  %3223 = vrot.lane.b32.xlu1 %v3197_v60, %s5770_s30  ;;  %3686 = vmatprep.subr.bf16.mxu0 %v5713_v50  ;;  %v3362_v50 = vld [vmem:[%s7046_s7 + $0x1c0] sm:$0x11] }
0x1074   : > { %3221 = vrot.lane.b32.xlu0 %v3196_v13, %s5770_s30 }
0x1075   : > { %v3199_v22 = vpack.c.bf16 %v5350_v16, %v5330_v63  ;;  %v3173_v19 = vsel %vm449_vm4, %v5349_v17, %v5350_v16 }
0x1076   : > { %v5353_v3 = vpop.permute.xlu1 %5352  ;;  %v3198_v23 = vpack.c.bf16 %v3173_v19, %v3172_v10  ;;  %3687 = vmatpush1.bf16.msra.mxu0 %v5711_v52  ;;  %v5666_v19 = vld [vmem:[%s7046_s7 + $0x8] ss:$16 sps:$4 sm:$0xff]   ;;  %v4825_v52 = vcombine.high %v3362_v50, %v3362_v50 }
0x1077   : > { %v5355_v47 = vunpack.i.h.bf16 %v5353_v3  ;;  %v5354_v25 = vunpack.i.l.bf16 %v5353_v3  ;;  %3227 = vrot.lane.b32.xlu1 %v3199_v22, %s5770_s30  ;;  %3688 = vmatprep.subr.bf16.mxu0 %v5719_v54  ;;  %v3133_v22 = vld [vmem:[%s7042_s3 + $0x48] sm:$0xf]  ;;  %v5674_v3 = vld [vmem:[%s7046_s7 + $0x2c] ss:$16 sps:$4 sm:$0xff]  }
0x1078   : > { %3225 = vrot.lane.b32.xlu0 %v3198_v23, %s5770_s30  ;;  %v5672_v23 = vld [vmem:[%s7046_s7 + $0x28] ss:$16 sps:$4 sm:$0xff]  }
0x1079   : > { %v3201_v26 = vpack.c.bf16 %v5355_v47, %v5335_v7  ;;  %v3187_v30 = vsel %vm469_vm5, %v5354_v25, %v5355_v47  ;;  %v5680_v47 = vld [vmem:[%s7046_s7 + $0x4c] ss:$16 sps:$4 sm:$0xff]   ;;  %v5678_v25 = vld [vmem:[%s7046_s7 + $0x48] ss:$16 sps:$4 sm:$0xff]  }
0x107a   : > { %v3216_v33 = vpop.permute.xlu1 %3215  ;;  %v3200_v37 = vpack.c.bf16 %v3187_v30, %v3186_v27  ;;  %3689 = vmatpush1.bf16.msra.mxu0 %v5717_v46  ;;  %v5684_v27 = vld [vmem:[%s7046_s7 + $0x68] ss:$16 sps:$4 sm:$0xff]   ;;  %v5692_v30 = vld [vmem:[%s7046_s7 + $0x8c] ss:$16 sps:$4 sm:$0xff]   ;;  %v4824_v46 = vcombine.low %v3362_v50, %v3362_v50 }
0x107b   : > { %v3236_v35 = vsel %vm3235_vm11, %v3214_v32, %v3216_v33  ;;  %3231 = vrot.lane.b32.xlu1 %v3201_v26, %s5770_s30  ;;  %3257 = vmatprep.subr.bf16.mxu1 %v3216_v33  ;;  %v5686_v26 = vld [vmem:[%s7046_s7 + $0x6c] ss:$16 sps:$4 sm:$0xff]   ;;  %v5696_v33 = vld [vmem:[%s7046_s7 + $0xa8] ss:$16 sps:$4 sm:$0xff]  }
0x107c   : > { %3229 = vrot.lane.b32.xlu0 %v3200_v37, %s5770_s30  ;;  %3258 = vmatpush1.bf16.msra.mxu1 %v3236_v35  ;;  %v5698_v32 = vld [vmem:[%s7046_s7 + $0xac] ss:$16 sps:$4 sm:$0xff]  }
0x107d   : > { %3690 = vmatprep.subr.bf16.mxu0 %v5725_v53  ;;  %v5704_v37 = vld [vmem:[%s7046_s7 + $0xcc] ss:$16 sps:$4 sm:$0xff]  }
0x107e   : > { %3691 = vmatpush1.bf16.msra.mxu0 %v5723_v55  ;;  %v5710_v35 = vld [vmem:[%s7046_s7 + $0xec] ss:$16 sps:$4 sm:$0xff]  }
0x107f   : > { %3692 = vmatprep.subr.bf16.mxu0 %v5731_v56  ;;  %v3363_v54 = vld [vmem:[%s7046_s7 + $0x1c8] sm:$0x11]  ;;  %v3662_v56 = vand.u32 %v4825_v52, %v6361_v31 }
0x1080   : > { %3233 = vrot.lane.b32.xlu0 %v5771_v43, %s5770_s30  ;;  %v5722_v43 = vld [vmem:[%s7046_s7 + $0x12c] ss:$16 sps:$4 sm:$0xff]   ;;  %v4826_v53 = vcombine.low %v3363_v54, %v3363_v54  ;;  %v4827_v55 = vcombine.high %v3363_v54, %v3363_v54 }
0x1082   : > { %3693 = vmatpush1.bf16.msra.mxu0 %v5729_v57  ;;  %v3668_v57 = vand.u32 %v4827_v55, %v6361_v31 }
0x1083   : > { %3694 = vmatprep.subr.bf16.mxu0 %v5737_v58  ;;  %v3659_v58 = vand.u32 %v4824_v46, %v6361_v31 }
0x1086   : > { %3695 = vmatpush1.bf16.msra.mxu0 %v5735_v59  ;;  %v3665_v59 = vand.u32 %v4826_v53, %v6361_v31 }
0x1087   : > { %3696 = vmatprep.subr.bf16.mxu0 %v5743_v28 }
0x108a   : > { %3697 = vmatpush1.bf16.msra.mxu0 %v5741_v12 }
0x108b   : > { %3698 = vmatprep.subr.bf16.mxu0 %v3662_v56 }
0x108e   : > { %3699 = vmatpush1.bf16.msra.mxu0 %v3659_v58 }
0x10e1   : > { %v3220_v41 = vpop.permute.xlu1 %3219 }
0x10e2   : > { %v3218_v62 = vpop.permute.xlu0 %3217  ;;  %3259 = vmatprep.subr.bf16.mxu1 %v3220_v41 }
0x10e3   : > { %v3237_v63 = vsel %vm3235_vm11, %v3218_v62, %v3220_v41 }
0x10e4   : > { %3260 = vmatpush1.bf16.msra.mxu1 %v3237_v63 }
0x10e5   : > { %v3224_v0 = vpop.permute.xlu1 %3223 }
0x10e6   : > { %v3222_v60 = vpop.permute.xlu0 %3221  ;;  %3261 = vmatprep.subr.bf16.mxu1 %v3224_v0 }
0x10e7   : > { %v3238_v1 = vsel %vm3235_vm11, %v3222_v60, %v3224_v0 }
0x10e8   : > { %3262 = vmatpush1.bf16.msra.mxu1 %v3238_v1 }
0x10e9   : > { %v3228_v5 = vpop.permute.xlu1 %3227 }
0x10ea   : > { %v3226_v8 = vpop.permute.xlu0 %3225  ;;  %3263 = vmatprep.subr.bf16.mxu1 %v3228_v5 }
0x10eb   : > { %v3239_v11 = vsel %vm3235_vm11, %v3226_v8, %v3228_v5 }
0x10ec   : > { %3264 = vmatpush1.bf16.msra.mxu1 %v3239_v11 }
0x10ed   : > { %v3232_v13 = vpop.permute.xlu1 %3231 }
0x10ee   : > { %v3230_v16 = vpop.permute.xlu0 %3229  ;;  %3265 = vmatprep.subr.bf16.mxu1 %v3232_v13 }
0x10ef   : > { %v3240_v17 = vsel %vm3235_vm11, %v3230_v16, %v3232_v13 }
0x10f0   : > { %3266 = vmatpush1.bf16.msra.mxu1 %v3240_v17 }
0x10f2   : > { %v3234_v10 = vpop.permute.xlu0 %3233 }
0x10f3   : > { %v3255_v7 = vand.u32 %v3234_v10, %v6361_v31 }
0x10f5   : > { %3267 = vmatprep.subr.bf16.mxu1 %v3255_v7 }
0x10f6   : > { %3268 = vmatpush1.bf16.msra.mxu1 %v3255_v7 }
0x10f7   : > { %3711 = vmatprep.subr.bf16.mxu1 %v5668_v20 }
0x10f9   : > { %4767 = vmatmul.mubr.msk.bf16.vlgmr.msra.gmra.mrb[28].mxu1 %vm2396_vm3, %v3133_v22 }
0x10fa   : > { %3712 = vmatpush1.bf16.msra.mxu1 %v5666_v19 }
0x10fb   : > { %3713 = vmatprep.subr.bf16.mxu1 %v5674_v3 }
0x10fe   : > { %3714 = vmatpush1.bf16.msra.mxu1 %v5672_v23 }
0x10ff   : > { %3715 = vmatprep.subr.bf16.mxu1 %v5680_v47 }
0x1102   : > { %3716 = vmatpush1.bf16.msra.mxu1 %v5678_v25 }
0x1103   : > { %3717 = vmatprep.subr.bf16.mxu1 %v5686_v26 }
0x1106   : > { %3718 = vmatpush1.bf16.msra.mxu1 %v5684_v27 }
0x1107   : > { %3719 = vmatprep.subr.bf16.mxu1 %v5692_v30 }
0x110a   : > { %3720 = vmatpush1.bf16.msra.mxu1 %v5690_v18 }
0x110b   : > { %3721 = vmatprep.subr.bf16.mxu1 %v5698_v32 }
0x110e   : > { %3722 = vmatpush1.bf16.msra.mxu1 %v5696_v33 }
0x110f   : > { %3723 = vmatprep.subr.bf16.mxu1 %v5704_v37 }
0x1112   : > { %3724 = vmatpush1.bf16.msra.mxu1 %v5702_v34 }
0x1113   : > { %3725 = vmatprep.subr.bf16.mxu1 %v5710_v35 }
0x1116   : > { %3726 = vmatpush1.bf16.msra.mxu1 %v5708_v38 }
0x1117   : > { %3727 = vmatprep.subr.bf16.mxu1 %v5716_v36 }
0x111a   : > { %3728 = vmatpush1.bf16.msra.mxu1 %v5714_v39 }
0x111b   : > { %3729 = vmatprep.subr.bf16.mxu1 %v5722_v43 }
0x111e   : > { %3730 = vmatpush1.bf16.msra.mxu1 %v5720_v40 }
0x111f   : > { %3731 = vmatprep.subr.bf16.mxu1 %v5728_v21 }
0x1122   : > { %3732 = vmatpush1.bf16.msra.mxu1 %v5726_v4 }
0x1123   : > { %3733 = vmatprep.subr.bf16.mxu1 %v5734_v42 }
0x1126   : > { %3734 = vmatpush1.bf16.msra.mxu1 %v5732_v48 }
0x1127   : > { %3735 = vmatprep.subr.bf16.mxu1 %v5740_v6 }
0x112a   : > { %3736 = vmatpush1.bf16.msra.mxu1 %v5738_v44 }
0x112b   : > { %3737 = vmatprep.subr.bf16.mxu1 %v5746_v49 }
0x112e   : > { %3738 = vmatpush1.bf16.msra.mxu1 %v5744_v45 }
0x112f   : > { %3739 = vmatprep.subr.bf16.mxu1 %v3668_v57 }
0x1132   : > { %3740 = vmatpush1.bf16.msra.mxu1 %v3665_v59 }
0x11cc   : > { %v3291_v41 = vpop.f32.mrb[28].mxu1 }
0x11cd   : > { %vm3298_vm3 = vcmp.ge.f32.partialorder %v3291_v41, 0.0  ;;  %v3300_v62 = vmul.f32 0.01, %v3291_v41  ;;  %v3293_v63 = vpop.f32.mrb[29].mxu1 }
0x11ce   : > { %vm3299_vm12 = vcmp.ge.f32.partialorder %v3293_v63, 0.0  ;;  %v3301_v0 = vmul.f32 0.01, %v3293_v63  ;;  %v3295_v60 = vpop.f32.mrb[30].mxu1 }
0x11cf   : > { %v3302_v1 = vsel %vm3298_vm3, %v3291_v41, %v3300_v62  ;;  %v3296_v5 = vpop.f32.mrb[31].mxu1 }
0x11d0   : > { %v3303_v8 = vsel %vm3299_vm12, %v3293_v63, %v3301_v0  ;;  %v3304_v13 = vpack.c.bf16 %v3302_v1, %v3302_v1  ;;  %vm4147_vm12 = vcmask 326656  }
0x11d1   : > { %v3305_v11 = vpack.c.bf16 %v3303_v8, %v3303_v8 }
0x11d3   : > { %4828 = vmatprep.mubr.msk.bf16.mxu0 %vm3654_vm15, %v3305_v11  ;;  %4829 = vmatprep.mubr.msk.bf16.mxu1 %vm3654_vm15, %v3305_v11 }
0x11d4   : > { %3703 = vmatmul.mubr.bf16.vlgmr.msra.gmra.mrb[56].mxu0 %v3304_v13  ;;  %3744 = vmatmul.mubr.bf16.vlgmr.msra.gmra.mrb[32].mxu1 %v3304_v13 }
0x11d5   : > { %3917 = vmatprep.mubr.bf16.mxu1 %v5764_v29  ;;  %3876 = vmatprep.mubr.bf16.mxu0 %v5764_v29 }
0x12a7   : > { %v3704_v31 = vpop.f32.mrb[56].mxu0  ;;  %v3745_v16 = vpop.f32.mrb[32].mxu1 }
0x12a8   : > { %v3706_v17 = vpop.f32.mrb[57].mxu0  ;;  %v3747_v10 = vpop.f32.mrb[33].mxu1 }
0x12a9   : > { %v3708_v7 = vpop.f32.mrb[58].mxu0  ;;  %v3749_v20 = vpop.f32.mrb[34].mxu1  ;;  %v5361_v22 = vpack.i.bf16 %v3747_v10, %v3704_v31  ;;  %v5356_v19 = vpack.i.bf16 %v3745_v16, %v3706_v17 }
0x12aa   : > { %v3709_v3 = vpop.f32.mrb[59].mxu0  ;;  %v3750_v23 = vpop.f32.mrb[35].mxu1 }
0x12ab   : > { %5362 = vrot.lane.b32.xlu0 %v5361_v22, %s5761_s12  ;;  %5357 = vrot.lane.b32.xlu1 %v5356_v19, %s5761_s12 }
0x12af   : > { %5372 = vrot.lane.b32.xlu0 %v5356_v19, %s5763_s14  ;;  %5367 = vrot.lane.b32.xlu1 %v5356_v19, %s5762_s13 }
0x12b3   : > { %5382 = vrot.lane.b32.xlu0 %v5361_v22, %s5763_s14  ;;  %5377 = vrot.lane.b32.xlu1 %v5361_v22, %s5762_s13 }
0x12b7   : > { %5392 = vrot.lane.b32.xlu0 %v5361_v22, %s5760_s11  ;;  %5387 = vrot.lane.b32.xlu1 %v5356_v19, %s5760_s11  ;;  %v3752_v22 = vld [vmem:[%s7042_s3 + $0x50] sm:$0xf] }
0x131d   : > { %v5363_v47 = vpop.permute.xlu0 %5362  ;;  %v5358_v25 = vpop.permute.xlu1 %5357 }
0x131e   : > { %v5365_v26 = vunpack.i.h.bf16 %v5363_v47  ;;  %v5364_v27 = vunpack.i.l.bf16 %v5363_v47  ;;  %v5360_v30 = vunpack.i.h.bf16 %v5358_v25  ;;  %v5359_v18 = vunpack.i.l.bf16 %v5358_v25 }
0x1320   : > { %v3820_v32 = vpack.c.bf16 %v5365_v26, %v3747_v10  ;;  %v3767_v33 = vsel %vm404_vm1, %v5360_v30, %v5365_v26  ;;  %v3765_v37 = vsel %vm404_vm1, %v5364_v27, %v5359_v18  ;;  %v3766_v34 = vsel %vm404_vm1, %v5359_v18, %v5360_v30 }
0x1321   : > { %v3819_v35 = vpack.c.bf16 %v3767_v33, %v3745_v16  ;;  %v3817_v38 = vpack.c.bf16 %v3765_v37, %v3704_v31  ;;  %v5373_v36 = vpop.permute.xlu0 %5372  ;;  %v5368_v39 = vpop.permute.xlu1 %5367  ;;  %v3818_v43 = vpack.c.bf16 %v3766_v34, %v3706_v17 }
0x1322   : > { %v5375_v40 = vunpack.i.h.bf16 %v5373_v36  ;;  %v5374_v21 = vunpack.i.l.bf16 %v5373_v36  ;;  %v5370_v4 = vunpack.i.h.bf16 %v5368_v39  ;;  %v5369_v42 = vunpack.i.l.bf16 %v5368_v39  ;;  %3885 = vmatprep.subr.bf16.mxu1 %v3820_v32 }
0x1323   : > { %3844 = vmatprep.subr.bf16.mxu0 %v3818_v43  ;;  %3886 = vmatpush1.bf16.msra.mxu1 %v3819_v35 }
0x1324   : > { %3845 = vmatpush1.bf16.msra.mxu0 %v3817_v38  ;;  %v3781_v48 = vsel %vm427_vm2, %v5369_v42, %v5370_v4  ;;  %v3796_v6 = vsel %vm449_vm4, %v5374_v21, %v5375_v40 }
0x1325   : > { %v5383_v44 = vpop.permute.xlu0 %5382  ;;  %v5378_v28 = vpop.permute.xlu1 %5377  ;;  %v3822_v49 = vpack.c.bf16 %v3796_v6, %v3781_v48 }
0x1326   : > { %v5385_v12 = vunpack.i.h.bf16 %v5383_v44  ;;  %v5384_v45 = vunpack.i.l.bf16 %v5383_v44  ;;  %v5380_v50 = vunpack.i.h.bf16 %v5378_v28  ;;  %v5379_v52 = vunpack.i.l.bf16 %v5378_v28 }
0x1327   : > { %3846 = vmatprep.subr.bf16.mxu0 %v3822_v49 }
0x1328   : > { %v3795_v54 = vsel %vm449_vm4, %v5384_v45, %v5374_v21  ;;  %v3797_v46 = vsel %vm449_vm4, %v5375_v40, %v5385_v12  ;;  %v3824_v53 = vpack.c.bf16 %v5385_v12, %v5380_v50  ;;  %v3780_v55 = vsel %vm427_vm2, %v5379_v52, %v5369_v42 }
0x1329   : > { %v3782_v56 = vsel %vm427_vm2, %v5370_v4, %v5380_v50  ;;  %v3821_v57 = vpack.c.bf16 %v3795_v54, %v3780_v55  ;;  %v5393_v58 = vpop.permute.xlu0 %5392  ;;  %v5388_v59 = vpop.permute.xlu1 %5387 }
0x132a   : > { %v3823_v41 = vpack.c.bf16 %v3797_v46, %v3782_v56  ;;  %v5395_v62 = vunpack.i.h.bf16 %v5393_v58  ;;  %v5394_v63 = vunpack.i.l.bf16 %v5393_v58  ;;  %v5390_v0 = vunpack.i.h.bf16 %v5388_v59  ;;  %3887 = vmatprep.subr.bf16.mxu1 %v3824_v53 }
0x132b   : > { %v5389_v60 = vunpack.i.l.bf16 %v5388_v59  ;;  %3847 = vmatpush1.bf16.msra.mxu0 %v3821_v57 }
0x132c   : > { %v3828_v1 = vpack.c.bf16 %v5768_v24, %v5395_v62  ;;  %v3812_v5 = vsel %vm469_vm5, %v5390_v0, %v5395_v62  ;;  %3888 = vmatpush1.bf16.msra.mxu1 %v3823_v41 }
0x132d   : > { %v3827_v8 = vpack.c.bf16 %v5768_v24, %v3812_v5  ;;  %v3810_v11 = vsel %vm469_vm5, %v5394_v63, %v5389_v60  ;;  %v3811_v13 = vsel %vm469_vm5, %v5389_v60, %v5390_v0 }
0x132e   : > { %v3825_v31 = vpack.c.bf16 %v5768_v24, %v3810_v11  ;;  %v3842_v16 = vand.u32 %v3828_v1, %v6076_v51  ;;  %v3826_v17 = vpack.c.bf16 %v5768_v24, %v3811_v13 }
0x132f   : > { %v3839_v10 = vand.u32 %v3827_v8, %v6076_v51 }
0x1330   : > { %3889 = vmatprep.subr.bf16.mxu1 %v3842_v16  ;;  %v3836_v7 = vand.u32 %v3826_v17, %v6076_v51  ;;  %v3833_v20 = vand.u32 %v3825_v31, %v6076_v51 }
0x1331   : > { %3890 = vmatpush1.bf16.msra.mxu1 %v3839_v10 }
0x1332   : > { %3848 = vmatprep.subr.bf16.mxu0 %v3836_v7 }
0x1333   : > { %3849 = vmatpush1.bf16.msra.mxu0 %v3833_v20 }
0x1334   : > { %4831 = vmatmul.mubr.msk.bf16.vlgmr.msra.gmra.mrb[36].mxu1 %vm1034_vm0, %v3752_v22 }
0x1335   : > { %4103 = vmatprep.mubr.bf16.mxu1 %v5764_v29 }
0x1336   : > { %4830 = vmatmul.mubr.msk.bf16.vlgmr.msra.gmra.mrb[60].mxu0 %vm1034_vm0, %v3752_v22 }
0x1337   : > { %4062 = vmatprep.mubr.bf16.mxu0 %v5764_v29 }
0x1407   : > { %v3919_v19 = vpop.f32.mrb[36].mxu1 }
0x1408   : > { %v3921_v3 = vpop.f32.mrb[37].mxu1  ;;  %v3932_v37 = vmul.f32 0.01, %v3919_v19  ;;  %vm3928_vm7 = vcmp.ge.f32.partialorder %v3919_v19, 0.0 }
0x1409   : > { %v3878_v23 = vpop.f32.mrb[60].mxu0  ;;  %vm3929_vm13 = vcmp.ge.f32.partialorder %v3921_v3, 0.0  ;;  %v3933_v47 = vmul.f32 0.01, %v3921_v3  ;;  %v3923_v25 = vpop.f32.mrb[38].mxu1 }
0x140a   : > { %vm3926_vm14 = vcmp.ge.f32.partialorder %v3878_v23, 0.0  ;;  %v3930_v26 = vmul.f32 0.01, %v3878_v23  ;;  %v3880_v27 = vpop.f32.mrb[61].mxu0  ;;  %v3924_v30 = vpop.f32.mrb[39].mxu1  ;;  %v3936_v39 = vsel %vm3928_vm7, %v3919_v19, %v3932_v37 }
0x140b   : > { %v3937_v18 = vsel %vm3929_vm13, %v3921_v3, %v3933_v47  ;;  %vm3927_vm9 = vcmp.ge.f32.partialorder %v3880_v27, 0.0  ;;  %v3931_v32 = vmul.f32 0.01, %v3880_v27  ;;  %v3882_v33 = vpop.f32.mrb[62].mxu0  ;;  %vm4514_vm13 = vcmask 433152  }
0x140c   : > { %v3934_v34 = vsel %vm3926_vm14, %v3878_v23, %v3930_v26  ;;  %v3883_v35 = vpop.f32.mrb[63].mxu0 }
0x140d   : > { %v5401_v38 = vpack.i.bf16 %v3937_v18, %v3934_v34  ;;  %v3935_v36 = vsel %vm3927_vm9, %v3880_v27, %v3931_v32 }
0x140e   : > { %v5411_v43 = vpack.i.bf16 %v3936_v39, %v3935_v36 }
0x140f   : > { %5402 = vrot.lane.b32.xlu1 %v5401_v38, %s5762_s13  ;;  %5397 = vrot.lane.b32.xlu0 %v5401_v38, %s5761_s12 }
0x1413   : > { %5407 = vrot.lane.b32.xlu0 %v5401_v38, %s5763_s14  ;;  %5412 = vrot.lane.b32.xlu1 %v5411_v43, %s5761_s12 }
0x1417   : > { %5422 = vrot.lane.b32.xlu0 %v5411_v43, %s5763_s14  ;;  %5417 = vrot.lane.b32.xlu1 %v5411_v43, %s5762_s13 }
0x141b   : > { %5432 = vrot.lane.b32.xlu0 %v5401_v38, %s5760_s11  ;;  %5427 = vrot.lane.b32.xlu1 %v5411_v43, %s5760_s11  ;;  %v3938_v38 = vld [vmem:[%s7042_s3 + $0x58] sm:$0x3] }
0x1481   : > { %v5403_v40 = vpop.permute.xlu1 %5402  ;;  %v5398_v21 = vpop.permute.xlu0 %5397 }
0x1482   : > { %v5400_v4 = vunpack.i.h.bf16 %v5398_v21  ;;  %v5399_v44 = vunpack.i.l.bf16 %v5398_v21  ;;  %v5405_v12 = vunpack.i.h.bf16 %v5403_v40  ;;  %v5404_v50 = vunpack.i.l.bf16 %v5403_v40 }
0x1484   : > { %v4006_v42 = vpack.c.bf16 %v5400_v4, %v3937_v18 }
0x1485   : > { %v5408_v48 = vpop.permute.xlu0 %5407  ;;  %v5413_v6 = vpop.permute.xlu1 %5412 }
0x1486   : > { %v5415_v28 = vunpack.i.h.bf16 %v5413_v6  ;;  %v5414_v49 = vunpack.i.l.bf16 %v5413_v6  ;;  %4071 = vmatprep.subr.bf16.mxu1 %v4006_v42  ;;  %v5410_v45 = vunpack.i.h.bf16 %v5408_v48  ;;  %v5409_v53 = vunpack.i.l.bf16 %v5408_v48 }
0x1488   : > { %v3953_v52 = vsel %vm404_vm1, %v5415_v28, %v5400_v4  ;;  %v3951_v54 = vsel %vm404_vm1, %v5399_v44, %v5414_v49  ;;  %v3952_v46 = vsel %vm404_vm1, %v5414_v49, %v5415_v28  ;;  %v4010_v60 = vpack.c.bf16 %v5410_v45, %v5405_v12 }
0x1489   : > { %v4005_v55 = vpack.c.bf16 %v3953_v52, %v3936_v39  ;;  %v4003_v56 = vpack.c.bf16 %v3951_v54, %v3934_v34  ;;  %v5423_v57 = vpop.permute.xlu0 %5422  ;;  %v5418_v58 = vpop.permute.xlu1 %5417  ;;  %v4004_v59 = vpack.c.bf16 %v3952_v46, %v3935_v36 }
0x148a   : > { %v5425_v41 = vunpack.i.h.bf16 %v5423_v57  ;;  %v5424_v62 = vunpack.i.l.bf16 %v5423_v57  ;;  %v5420_v63 = vunpack.i.h.bf16 %v5418_v58  ;;  %v5419_v0 = vunpack.i.l.bf16 %v5418_v58 }
0x148b   : > { %4030 = vmatprep.subr.bf16.mxu0 %v4004_v59  ;;  %4072 = vmatpush1.bf16.msra.mxu1 %v4005_v55  ;;  %v4125_v59 = vstv %s4987_s24 }
0x148c   : > { %v3983_v1 = vsel %vm449_vm4, %v5425_v41, %v5410_v45  ;;  %v3981_v5 = vsel %vm449_vm4, %v5409_v53, %v5424_v62  ;;  %v3968_v8 = vsel %vm427_vm2, %v5420_v63, %v5405_v12  ;;  %v3966_v11 = vsel %vm427_vm2, %v5404_v50, %v5419_v0  ;;  %4031 = vmatpush1.bf16.msra.mxu0 %v4003_v56 }
0x148d   : > { %v4009_v13 = vpack.c.bf16 %v3983_v1, %v3968_v8  ;;  %v4007_v31 = vpack.c.bf16 %v3981_v5, %v3966_v11  ;;  %4073 = vmatprep.subr.bf16.mxu1 %v4010_v60  ;;  %v5433_v16 = vpop.permute.xlu0 %5432  ;;  %v5428_v17 = vpop.permute.xlu1 %5427  ;;  %v3967_v10 = vsel %vm427_vm2, %v5419_v0, %v5420_v63  ;;  %v3982_v7 = vsel %vm449_vm4, %v5424_v62, %v5425_v41 }
0x148e   : > { %v5435_v20 = vunpack.i.h.bf16 %v5433_v16  ;;  %v5434_v22 = vunpack.i.l.bf16 %v5433_v16  ;;  %v5430_v19 = vunpack.i.h.bf16 %v5428_v17  ;;  %v5429_v3 = vunpack.i.l.bf16 %v5428_v17 }
0x148f   : > { %v4008_v23 = vpack.c.bf16 %v3982_v7, %v3967_v10  ;;  %4074 = vmatpush1.bf16.msra.mxu1 %v4009_v13  ;;  %v4130_v63 = vmul.f32 %v4125_v59, %v5964_v15  ;;  %v4127_v1 = vmul.f32 %v4125_v59, %v5962_v14  ;;  %v4128_v13 = vmul.f32 %v4125_v59, %v5958_v2 }
0x1490   : > { %v4014_v47 = vpack.c.bf16 %v5768_v24, %v5435_v20  ;;  %v3998_v25 = vsel %vm469_vm5, %v5430_v19, %v5435_v20  ;;  %v3996_v26 = vsel %vm469_vm5, %v5434_v22, %v5429_v3  ;;  %v3997_v27 = vsel %vm469_vm5, %v5429_v3, %v5430_v19 }
0x1491   : > { %v4013_v30 = vpack.c.bf16 %v5768_v24, %v3998_v25  ;;  %v4011_v18 = vpack.c.bf16 %v5768_v24, %v3996_v26  ;;  %4032 = vmatprep.subr.bf16.mxu0 %v4008_v23  ;;  %v4012_v32 = vpack.c.bf16 %v5768_v24, %v3997_v27 }
0x1492   : > { %4033 = vmatpush1.bf16.msra.mxu0 %v4007_v31  ;;  %v4028_v33 = vand.u32 %v4014_v47, %v6076_v51  ;;  %v4129_v31 = vmul.f32 %v4125_v59, %v5960_v9 }
0x1493   : > { %v4022_v37 = vand.u32 %v4012_v32, %v6076_v51  ;;  %v4025_v34 = vand.u32 %v4013_v30, %v6076_v51  ;;  %v4019_v35 = vand.u32 %v4011_v18, %v6076_v51 }
0x1494   : > { %4075 = vmatprep.subr.bf16.mxu1 %v4028_v33 }
0x1495   : > { %4034 = vmatprep.subr.bf16.mxu0 %v4022_v37  ;;  %4076 = vmatpush1.bf16.msra.mxu1 %v4025_v34 }
0x1496   : > { %4035 = vmatpush1.bf16.msra.mxu0 %v4019_v35 }
0x1498   : > { %4833 = vmatmul.mubr.msk.bf16.vlgmr.msra.gmra.mrb[40].mxu1 %vm1034_vm0, %v3938_v38 }
0x1499   : > { %4832 = vmatmul.mubr.msk.bf16.vlgmr.msra.gmra.mrb[64].mxu0 %vm1034_vm0, %v3938_v38  ;;  %4378 = vmatprep.mubr.bf16.mxu1 %v5764_v29 }
0x149a   : > { %4337 = vmatprep.mubr.bf16.mxu0 %v5764_v29 }
0x156b   : > { %v4105_v36 = vpop.f32.mrb[40].mxu1 }
0x156c   : > { %vm4114_vm8 = vcmp.ge.f32.partialorder %v4105_v36, 0.0  ;;  %v4118_v39 = vmul.f32 0.01, %v4105_v36  ;;  %v4064_v43 = vpop.f32.mrb[64].mxu0  ;;  %v4107_v40 = vpop.f32.mrb[41].mxu1 }
0x156d   : > { %vm4112_vm10 = vcmp.ge.f32.partialorder %v4064_v43, 0.0  ;;  %v4116_v21 = vmul.f32 0.01, %v4064_v43  ;;  %vm4115_vm11 = vcmp.ge.f32.partialorder %v4107_v40, 0.0  ;;  %v4119_v4 = vmul.f32 0.01, %v4107_v40 }
0x156e   : > { %v4122_v42 = vsel %vm4114_vm8, %v4105_v36, %v4118_v39  ;;  %v4066_v48 = vpop.f32.mrb[65].mxu0  ;;  %v4109_v6 = vpop.f32.mrb[42].mxu1 }
0x156f   : > { %v4137_v44 = vrot.slane %v4122_v42, 4  ;;  %v4120_v28 = vsel %vm4112_vm10, %v4064_v43, %v4116_v21  ;;  %v4123_v49 = vsel %vm4115_vm11, %v4107_v40, %v4119_v4  ;;  %vm4113_vm3 = vcmp.ge.f32.partialorder %v4066_v48, 0.0  ;;  %v4068_v12 = vpop.f32.mrb[66].mxu0  ;;  %v4110_v45 = vpop.f32.mrb[43].mxu1 }
0x1570   : > { %v4138_v50 = vrot.slane %v4123_v49, 4  ;;  %v4117_v52 = vmul.f32 0.01, %v4066_v48  ;;  %v4069_v54 = vpop.f32.mrb[67].mxu0  ;;  %v4135_v46 = vrot.slane %v4120_v28, 4 }
0x1572   : > { %v5441_v53 = vpack.i.bf16 %v4138_v50, %v4137_v44  ;;  %v4121_v55 = vsel %vm4113_vm3, %v4066_v48, %v4117_v52 }
0x1573   : > { %v4136_v56 = vrot.slane %v4121_v55, 4 }
0x1574   : > { %5442 = vrot.lane.b32.xlu0 %v5441_v53, %s5772_s23 }
0x1575   : > { %v5436_v57 = vpack.i.bf16 %v4136_v56, %v4135_v46 }
0x1577   : > { %5437 = vrot.lane.b32.xlu1 %v5436_v57, %s5772_s23 }
0x15e6   : > { %v5443_v58 = vpop.permute.xlu0 %5442 }
0x15e7   : > { %v5445_v41 = vunpack.i.h.bf16 %v5443_v58  ;;  %v5444_v62 = vunpack.i.l.bf16 %v5443_v58 }
0x15e9   : > { %v4150_v0 = vsel %vm4147_vm12, %v5444_v62, %v5445_v41  ;;  %v5438_v60 = vpop.permute.xlu1 %5437 }
0x15ea   : > { %v4158_v5 = vsel %vm485_vm6, %v4130_v63, %v4150_v0  ;;  %v5440_v8 = vunpack.i.h.bf16 %v5438_v60  ;;  %v5439_v11 = vunpack.i.l.bf16 %v5438_v60 }
0x15ec   : > { %v4149_v16 = vsel %vm4147_vm12, %v5440_v8, %v5444_v62  ;;  %v4148_v17 = vsel %vm4147_vm12, %v5439_v11, %v5440_v8  ;;  %v4155_v10 = vsel %vm485_vm6, %v4127_v1, %v5439_v11 }
0x15ed   : > { %v4157_v7 = vsel %vm485_vm6, %v4129_v31, %v4149_v16  ;;  %v4156_v15 = vsel %vm485_vm6, %v4128_v13, %v4148_v17  ;;  %v5446_v20 = vpack.i.bf16 %v4155_v10, %v4158_v5 }
0x15ee   : > { %v5461_v22 = vpack.i.bf16 %v4157_v7, %v4156_v15 }
0x15ef   : > { %5447 = vrot.lane.b32.xlu0 %v5446_v20, %s5761_s12 }
0x15f0   : > { %5462 = vrot.lane.b32.xlu1 %v5461_v22, %s5761_s12  ;;  %s5773_s12 = smov 88  }
0x15f3   : > { %5452 = vrot.lane.b32.xlu0 %v5446_v20, %s5762_s13 }
0x15f4   : > { %5467 = vrot.lane.b32.xlu1 %v5461_v22, %s5762_s13 }
0x15f7   : > { %5457 = vrot.lane.b32.xlu0 %v5446_v20, %s5763_s14 }
0x15f8   : > { %5472 = vrot.lane.b32.xlu1 %v5461_v22, %s5763_s14 }
0x15fb   : > { %5482 = vrot.lane.b32.xlu0 %v5446_v20, %s5760_s11 }
0x15fc   : > { %5477 = vrot.lane.b32.xlu1 %v5461_v22, %s5760_s11 }
0x1661   : > { %v5448_v2 = vpop.permute.xlu0 %5447 }
0x1662   : > { %v5449_v9 = vunpack.i.l.bf16 %v5448_v2  ;;  %v5463_v14 = vpop.permute.xlu1 %5462  ;;  %v5450_v19 = vunpack.i.h.bf16 %v5448_v2 }
0x1663   : > { %v5465_v3 = vunpack.i.h.bf16 %v5463_v14  ;;  %v5464_v23 = vunpack.i.l.bf16 %v5463_v14 }
0x1664   : > { %v4227_v47 = vpack.c.bf16 %v5449_v9, %v4158_v5 }
0x1665   : > { %v4174_v25 = vsel %vm404_vm1, %v5465_v3, %v5449_v9  ;;  %v5453_v26 = vpop.permute.xlu0 %5452  ;;  %v4172_v18 = vsel %vm404_vm1, %v5450_v19, %v5464_v23  ;;  %v4173_v40 = vsel %vm404_vm1, %v5464_v23, %v5465_v3  ;;  %vm4272_vm1 = vcmask 719872  }
0x1666   : > { %v4226_v27 = vpack.c.bf16 %v4174_v25, %v4157_v7  ;;  %4254 = vrot.lane.b32.xlu1 %v4227_v47, %s5773_s12  ;;  %v5468_v30 = vpop.permute.xlu1 %5467  ;;  %v5454_v32 = vunpack.i.l.bf16 %v5453_v26  ;;  %v4224_v34 = vpack.c.bf16 %v4172_v18, %v4155_v10  ;;  %v5455_v4 = vunpack.i.h.bf16 %v5453_v26 }
0x1667   : > { %v5470_v33 = vunpack.i.h.bf16 %v5468_v30  ;;  %v5469_v48 = vunpack.i.l.bf16 %v5468_v30  ;;  %v4225_v52 = vpack.c.bf16 %v4173_v40, %v4156_v15 }
0x1668   : > { %4252 = vrot.lane.b32.xlu0 %v4226_v27, %s5773_s12 }
0x1669   : > { %v5458_v37 = vpop.permute.xlu0 %5457  ;;  %v4189_v42 = vsel %vm427_vm2, %v5470_v33, %v5454_v32  ;;  %v4187_v54 = vsel %vm427_vm2, %v5455_v4, %v5469_v48  ;;  %v4188_v56 = vsel %vm427_vm2, %v5469_v48, %v5470_v33 }
0x166a   : > { %v5459_v35 = vunpack.i.l.bf16 %v5458_v37  ;;  %v5473_v38 = vpop.permute.xlu1 %5472  ;;  %v5460_v36 = vunpack.i.h.bf16 %v5458_v37 }
0x166b   : > { %v5475_v39 = vunpack.i.h.bf16 %v5473_v38  ;;  %v5474_v43 = vunpack.i.l.bf16 %v5473_v38 }
0x166c   : > { %v4231_v21 = vpack.c.bf16 %v5459_v35, %v5454_v32  ;;  %4248 = vrot.lane.b32.xlu0 %v4224_v34, %s5773_s12  ;;  %v4159_v32 = vld [vmem:[%s7042_s3 + $0x60] sm:$0x3] }
0x166d   : > { %v4204_v6 = vsel %vm449_vm4, %v5475_v39, %v5459_v35  ;;  %v5483_v44 = vpop.permute.xlu0 %5482  ;;  %v4202_v12 = vsel %vm449_vm4, %v5460_v36, %v5474_v43  ;;  %v4203_v46 = vsel %vm449_vm4, %v5474_v43, %v5475_v39 }
0x166e   : > { %v4230_v28 = vpack.c.bf16 %v4204_v6, %v4189_v42  ;;  %4262 = vrot.lane.b32.xlu1 %v4231_v21, %s5773_s12  ;;  %v5478_v49 = vpop.permute.xlu1 %5477  ;;  %v5484_v45 = vunpack.i.l.bf16 %v5483_v44  ;;  %v4228_v55 = vpack.c.bf16 %v4202_v12, %v4187_v54  ;;  %v5485_v57 = vunpack.i.h.bf16 %v5483_v44 }
0x166f   : > { %v5480_v50 = vunpack.i.h.bf16 %v5478_v49  ;;  %v5479_v53 = vunpack.i.l.bf16 %v5478_v49  ;;  %v4229_v59 = vpack.c.bf16 %v4203_v46, %v4188_v56 }
0x1670   : > { %4260 = vrot.lane.b32.xlu0 %v4230_v28, %s5773_s12  ;;  %v4235_v1 = vpack.c.bf16 %v5768_v24, %v5484_v45 }
0x1671   : > { %v4219_v58 = vsel %vm469_vm5, %v5480_v50, %v5484_v45  ;;  %v4218_v41 = vsel %vm469_vm5, %v5479_v53, %v5480_v50  ;;  %v4217_v63 = vsel %vm469_vm5, %v5485_v57, %v5479_v53  ;;  %v4399_v57 = vld [vmem:[%s7042_s3 + $0x68] sm:$0x3] }
0x1672   : > { %4250 = vrot.lane.b32.xlu1 %v4225_v52, %s5773_s12  ;;  %v4234_v62 = vpack.c.bf16 %v5768_v24, %v4219_v58  ;;  %v4233_v0 = vpack.c.bf16 %v5768_v24, %v4218_v41  ;;  %v4232_v60 = vpack.c.bf16 %v5768_v24, %v4217_v63 }
0x1674   : > { %4256 = vrot.lane.b32.xlu0 %v4228_v55, %s5773_s12 }
0x1676   : > { %4258 = vrot.lane.b32.xlu1 %v4229_v59, %s5773_s12 }
0x1678   : > { %4268 = vrot.lane.b32.xlu0 %v4234_v62, %s5773_s12 }
0x167a   : > { %4266 = vrot.lane.b32.xlu1 %v4233_v0, %s5773_s12 }
0x167c   : > { %4264 = vrot.lane.b32.xlu0 %v4232_v60, %s5773_s12 }
0x167e   : > { %4270 = vrot.lane.b32.xlu1 %v4235_v1, %s5773_s12 }
0x16d8   : > { %v4255_v5 = vpop.permute.xlu1 %4254 }
0x16d9   : > { %4346 = vmatprep.subr.bf16.mxu1 %v4255_v5 }
0x16da   : > { %v4253_v8 = vpop.permute.xlu0 %4252 }
0x16db   : > { %v4275_v11 = vsel %vm4272_vm1, %v4253_v8, %v4255_v5 }
0x16dc   : > { %4347 = vmatpush1.bf16.msra.mxu1 %v4275_v11 }
0x16de   : > { %v4249_v13 = vpop.permute.xlu0 %4248 }
0x16e0   : > { %v4263_v31 = vpop.permute.xlu1 %4262 }
0x16e1   : > { %4348 = vmatprep.subr.bf16.mxu1 %v4263_v31 }
0x16e2   : > { %v4261_v16 = vpop.permute.xlu0 %4260 }
0x16e3   : > { %v4278_v17 = vsel %vm4272_vm1, %v4261_v16, %v4263_v31 }
0x16e4   : > { %v4251_v10 = vpop.permute.xlu1 %4250  ;;  %4349 = vmatpush1.bf16.msra.mxu1 %v4278_v17 }
0x16e5   : > { %v4273_v24 = vsel %vm4272_vm1, %v4249_v13, %v4251_v10  ;;  %v4274_v7 = vsel %vm4272_vm1, %v4251_v10, %v4253_v8 }
0x16e6   : > { %4305 = vmatprep.subr.bf16.mxu0 %v4274_v7  ;;  %v4257_v15 = vpop.permute.xlu0 %4256 }
0x16e7   : > { %4306 = vmatpush1.bf16.msra.mxu0 %v4273_v24 }
0x16e8   : > { %v4259_v20 = vpop.permute.xlu1 %4258 }
0x16e9   : > { %v4276_v22 = vsel %vm4272_vm1, %v4257_v15, %v4259_v20  ;;  %v4277_v2 = vsel %vm4272_vm1, %v4259_v20, %v4261_v16 }
0x16ea   : > { %4307 = vmatprep.subr.bf16.mxu0 %v4277_v2  ;;  %v4269_v9 = vpop.permute.xlu0 %4268 }
0x16eb   : > { %4308 = vmatpush1.bf16.msra.mxu0 %v4276_v22 }
0x16ec   : > { %v4267_v14 = vpop.permute.xlu1 %4266 }
0x16ed   : > { %v4280_v19 = vsel %vm4272_vm1, %v4267_v14, %v4269_v9 }
0x16ee   : > { %v4297_v3 = vand.u32 %v4280_v19, %v6076_v51  ;;  %v4265_v23 = vpop.permute.xlu0 %4264 }
0x16ef   : > { %v4279_v47 = vsel %vm4272_vm1, %v4265_v23, %v4267_v14 }
0x16f0   : > { %v4294_v25 = vand.u32 %v4279_v47, %v6076_v51  ;;  %v4271_v26 = vpop.permute.xlu1 %4270  ;;  %4309 = vmatprep.subr.bf16.mxu0 %v4297_v3 }
0x16f1   : > { %v4281_v27 = vsel %vm4272_vm1, %v4269_v9, %v4271_v26  ;;  %v4303_v30 = vand.u32 %v4271_v26, %v6076_v51 }
0x16f2   : > { %v4300_v18 = vand.u32 %v4281_v27, %v6076_v51  ;;  %4310 = vmatpush1.bf16.msra.mxu0 %v4294_v25 }
0x16f3   : > { %4350 = vmatprep.subr.bf16.mxu1 %v4303_v30 }
0x16f4   : > { %4351 = vmatpush1.bf16.msra.mxu1 %v4300_v18 }
0x16f5   : > { %4834 = vmatmul.mubr.msk.bf16.vlgmr.msra.gmra.mrb[68].mxu0 %vm1034_vm0, %v4159_v32 }
0x16f6   : > { %4456 = vmatprep.mubr.bf16.mxu0 %v5764_v29 }
0x16f7   : > { %4835 = vmatmul.mubr.msk.bf16.vlgmr.msra.gmra.mrb[44].mxu1 %vm1034_vm0, %v4159_v32  ;;  %vm4408_vm0 = vcmask 39936  }
0x16f8   : > { %4497 = vmatprep.mubr.bf16.mxu1 %v5764_v29 }
0x17c8   : > { %v4339_v33 = vpop.f32.mrb[68].mxu0 }
0x17c9   : > { %vm4387_vm2 = vcmp.ge.f32.partialorder %v4339_v33, 0.0  ;;  %v4391_v37 = vmul.f32 0.01, %v4339_v33  ;;  %v4341_v34 = vpop.f32.mrb[69].mxu0 }
0x17ca   : > { %vm4388_vm4 = vcmp.ge.f32.partialorder %v4341_v34, 0.0  ;;  %v4392_v51 = vmul.f32 0.01, %v4341_v34  ;;  %v4343_v35 = vpop.f32.mrb[70].mxu0  ;;  %v4380_v38 = vpop.f32.mrb[44].mxu1 }
0x17cb   : > { %v4395_v36 = vsel %vm4387_vm2, %v4339_v33, %v4391_v37  ;;  %vm4389_vm5 = vcmp.ge.f32.partialorder %v4380_v38, 0.0  ;;  %v4393_v39 = vmul.f32 0.01, %v4380_v38  ;;  %v4344_v43 = vpop.f32.mrb[71].mxu0  ;;  %v4382_v40 = vpop.f32.mrb[45].mxu1 }
0x17cc   : > { %v4400_v21 = vsel %vm485_vm6, %v4395_v36, 1.0  ;;  %v4396_v4 = vsel %vm4388_vm4, %v4341_v34, %v4392_v51  ;;  %vm4390_vm15 = vcmp.ge.f32.partialorder %v4382_v40, 0.0  ;;  %v4394_v42 = vmul.f32 0.01, %v4382_v40  ;;  %v4384_v48 = vpop.f32.mrb[46].mxu1 }
0x17cd   : > { %v4404_v29 = vpack.c.bf16 %v4400_v21, %v4400_v21  ;;  %v4401_v6 = vsel %vm485_vm6, %v4396_v4, 1.0  ;;  %v4397_v44 = vsel %vm4389_vm5, %v4380_v38, %v4393_v39  ;;  %v4385_v28 = vpop.f32.mrb[47].mxu1 }
0x17ce   : > { %v4405_v49 = vpack.c.bf16 %v4401_v6, %v4401_v6  ;;  %v4402_v12 = vsel %vm485_vm6, %v4397_v44, 1.0  ;;  %v4398_v45 = vsel %vm4390_vm15, %v4382_v40, %v4394_v42 }
0x17cf   : > { %v4413_v50 = vand.u32 %v4404_v29, %v6003_v61  ;;  %v4406_v52 = vpack.c.bf16 %v4402_v12, %v4402_v12  ;;  %v4403_v54 = vsel %vm485_vm6, %v4398_v45, 1.0 }
0x17d0   : > { %v4407_v46 = vpack.c.bf16 %v4403_v54, %v4403_v54  ;;  %v4416_v53 = vand.u32 %v4405_v49, %v6003_v61 }
0x17d1   : > { %v4419_v56 = vand.u32 %v4406_v52, %v6003_v61 }
0x17d2   : > { %4424 = vmatprep.subr.bf16.mxu0 %v4416_v53  ;;  %v4422_v55 = vand.u32 %v4407_v46, %v6003_v61 }
0x17d3   : > { %4425 = vmatpush1.bf16.msra.mxu0 %v4413_v50 }
0x17d4   : > { %4465 = vmatprep.subr.bf16.mxu1 %v4422_v55 }
0x17d5   : > { %4466 = vmatpush1.bf16.msra.mxu1 %v4419_v56 }
0x17d6   : > { %4836 = vmatmul.mubr.msk.bf16.vlgmr.msra.gmra.mrb[72].mxu0 %vm4408_vm0, %v4399_v57 }
0x17d8   : > { %4837 = vmatmul.mubr.msk.bf16.vlgmr.msra.gmra.mrb[48].mxu1 %vm4408_vm0, %v4399_v57 }
0x18a9   : > { %v4458_v58 = vpop.f32.mrb[72].mxu0 }
0x18aa   : > { %v4838_v59 = vclamps-f32 %v4458_v58, 1.0  ;;  %v4460_v41 = vpop.f32.mrb[73].mxu0 }
0x18ab   : > { %v4499_v62 = vpop.f32.mrb[48].mxu1  ;;  %v4839_v61 = vclamps-f32 %v4460_v41, 1.0  ;;  %v4462_v63 = vpop.f32.mrb[74].mxu0 }
0x18ac   : > { %v4840_v0 = vclamps-f32 %v4499_v62, 1.0  ;;  %v4516_v60 = vsel %vm485_vm6, %v4838_v59, 0.0  ;;  %v4501_v1 = vpop.f32.mrb[49].mxu1  ;;  %v4463_v5 = vpop.f32.mrb[75].mxu0 }
0x18ad   : > { %4520 = vst [vmem:[%s339_s10] sm:$0xff] %v4516_v60  ;;  %v4841_v8 = vclamps-f32 %v4501_v1, 1.0  ;;  %v4517_v11 = vsel %vm485_vm6, %v4839_v61, 0.0  ;;  %v4503_v13 = vpop.f32.mrb[50].mxu1 }
0x18ae   : > { %v4518_v31 = vsel %vm485_vm6, %v4840_v0, 0.0  ;;  %4521 = vst [vmem:[%s339_s10 + $0x8] sm:$0xff] %v4517_v11  ;;  %v4504_v16 = vpop.f32.mrb[51].mxu1 }
0x18af   : > { %4522 = vst [vmem:[%s339_s10 + $0x10] sm:$0xff] %v4518_v31  ;;  %v4515_v17 = vsel %vm4514_vm13, %v4841_v8, 0.0 }
0x18b0   : > { %v4519_v10 = vsel %vm485_vm6, %v4515_v17, 0.0 }
0x18b1   : > { %4523 = vst [vmem:[%s339_s10 + $0x18] sm:$0xff] %v4519_v10 }
0x18b2 PF: > { %s18_s27 = sadd.s32 1, %s5757_s27  }
0x18b3   : > { %p15_p4 = scmp.ge.s32.totalorder %s18_s27, 4  }
0x18b5   :  { %17 = sbr.rel (!%p15_p4) target bundleno = 1 (0x1), region = 88 }

</bundles_post_ra>
